<compile_context>
chip_gen: v7x
topology: tpu7x:2x2x1
jax: 0.10.0
libtpu: 0.0.40
codegen_flags: <defaults>
</compile_context>

<pallas_src>
import jax
import jax.numpy as jnp
from jax.experimental import pallas as pl
from jax.experimental.pallas import tpu as pltpu

K = 64            # Config.text_embedding_size (synthetic, lane-friendly)
H1 = 2 * K        # fc1 output width = 128
D_IN = 768        # BERT hidden size
TM = 256          # batch tile (rows per grid step) -- fills MXU M dimension


def text2vec_kernel(x_ref, w1_ref, b1_ref, w34_ref, b34_ref, w5_ref, b5_ref, o_ref):
    x = x_ref[...]                                                    # (TM, 768) bf16

    # fc1 + ReLU (f32 accumulation)
    h1 = jnp.dot(x, w1_ref[...], preferred_element_type=jnp.float32) + b1_ref[...]
    h1 = jnp.maximum(h1, 0.0)                                         # (TM, 128) f32

    # Dropout(0.3): inference mode -> identity (see TODO above)

    # fused fc3 @ fc4 : one lane-dense (TM,128)@(128,768) matmul
    h2 = jnp.dot(h1.astype(jnp.bfloat16), w34_ref[...],
                 preferred_element_type=jnp.float32) + b34_ref[...]   # (TM, 768) f32

    # fc5
    out = jnp.dot(h2.astype(jnp.bfloat16), w5_ref[...],
                  preferred_element_type=jnp.float32) + b5_ref[...]   # (TM, 768) f32

    o_ref[...] = out.astype(o_ref.dtype)


def text2vec_forward(x, params):
    """x: (B, 768) float32. params: weights (in_dim, out_dim) f32, biases (1, out_dim) f32."""
    B, D = x.shape
    assert D == D_IN

    # Pad batch to a multiple of TM; padded rows are discarded at the end.
    B_pad = ((B + TM - 1) // TM) * TM
    if B_pad != B:
        x = jnp.pad(x, ((0, B_pad - B), (0, 0)))

    # Fuse fc3/fc4 in f32, then cast matmul operands to bf16 (biases stay f32).
    w34_f32 = params["w3"] @ params["w4"]                    # (128, 768)
    b34 = params["b3"] @ params["w4"] + params["b4"]         # (1, 768)

    xb = x.astype(jnp.bfloat16)
    w1 = params["w1"].astype(jnp.bfloat16)
    w34 = w34_f32.astype(jnp.bfloat16)
    w5 = params["w5"].astype(jnp.bfloat16)
    b1 = params["b1"].astype(jnp.float32)
    b34 = b34.astype(jnp.float32)
    b5 = params["b5"].astype(jnp.float32)

    # Grid-invariant (whole-array) spec for weights/biases.
    full = lambda arr: pl.BlockSpec(arr.shape, lambda i: (0, 0))

    weight_elems = D_IN * H1 + H1 * D_IN + D_IN * D_IN
    flops = 2 * B_pad * weight_elems
    bytes_accessed = (B_pad * D_IN * 2          # x tiles (bf16 in)
                      + B_pad * D_IN * 4        # output (f32)
                      + weight_elems * 2        # bf16 weights
                      + (H1 + D_IN + D_IN) * 4) # f32 biases

    out = pl.pallas_call(
        text2vec_kernel,
        out_shape=jax.ShapeDtypeStruct((B_pad, D_IN), jnp.float32),
        grid_spec=pltpu.PrefetchScalarGridSpec(
            num_scalar_prefetch=0,
            grid=(B_pad // TM,),
            in_specs=[
                pl.BlockSpec((TM, D_IN), lambda i: (i, 0)),   # x tile
                full(w1), full(b1),
                full(w34), full(b34),
                full(w5), full(b5),
            ],
            out_specs=pl.BlockSpec((TM, D_IN), lambda i: (i, 0)),
        ),
        compiler_params=pltpu.CompilerParams(
            dimension_semantics=("parallel",),
            vmem_limit_bytes=40 * 1024 * 1024),
        cost_estimate=pl.CostEstimate(
            flops=flops, transcendentals=0, bytes_accessed=bytes_accessed),
    )(xb, w1, b1, w34, b34, w5, b5)

    return out[:B]


def init_params(key):
    """Deterministic synthetic parameters. Linear(in, out) stored as (in, out) so y = x @ W + b."""
    ks = jax.random.split(key, 10)

    def linear(kw, kb, fan_in, fan_out):
        bound = 1.0 / (fan_in ** 0.5)
        w = jax.random.uniform(kw, (fan_in, fan_out), jnp.float32, -bound, bound)
        b = jax.random.uniform(kb, (1, fan_out), jnp.float32, -bound, bound)
        return w, b

    w1, b1 = linear(ks[0], ks[1], D_IN, H1)        # fc1: 768 -> 2k
    w3, b3 = linear(ks[2], ks[3], H1, K)           # fc3: 2k -> k
    w4, b4 = linear(ks[4], ks[5], K, D_IN)         # fc4: k -> 768
    w5, b5 = linear(ks[6], ks[7], D_IN, D_IN)      # fc5: 768 -> 768
    return dict(w1=w1, b1=b1, w3=w3, b3=b3, w4=w4, b4=b4, w5=w5, b5=b5)


def reference_forward(x, p):
    """Pure-JAX f32 reference with the original (unfused) PyTorch structure."""
    h = jnp.maximum(x @ p["w1"] + p["b1"], 0.0)
    h = h @ p["w3"] + p["b3"]
    h = h @ p["w4"] + p["b4"]
    return h @ p["w5"] + p["b5"]


if __name__ == "__main__":
    key = jax.random.PRNGKey(0)
    kx, kp = jax.random.split(key)

    B = 8
    x = jax.random.normal(kx, (B, D_IN), dtype=jnp.float32)
    params = init_params(kp)

    out = text2vec_forward(x, params)
    out = jax.block_until_ready(out)

    ref = reference_forward(x, params)
    assert out.shape == (B, D_IN)
    # bf16 matmuls (f32 accumulation) + fc3*fc4 fusion => slightly looser tolerance.
    assert jnp.allclose(out, ref, atol=2e-2, rtol=2e-2), "mismatch vs pure-JAX reference"

    print("KERNEL_OK")
</pallas_src>

<mosaic_0001>
module attributes {stable_mosaic.version = 11 : i64} {
  func.func @text2vec_kernel(%arg0: i32, %arg1: memref<256x768xbf16, #tpu.memory_space<vmem>>, %arg2: memref<768x128xbf16, #tpu.memory_space<vmem>>, %arg3: memref<1x128xf32, #tpu.memory_space<vmem>>, %arg4: memref<128x768xbf16, #tpu.memory_space<vmem>>, %arg5: memref<1x768xf32, #tpu.memory_space<vmem>>, %arg6: memref<768x768xbf16, #tpu.memory_space<vmem>>, %arg7: memref<1x768xf32, #tpu.memory_space<vmem>>, %arg8: memref<256x768xf32, #tpu.memory_space<vmem>>) attributes {dimension_semantics = [#tpu.dimension_semantics<parallel>], iteration_bounds = array<i64: 1>, scalar_prefetch = 0 : i64, scratch_operands = 0 : i64, tpu.core_type = #tpu.core_type<tc>, window_params = [{transform_indices = @transform_0, window_bounds = array<i64: 256, 768>}, {pipeline_mode = #tpu.pipeline_mode<synchronous>, transform_indices = @transform_1, window_bounds = array<i64: 768, 128>}, {pipeline_mode = #tpu.pipeline_mode<synchronous>, transform_indices = @transform_2, window_bounds = array<i64: 1, 128>}, {pipeline_mode = #tpu.pipeline_mode<synchronous>, transform_indices = @transform_3, window_bounds = array<i64: 128, 768>}, {pipeline_mode = #tpu.pipeline_mode<synchronous>, transform_indices = @transform_4, window_bounds = array<i64: 1, 768>}, {pipeline_mode = #tpu.pipeline_mode<synchronous>, transform_indices = @transform_5, window_bounds = array<i64: 768, 768>}, {pipeline_mode = #tpu.pipeline_mode<synchronous>, transform_indices = @transform_6, window_bounds = array<i64: 1, 768>}, {transform_indices = @transform_7, window_bounds = array<i64: 256, 768>}]} {
    %c0 = arith.constant 0 : index
    %c0_0 = arith.constant 0 : index
    %0 = vector.load %arg1[%c0, %c0_0] : memref<256x768xbf16, #tpu.memory_space<vmem>>, vector<256x768xbf16>
    %c0_1 = arith.constant 0 : index
    %c0_2 = arith.constant 0 : index
    %1 = vector.load %arg2[%c0_1, %c0_2] : memref<768x128xbf16, #tpu.memory_space<vmem>>, vector<768x128xbf16>
    %cst = arith.constant dense<0.000000e+00> : vector<256x128xf32>
    %2 = tpu.matmul %0, %1, %cst {dimension_numbers = #tpu.dot_dimension_numbers<[1], [0], [0], [1], [0, 0, 1, 1], [], []>} : vector<256x768xbf16>, vector<768x128xbf16>, vector<256x128xf32> -> vector<256x128xf32>
    %c0_3 = arith.constant 0 : index
    %c0_4 = arith.constant 0 : index
    %3 = vector.load %arg3[%c0_3, %c0_4] : memref<1x128xf32, #tpu.memory_space<vmem>>, vector<1x128xf32>
    %4 = vector.broadcast %3 : vector<1x128xf32> to vector<256x128xf32>
    %5 = arith.addf %2, %4 : vector<256x128xf32>
    %cst_5 = arith.constant 0.000000e+00 : f32
    %6 = vector.broadcast %cst_5 : f32 to vector<256x128xf32>
    %7 = arith.maximumf %5, %6 : vector<256x128xf32>
    %8 = arith.truncf %7 : vector<256x128xf32> to vector<256x128xbf16>
    %c0_6 = arith.constant 0 : index
    %c0_7 = arith.constant 0 : index
    %9 = vector.load %arg4[%c0_6, %c0_7] : memref<128x768xbf16, #tpu.memory_space<vmem>>, vector<128x768xbf16>
    %cst_8 = arith.constant dense<0.000000e+00> : vector<256x768xf32>
    %10 = tpu.matmul %8, %9, %cst_8 {dimension_numbers = #tpu.dot_dimension_numbers<[1], [0], [0], [1], [0, 0, 1, 1], [], []>} : vector<256x128xbf16>, vector<128x768xbf16>, vector<256x768xf32> -> vector<256x768xf32>
    %c0_9 = arith.constant 0 : index
    %c0_10 = arith.constant 0 : index
    %11 = vector.load %arg5[%c0_9, %c0_10] : memref<1x768xf32, #tpu.memory_space<vmem>>, vector<1x768xf32>
    %12 = vector.broadcast %11 : vector<1x768xf32> to vector<256x768xf32>
    %13 = arith.addf %10, %12 : vector<256x768xf32>
    %14 = arith.truncf %13 : vector<256x768xf32> to vector<256x768xbf16>
    %c0_11 = arith.constant 0 : index
    %c0_12 = arith.constant 0 : index
    %15 = vector.load %arg6[%c0_11, %c0_12] : memref<768x768xbf16, #tpu.memory_space<vmem>>, vector<768x768xbf16>
    %cst_13 = arith.constant dense<0.000000e+00> : vector<256x768xf32>
    %16 = tpu.matmul %14, %15, %cst_13 {dimension_numbers = #tpu.dot_dimension_numbers<[1], [0], [0], [1], [0, 0, 1, 1], [], []>} : vector<256x768xbf16>, vector<768x768xbf16>, vector<256x768xf32> -> vector<256x768xf32>
    %c0_14 = arith.constant 0 : index
    %c0_15 = arith.constant 0 : index
    %17 = vector.load %arg7[%c0_14, %c0_15] : memref<1x768xf32, #tpu.memory_space<vmem>>, vector<1x768xf32>
    %18 = vector.broadcast %17 : vector<1x768xf32> to vector<256x768xf32>
    %19 = arith.addf %16, %18 : vector<256x768xf32>
    %c0_16 = arith.constant 0 : index
    %c0_17 = arith.constant 0 : index
    %20 = vector.load %arg8[%c0_16, %c0_17] : memref<256x768xf32, #tpu.memory_space<vmem>>, vector<256x768xf32>
    tpu.vector_store %arg8[%c0_16, %c0_17], %19 {strides = array<i32>} : memref<256x768xf32, #tpu.memory_space<vmem>>, vector<256x768xf32>,
    return
  }
  func.func @transform_0(%arg0: i32) -> (i32, i32) {
    %c0_i32 = arith.constant 0 : i32
    %c0_i32_0 = arith.constant 0 : i32
    return %arg0, %c0_i32 : i32, i32
  }
  func.func @transform_1(%arg0: i32) -> (i32, i32) {
    %c0_i32 = arith.constant 0 : i32
    %c0_i32_0 = arith.constant 0 : i32
    %c0_i32_1 = arith.constant 0 : i32
    return %c0_i32, %c0_i32_0 : i32, i32
  }
  func.func @transform_2(%arg0: i32) -> (i32, i32) {
    %c0_i32 = arith.constant 0 : i32
    %c0_i32_0 = arith.constant 0 : i32
    %c0_i32_1 = arith.constant 0 : i32
    return %c0_i32, %c0_i32_0 : i32, i32
  }
  func.func @transform_3(%arg0: i32) -> (i32, i32) {
    %c0_i32 = arith.constant 0 : i32
    %c0_i32_0 = arith.constant 0 : i32
    %c0_i32_1 = arith.constant 0 : i32
    return %c0_i32, %c0_i32_0 : i32, i32
  }
  func.func @transform_4(%arg0: i32) -> (i32, i32) {
    %c0_i32 = arith.constant 0 : i32
    %c0_i32_0 = arith.constant 0 : i32
    %c0_i32_1 = arith.constant 0 : i32
    return %c0_i32, %c0_i32_0 : i32, i32
  }
  func.func @transform_5(%arg0: i32) -> (i32, i32) {
    %c0_i32 = arith.constant 0 : i32
    %c0_i32_0 = arith.constant 0 : i32
    %c0_i32_1 = arith.constant 0 : i32
    return %c0_i32, %c0_i32_0 : i32, i32
  }
  func.func @transform_6(%arg0: i32) -> (i32, i32) {
    %c0_i32 = arith.constant 0 : i32
    %c0_i32_0 = arith.constant 0 : i32
    %c0_i32_1 = arith.constant 0 : i32
    return %c0_i32, %c0_i32_0 : i32, i32
  }
  func.func @transform_7(%arg0: i32) -> (i32, i32) {
    %c0_i32 = arith.constant 0 : i32
    %c0_i32_0 = arith.constant 0 : i32
    return %arg0, %c0_i32 : i32, i32
  }
}

</mosaic_0001>

<bundles_post_ra>
// kernel: tpu_custom_call.1
= control target key start
LH: loop header
LB: loop body
LE: loop exit
PB: predicated region body
PF: predicated region fallthrough
CT: control target
= control target key end

     0   :  { %12 = vsyncpa [#allocation3], 0  ;;  %s10127_s0 = inlined_call_operand.hbm [shape: bf16[256,768], index: 0, kind: input, shape index: {}]   ;;  %s10128_s1 = inlined_call_operand.hbm [shape: bf16[768,128], index: 1, kind: input, shape index: {}]   ;;  %s10129_s2 = inlined_call_operand.hbm [shape: f32[1,128], index: 2, kind: input, shape index: {}]   ;;  %s10130_s3 = inlined_call_operand.hbm [shape: bf16[128,768], index: 3, kind: input, shape index: {}]   ;;  %s10131_s4 = inlined_call_operand.hbm [shape: f32[1,768], index: 4, kind: input, shape index: {}]   ;;  %s10132_s5 = inlined_call_operand.hbm [shape: bf16[768,768], index: 5, kind: input, shape index: {}]   ;;  %s10133_s6 = inlined_call_operand.hbm [shape: f32[1,768], index: 6, kind: input, shape index: {}]   ;;  %s10134_s7 = inlined_call_operand.hbm [shape: f32[256,768], index: 7, kind: output, shape index: {}]  }
   0x1   :  { %13 = vsyncpa [#allocation6], 0 }
   0x2   :  { %14 = vsyncpa [#allocation9], 0 }
   0x3   :  { %15 = vsyncpa [#allocation12], 0 }
   0x4   :  { %16 = vsyncpa [#allocation4], 0  ;;  %s8627_s24 = smov [#allocation5]   ;;  %s8441_s28 = scalar_lea.hbm %s10128_s1, 6144 }
   0x5   :  { %s34_s25 = sshll.u32 %s8627_s24, 4  ;;  %p8442_p0 = scmp.ne.s32.totalorder %s10128_s1, %s8441_s28  ;;  %s35_s25 = int_to_ptr.vmem [resolvable:$true] %s34_s25 }
   0x6   :  { %p8445_p1 = scmp.lt.u32.totalorder %s8441_s28, %s10128_s1 }
   0x8   :  { %p8447_p2 = pnand %p8445_p1, %p8442_p0 }
   0xa   :  { %8450 = shalt.err (!%p8447_p2)
}
   0xb   :  { %s8451_s10 = scalar_lea.vmem %s35_s25, 6144  ;;  %p8456_p4 = scmp.lt.s32.totalorder %s35_s25, %s35_s25 }
   0xc   :  { %p8452_p3 = scmp.ne.s32.totalorder %s35_s25, %s8451_s10  ;;  %p8457_p5 = scmp.lt.s32.totalorder %s8451_s10, %s8451_s10 }
   0xe   :  { %p8458_p6 = por %p8457_p5, %p8456_p4 }
  0x10   :  { %p8459_p7 = pnand %p8458_p6, %p8452_p3 }
  0x12   :  { %8462 = shalt.err (!%p8459_p7)
}
  0x13   :  { %s8628_s11 = smov 64   ;;  %s8629_s12 = smov 4  }
  0x14   :  { %40 = dma.hbm_to_vmem [thread:$0]  %s10128_s1, 6144, %s35_s25, [#allocation6], %s8628_s11, %s8628_s11, %s8629_s12  }
  0x15   :  { %s8630_s15 = smov [#allocation8]   ;;  %s8631_s17 = smov [#allocation11]  }
  0x16   :  { %s56_s16 = sshll.u32 %s8630_s15, 4  ;;  %s78_s18 = sshll.u32 %s8631_s17, 4  ;;  %s57_s16 = int_to_ptr.vmem [resolvable:$true] %s56_s16  ;;  %s79_s18 = int_to_ptr.vmem [resolvable:$true] %s78_s18 }
  0x17   :  { %s8463_s21 = scalar_lea.hbm %s10130_s3, 6144 }
  0x18   :  { %p8464_p8 = scmp.ne.s32.totalorder %s10130_s3, %s8463_s21  ;;  %p8467_p9 = scmp.lt.u32.totalorder %s8463_s21, %s10130_s3 }
  0x1a   :  { %p8469_p10 = pnand %p8467_p9, %p8464_p8 }
  0x1c   :  { %8472 = shalt.err (!%p8469_p10)
}
  0x1d   :  { %s8473_s1 = scalar_lea.vmem %s57_s16, 6144  ;;  %p8478_p12 = scmp.lt.s32.totalorder %s57_s16, %s57_s16 }
  0x1e   :  { %p8474_p11 = scmp.ne.s32.totalorder %s57_s16, %s8473_s1  ;;  %p8479_p13 = scmp.lt.s32.totalorder %s8473_s1, %s8473_s1 }
  0x20   :  { %p8480_p0 = por %p8479_p13, %p8478_p12 }
  0x22   :  { %p8481_p1 = pnand %p8480_p0, %p8474_p11 }
  0x24   :  { %8484 = shalt.err (!%p8481_p1)
}
  0x25   :  { %s8632_s25 = smov 384   ;;  %s8633_s27 = smov 24  }
  0x26   :  { %62 = dma.hbm_to_vmem [thread:$0]  %s10130_s3, 6144, %s57_s16, [#allocation9], %s8632_s25, %s8632_s25, %s8633_s27  }
  0x27   :  { %s8485_s9 = scalar_lea.hbm %s10132_s5, 36864 }
  0x28   :  { %p8486_p2 = scmp.ne.s32.totalorder %s10132_s5, %s8485_s9  ;;  %p8489_p3 = scmp.lt.u32.totalorder %s8485_s9, %s10132_s5 }
  0x2a   :  { %p8491_p4 = pnand %p8489_p3, %p8486_p2 }
  0x2c   :  { %8494 = shalt.err (!%p8491_p4)
}
  0x2d   :  { %s8495_s14 = scalar_lea.vmem %s79_s18, 36864  ;;  %p8500_p6 = scmp.lt.s32.totalorder %s79_s18, %s79_s18 }
  0x2e   :  { %p8496_p5 = scmp.ne.s32.totalorder %s79_s18, %s8495_s14  ;;  %p8501_p7 = scmp.lt.s32.totalorder %s8495_s14, %s8495_s14 }
  0x30   :  { %p8502_p8 = por %p8501_p7, %p8500_p6 }
  0x32   :  { %p8503_p9 = pnand %p8502_p8, %p8496_p5 }
  0x34   :  { %8506 = shalt.err (!%p8503_p9)
}
  0x35   :  { %84 = dma.hbm_to_vmem [thread:$0]  %s10132_s5, 36864, %s79_s18, [#allocation12], %s8632_s25, %s8632_s25, %s8633_s27  }
  0x36   :  { %s8634_s16 = smov [#allocation2]   ;;  %s8635_s19 = smov [#allocation7]  }
  0x37   :  { %s22_s17 = sshll.u32 %s8634_s16, 4  ;;  %s47_s20 = sshll.u32 %s8635_s19, 4  ;;  %s23_s17 = int_to_ptr.vmem [resolvable:$true] %s22_s17  ;;  %s48_s20 = int_to_ptr.vmem [resolvable:$true] %s47_s20 }
  0x38   :  { %s8507_s23 = scalar_lea.hbm %s10127_s0, 12288 }
  0x39   :  { %p8508_p10 = scmp.ne.s32.totalorder %s10127_s0, %s8507_s23  ;;  %p8511_p11 = scmp.lt.u32.totalorder %s8507_s23, %s10127_s0 }
  0x3b   :  { %p8513_p12 = pnand %p8511_p11, %p8508_p10 }
  0x3d   :  { %8516 = shalt.err (!%p8513_p12)
}
  0x3e   :  { %s8517_s5 = scalar_lea.vmem %s23_s17, 12288  ;;  %p8522_p0 = scmp.lt.s32.totalorder %s23_s17, %s23_s17 }
  0x3f   :  { %p8518_p13 = scmp.ne.s32.totalorder %s23_s17, %s8517_s5  ;;  %p8523_p1 = scmp.lt.s32.totalorder %s8517_s5, %s8517_s5 }
  0x41   :  { %p8524_p2 = por %p8523_p1, %p8522_p0 }
  0x43   :  { %p8525_p3 = pnand %p8524_p2, %p8518_p13 }
  0x45   :  { %8528 = shalt.err (!%p8525_p3)
}
  0x46   :  { %28 = dma.hbm_to_vmem [thread:$0]  %s10127_s0, 12288, %s23_s17, [#allocation3], %s8632_s25, %s8632_s25, %s8633_s27  }
  0x47   :  { %s8529_s9 = scalar_lea.hbm %s10129_s2, 16 }
  0x48   :  { %p8530_p4 = scmp.ne.s32.totalorder %s10129_s2, %s8529_s9  ;;  %p8533_p5 = scmp.lt.u32.totalorder %s8529_s9, %s10129_s2 }
  0x4a   :  { %p8535_p6 = pnand %p8533_p5, %p8530_p4 }
  0x4c   :  { %8538 = shalt.err (!%p8535_p6)
}
  0x4d   :  { %s8539_s14 = scalar_lea.vmem %s48_s20, 16  ;;  %s8543_s3 = scalar_lea.vmem %s48_s20, 32 }
  0x4e   :  { %p8540_p7 = scmp.ne.s32.totalorder %s48_s20, %s8539_s14  ;;  %p8544_p8 = scmp.lt.s32.totalorder %s48_s20, %s48_s20 }
  0x4f   :  { %p8545_p9 = scmp.lt.s32.totalorder %s8543_s3, %s8539_s14 }
  0x51   :  { %p8546_p10 = por %p8545_p9, %p8544_p8 }
  0x53   :  { %p8547_p11 = pnand %p8546_p10, %p8540_p7 }
  0x55   :  { %8550 = shalt.err (!%p8547_p11)
}
  0x56   :  { %50 = dma.hbm_to_vmem [thread:$0]  %s10129_s2, 16, %s48_s20, [#allocation6]  }
  0x57   :  { %s8636_s27 = smov [#allocation10]   ;;  %s8637_s16 = smov [#allocation13]  }
  0x58   :  { %s69_s15 = sshll.u32 %s8636_s27, 4  ;;  %s91_s17 = sshll.u32 %s8637_s16, 4  ;;  %s70_s15 = int_to_ptr.vmem [resolvable:$true] %s69_s15  ;;  %s92_s17 = int_to_ptr.vmem [resolvable:$true] %s91_s17 }
  0x59   :  { %s8551_s22 = scalar_lea.hbm %s10131_s4, 96 }
  0x5a   :  { %p8552_p12 = scmp.ne.s32.totalorder %s10131_s4, %s8551_s22  ;;  %p8555_p13 = scmp.lt.u32.totalorder %s8551_s22, %s10131_s4 }
  0x5c   :  { %p8557_p0 = pnand %p8555_p13, %p8552_p12 }
  0x5e   :  { %8560 = shalt.err (!%p8557_p0)
}
  0x5f   :  { %s8561_s2 = scalar_lea.vmem %s70_s15, 96  ;;  %p8566_p2 = scmp.lt.s32.totalorder %s70_s15, %s70_s15 }
  0x60   :  { %p8562_p1 = scmp.ne.s32.totalorder %s70_s15, %s8561_s2  ;;  %p8567_p3 = scmp.lt.s32.totalorder %s8561_s2, %s8561_s2 }
  0x62   :  { %p8568_p4 = por %p8567_p3, %p8566_p2 }
  0x64   :  { %p8569_p5 = pnand %p8568_p4, %p8562_p1 }
  0x66   :  { %8572 = shalt.err (!%p8569_p5)
}
  0x67   :  { %72 = dma.hbm_to_vmem [thread:$0]  %s10131_s4, 96, %s70_s15, [#allocation9]  }
  0x68   :  { %s8573_s29 = scalar_lea.hbm %s10133_s6, 96 }
  0x69   :  { %p8574_p6 = scmp.ne.s32.totalorder %s10133_s6, %s8573_s29  ;;  %p8577_p7 = scmp.lt.u32.totalorder %s8573_s29, %s10133_s6 }
  0x6b   :  { %p8579_p8 = pnand %p8577_p7, %p8574_p6 }
  0x6d   :  { %8582 = shalt.err (!%p8579_p8)
}
  0x6e   :  { %s8583_s11 = scalar_lea.vmem %s92_s17, 96  ;;  %p8588_p10 = scmp.lt.s32.totalorder %s92_s17, %s92_s17 }
  0x6f   :  { %p8584_p9 = scmp.ne.s32.totalorder %s92_s17, %s8583_s11  ;;  %p8589_p11 = scmp.lt.s32.totalorder %s8583_s11, %s8583_s11 }
  0x71   :  { %p8590_p12 = por %p8589_p11, %p8588_p10 }
  0x73   :  { %p8591_p13 = pnand %p8590_p12, %p8584_p9 }
  0x75   :  { %8594 = shalt.err (!%p8591_p13)
}
  0x76   :  { %94 = dma.hbm_to_vmem [thread:$0]  %s10133_s6, 96, %s92_s17, [#allocation12]  }
  0x77   :  { %8617 = dma.done.wait [#allocation3], 12288  }
  0x78   :  { %8618 = vsyncadd [#allocation3], 4294955008 }
  0x79   :  { %8619 = dma.done.wait [#allocation6], 6160  }
  0x7a   :  { %8620 = vsyncadd [#allocation6], 4294961136 }
  0x7b   :  { %8621 = dma.done.wait [#allocation9], 6240  }
  0x7c   :  { %8622 = vsyncadd [#allocation9], 4294961056 }
  0x7d   :  { %8623 = dma.done.wait [#allocation12], 36960  }
  0x7e   :  { %8624 = vsyncadd [#allocation12], 4294930336  ;;  %v7743_v0 = vld [vmem:[#allocation5 + $0x40] sm:$0xff]   ;;  %v7745_v2 = vld [vmem:[#allocation5 + $0x48] sm:$0xff]   ;;  %s8639_s6 = smov [#allocation14]  }
  0x7f   :  { %v7744_v1 = vld [vmem:[#allocation5] sm:$0xff]   ;;  %6800 = vmatprep.subr.bf16.mxu1 %v7743_v0  ;;  %v7746_v3 = vld [vmem:[#allocation5 + $0x8] sm:$0xff]   ;;  %v7747_v4 = vld [vmem:[#allocation5 + $0x50] sm:$0xff]   ;;  %s6304_s13 = sshll.u32 %s8639_s6, 4  ;;  %s6305_s13 = int_to_ptr.vmem [resolvable:$true] %s6304_s13 }
  0x80   :  { %6801 = vmatpush3.bf16.msra.mxu1 %v7744_v1  ;;  %v7748_v5 = vld [vmem:[#allocation5 + $0x10] sm:$0xff]   ;;  %v7749_v6 = vld [vmem:[#allocation5 + $0x58] sm:$0xff]   ;;  %v7751_v8 = vld [vmem:[#allocation5 + $0x60] sm:$0xff]   ;;  %s8595_s14 = scalar_lea.vmem %s6305_s13, 24576  ;;  %p8600_p1 = scmp.lt.s32.totalorder %s6305_s13, %s6305_s13 }
  0x81   :  { %6802 = vmatprep.subr.bf16.mxu1 %v7745_v2  ;;  %v7750_v7 = vld [vmem:[#allocation5 + $0x18] sm:$0xff]   ;;  %v7752_v9 = vld [vmem:[#allocation5 + $0x20] sm:$0xff]   ;;  %v7753_v10 = vld [vmem:[#allocation5 + $0x68] sm:$0xff]   ;;  %p8596_p0 = scmp.ne.s32.totalorder %s6305_s13, %s8595_s14  ;;  %p8601_p2 = scmp.lt.s32.totalorder %s8595_s14, %s8595_s14 }
  0x82   :  { %v7761_v11 = vld [vmem:[#allocation2 + $0x4] ss:$24 sps:$4 sm:$0xff]   ;;  %v7754_v12 = vld [vmem:[#allocation5 + $0x28] sm:$0xff]   ;;  %v7755_v13 = vld [vmem:[#allocation5 + $0x70] sm:$0xff]  }
  0x83   :  { %1116 = vmatprep.mubr.bf16.mxu1 %v7761_v11  ;;  %v7756_v14 = vld [vmem:[#allocation5 + $0x30] sm:$0xff]   ;;  %v7757_v15 = vld [vmem:[#allocation5 + $0x78] sm:$0xff]   ;;  %v7762_v17 = vld [vmem:[#allocation5 + $0xc0] sm:$0xff]   ;;  %p8602_p3 = por %p8601_p2, %p8600_p1 }
  0x84   :  { %6803 = vmatpush3.bf16.msra.mxu1 %v7746_v3  ;;  %v7758_v16 = vld [vmem:[#allocation5 + $0x38] sm:$0xff]   ;;  %v7763_v19 = vld [vmem:[#allocation5 + $0x80] sm:$0xff]   ;;  %v7764_v20 = vld [vmem:[#allocation2 + $0x34] ss:$24 sps:$4 sm:$0xff]  }
  0x85   :  { %6804 = vmatprep.subr.bf16.mxu1 %v7747_v4  ;;  %v7759_v18 = vld [vmem:[#allocation2] ss:$24 sps:$4 sm:$0xff]   ;;  %v7770_v21 = vld [vmem:[#allocation5 + $0xc8] sm:$0xff]   ;;  %v7778_v23 = vld [vmem:[#allocation5 + $0xd0] sm:$0xff]   ;;  %p8603_p4 = pnand %p8602_p3, %p8596_p0 }
  0x86   :  { %v7771_v22 = vld [vmem:[#allocation5 + $0x88] sm:$0xff]   ;;  %v7767_v25 = vld [vmem:[#allocation2 + $0x64] ss:$24 sps:$4 sm:$0xff]   ;;  %v7779_v26 = vld [vmem:[#allocation5 + $0x90] sm:$0xff]  }
  0x87   :  { %v7766_v24 = vld [vmem:[#allocation2 + $0x30] ss:$24 sps:$4 sm:$0xff]   ;;  %v7786_v27 = vld [vmem:[#allocation5 + $0xd8] sm:$0xff]   ;;  %v7794_v30 = vld [vmem:[#allocation5 + $0xe0] sm:$0xff]  }
  0x88   :  { %6805 = vmatpush3.bf16.msra.mxu1 %v7748_v5  ;;  %v7787_v28 = vld [vmem:[#allocation5 + $0x98] sm:$0xff]   ;;  %v7772_v31 = vld [vmem:[#allocation2 + $0x94] ss:$24 sps:$4 sm:$0xff]   ;;  %v7795_v32 = vld [vmem:[#allocation5 + $0xa0] sm:$0xff]  }
  0x89   :  { %6806 = vmatprep.subr.bf16.mxu1 %v7749_v6  ;;  %v7769_v29 = vld [vmem:[#allocation2 + $0x60] ss:$24 sps:$4 sm:$0xff]   ;;  %v7802_v33 = vld [vmem:[#allocation5 + $0xe8] sm:$0xff]   ;;  %v7810_v39 = vld [vmem:[#allocation5 + $0xf0] sm:$0xff]  }
  0x8a   :  { %v7812_v34 = vld [vmem:[#allocation5 + $0x140] sm:$0xff]   ;;  %v8777_v36 = vld [vmem:[#allocation5 + $0x148] sm:$0xff]   ;;  %v8783_v41 = vld [vmem:[#allocation5 + $0x150] sm:$0xff]  }
  0x8b   :  { %v8775_v35 = vld [vmem:[#allocation5 + $0x100] sm:$0xff]   ;;  %7024 = vmatprep.subr.bf16.mxu0 %v7812_v34  ;;  %v7803_v37 = vld [vmem:[#allocation5 + $0xa8] sm:$0xff]   ;;  %v7811_v43 = vld [vmem:[#allocation5 + $0xb0] sm:$0xff]  }
  0x8c   :  { %6807 = vmatpush3.bf16.msra.mxu1 %v7750_v7  ;;  %v7774_v38 = vld [vmem:[#allocation2 + $0x90] ss:$24 sps:$4 sm:$0xff]   ;;  %7025 = vmatpush3.bf16.msra.mxu0 %v8775_v35  ;;  %v7775_v42 = vld [vmem:[#allocation2 + $0xc4] ss:$24 sps:$4 sm:$0xff]   ;;  %v7777_v50 = vld [vmem:[#allocation2 + $0xc0] ss:$24 sps:$4 sm:$0xff]  }
  0x8d   :  { %6808 = vmatprep.subr.bf16.mxu1 %v7751_v8  ;;  %v8780_v40 = vld [vmem:[#allocation5 + $0x108] sm:$0xff]   ;;  %7026 = vmatprep.subr.bf16.mxu0 %v8777_v36  ;;  %v8786_v44 = vld [vmem:[#allocation5 + $0x110] sm:$0xff]   ;;  %v8789_v45 = vld [vmem:[#allocation5 + $0x158] sm:$0xff]  }
  0x8e   :  { %v7826_v46 = vld [vmem:[#allocation5 + $0xf8] sm:$0xff]   ;;  %v8795_v49 = vld [vmem:[#allocation5 + $0x160] sm:$0xff]   ;;  %v7780_v51 = vld [vmem:[#allocation2 + $0xf4] ss:$24 sps:$4 sm:$0xff]  }
  0x8f   :  { %v7827_v47 = vld [vmem:[#allocation5 + $0xb8] sm:$0xff]   ;;  %v8798_v52 = vld [vmem:[#allocation5 + $0x120] sm:$0xff]   ;;  %v8801_v53 = vld [vmem:[#allocation5 + $0x168] sm:$0xff]  }
  0x90   :  { %6809 = vmatpush3.bf16.msra.mxu1 %v7752_v9  ;;  %7027 = vmatpush3.bf16.msra.mxu0 %v8780_v40  ;;  %v8792_v48 = vld [vmem:[#allocation5 + $0x118] sm:$0xff]   ;;  %v8804_v54 = vld [vmem:[#allocation5 + $0x128] sm:$0xff]   ;;  %v8807_v55 = vld [vmem:[#allocation5 + $0x170] sm:$0xff]  }
  0x91   :  { %6810 = vmatprep.subr.bf16.mxu1 %v7753_v10  ;;  %7028 = vmatprep.subr.bf16.mxu0 %v8783_v41  ;;  %v7782_v56 = vld [vmem:[#allocation2 + $0xf0] ss:$24 sps:$4 sm:$0xff]   ;;  %v7783_v57 = vld [vmem:[#allocation2 + $0x124] ss:$24 sps:$4 sm:$0xff]   ;;  %v7844_v58 = vld [vmem:[#allocation2 + $0x14] ss:$24 sps:$4 sm:$0xff]  }
  0x92   :  { %v8810_v59 = vld [vmem:[#allocation5 + $0x130] sm:$0xff]   ;;  %v8813_v60 = vld [vmem:[#allocation5 + $0x178] sm:$0xff]   ;;  %1438 = vmatprep.mubr.bf16.mxu0 %v7844_v58  ;;  %v7950_v58 = vld [vmem:[#allocation8 + $0x68] ss:$24 sps:$4 sm:$0xff]  }
  0x93   :  { %v8816_v61 = vld [vmem:[#allocation5 + $0x138] sm:$0xff]   ;;  %v7788_v63 = vld [vmem:[#allocation2 + $0x154] ss:$24 sps:$4 sm:$0xff]   ;;  %v7842_v0 = vld [vmem:[#allocation2 + $0x10] ss:$24 sps:$4 sm:$0xff]  }
  0x94   :  { %6811 = vmatpush3.bf16.msra.mxu1 %v7754_v12  ;;  %7029 = vmatpush3.bf16.msra.mxu0 %v8786_v44  ;;  %v7785_v62 = vld [vmem:[#allocation2 + $0x120] ss:$24 sps:$4 sm:$0xff]   ;;  %v7848_v1 = vld [vmem:[#allocation2 + $0x44] ss:$24 sps:$4 sm:$0xff]   ;;  %v7790_v2 = vld [vmem:[#allocation2 + $0x150] ss:$24 sps:$4 sm:$0xff]  }
  0x95   :  { %6812 = vmatprep.subr.bf16.mxu1 %v7755_v13  ;;  %7030 = vmatprep.subr.bf16.mxu0 %v8789_v45  ;;  %v7791_v3 = vld [vmem:[#allocation2 + $0x184] ss:$24 sps:$4 sm:$0xff]   ;;  %v7850_v4 = vld [vmem:[#allocation2 + $0x40] ss:$24 sps:$4 sm:$0xff]   ;;  %v7854_v5 = vld [vmem:[#allocation2 + $0x74] ss:$24 sps:$4 sm:$0xff]  }
  0x96   :  { %v7793_v6 = vld [vmem:[#allocation2 + $0x180] ss:$24 sps:$4 sm:$0xff]   ;;  %v7796_v7 = vld [vmem:[#allocation2 + $0x1b4] ss:$24 sps:$4 sm:$0xff]   ;;  %v7856_v8 = vld [vmem:[#allocation2 + $0x70] ss:$24 sps:$4 sm:$0xff]  }
  0x97   :  { %v7860_v9 = vld [vmem:[#allocation2 + $0xa4] ss:$24 sps:$4 sm:$0xff]   ;;  %v7798_v10 = vld [vmem:[#allocation2 + $0x1b0] ss:$24 sps:$4 sm:$0xff]   ;;  %v7862_v12 = vld [vmem:[#allocation2 + $0xa0] ss:$24 sps:$4 sm:$0xff]  }
  0x98   :  { %6813 = vmatpush3.bf16.msra.mxu1 %v7756_v14  ;;  %7031 = vmatpush3.bf16.msra.mxu0 %v8792_v48  ;;  %v7799_v11 = vld [vmem:[#allocation2 + $0x1e4] ss:$24 sps:$4 sm:$0xff]   ;;  %v7866_v13 = vld [vmem:[#allocation2 + $0xd4] ss:$24 sps:$4 sm:$0xff]   ;;  %v7801_v14 = vld [vmem:[#allocation2 + $0x1e0] ss:$24 sps:$4 sm:$0xff]  }
  0x99   :  { %6814 = vmatprep.subr.bf16.mxu1 %v7757_v15  ;;  %7032 = vmatprep.subr.bf16.mxu0 %v8795_v49  ;;  %v7804_v15 = vld [vmem:[#allocation2 + $0x214] ss:$24 sps:$4 sm:$0xff]  }
  0x9c   :  { %6815 = vmatpush3.bf16.msra.mxu1 %v7758_v16  ;;  %7033 = vmatpush3.bf16.msra.mxu0 %v8798_v52  ;;  %v7868_v16 = vld [vmem:[#allocation2 + $0xd0] ss:$24 sps:$4 sm:$0xff]  }
  0x9d   :  { %6912 = vmatprep.subr.bf16.mxu1 %v7762_v17  ;;  %7034 = vmatprep.subr.bf16.mxu0 %v8801_v53  ;;  %v7872_v17 = vld [vmem:[#allocation2 + $0x104] ss:$24 sps:$4 sm:$0xff]  }
  0x9f   :  { %1117 = vmatmul.mubr.bf16.vlgmr.msra.gmra.mrb[0].mxu1 %v7759_v18  ;;  %v7806_v18 = vld [vmem:[#allocation2 + $0x210] ss:$24 sps:$4 sm:$0xff]  }
  0xa0   :  { %6913 = vmatpush3.bf16.msra.mxu1 %v7763_v19  ;;  %1124 = vmatprep.mubr.bf16.mxu1 %v7764_v20  ;;  %v7807_v19 = vld [vmem:[#allocation2 + $0x244] ss:$24 sps:$4 sm:$0xff]   ;;  %v7874_v20 = vld [vmem:[#allocation2 + $0x100] ss:$24 sps:$4 sm:$0xff]  }
  0xa1   :  { %6914 = vmatprep.subr.bf16.mxu1 %v7770_v21  ;;  %7035 = vmatpush3.bf16.msra.mxu0 %v8804_v54  ;;  %v7878_v21 = vld [vmem:[#allocation2 + $0x134] ss:$24 sps:$4 sm:$0xff]  }
  0xa2   :  { %7036 = vmatprep.subr.bf16.mxu0 %v8807_v55 }
  0xa4   :  { %6915 = vmatpush3.bf16.msra.mxu1 %v7771_v22  ;;  %v7809_v22 = vld [vmem:[#allocation2 + $0x240] ss:$24 sps:$4 sm:$0xff]  }
  0xa5   :  { %6916 = vmatprep.subr.bf16.mxu1 %v7778_v23  ;;  %7037 = vmatpush3.bf16.msra.mxu0 %v8810_v59  ;;  %v7815_v23 = vld [vmem:[#allocation2 + $0x274] ss:$24 sps:$4 sm:$0xff]  }
  0xa6   :  { %7038 = vmatprep.subr.bf16.mxu0 %v8813_v60 }
  0xa7   :  { %1125 = vmatmul.mubr.bf16.gmra.mrb[4].mxu1 %v7766_v24  ;;  %v7880_v24 = vld [vmem:[#allocation2 + $0x130] ss:$24 sps:$4 sm:$0xff]  }
  0xa8   :  { %1132 = vmatprep.mubr.bf16.mxu1 %v7767_v25  ;;  %6917 = vmatpush3.bf16.msra.mxu1 %v7779_v26  ;;  %v7884_v25 = vld [vmem:[#allocation2 + $0x164] ss:$24 sps:$4 sm:$0xff]   ;;  %v7818_v26 = vld [vmem:[#allocation2 + $0x270] ss:$24 sps:$4 sm:$0xff]  }
  0xa9   :  { %6918 = vmatprep.subr.bf16.mxu1 %v7786_v27  ;;  %7039 = vmatpush3.bf16.msra.mxu0 %v8816_v61  ;;  %v7822_v27 = vld [vmem:[#allocation2 + $0x2a4] ss:$24 sps:$4 sm:$0xff]  }
  0xac   :  { %6919 = vmatpush3.bf16.msra.mxu1 %v7787_v28  ;;  %1439 = vmatmul.mubr.bf16.vlgmr.msra.gmra.mrb[0].mxu0 %v7842_v0  ;;  %v7886_v28 = vld [vmem:[#allocation2 + $0x160] ss:$24 sps:$4 sm:$0xff]  }
  0xad   :  { %6920 = vmatprep.subr.bf16.mxu1 %v7794_v30  ;;  %1446 = vmatprep.mubr.bf16.mxu0 %v7848_v1  ;;  %v7831_v30 = vld [vmem:[#allocation2 + $0x2d4] ss:$24 sps:$4 sm:$0xff]  }
  0xae   :  { %v7962_v0 = vld [vmem:[#allocation8 + $0xc8] ss:$24 sps:$4 sm:$0xff]   ;;  %v7964_v1 = vld [vmem:[#allocation8 + $0xcc] ss:$24 sps:$4 sm:$0xff]  }
  0xaf   :  { %1133 = vmatmul.mubr.bf16.gmra.mrb[8].mxu1 %v7769_v29  ;;  %v7825_v29 = vld [vmem:[#allocation2 + $0x2a0] ss:$24 sps:$4 sm:$0xff]  }
  0xb0   :  { %1140 = vmatprep.mubr.bf16.mxu1 %v7772_v31  ;;  %6921 = vmatpush3.bf16.msra.mxu1 %v7795_v32  ;;  %v7834_v31 = vld [vmem:[#allocation2 + $0x2d0] ss:$24 sps:$4 sm:$0xff]   ;;  %v7840_v32 = vld [vmem:[#allocation2 + $0xc] ss:$24 sps:$4 sm:$0xff]  }
  0xb1   :  { %6922 = vmatprep.subr.bf16.mxu1 %v7802_v33  ;;  %v7838_v33 = vld [vmem:[#allocation2 + $0x8] ss:$24 sps:$4 sm:$0xff]  }
  0xb4   :  { %6923 = vmatpush3.bf16.msra.mxu1 %v7803_v37  ;;  %1447 = vmatmul.mubr.bf16.gmra.mrb[4].mxu0 %v7850_v4  ;;  %v7847_v37 = vld [vmem:[#allocation2 + $0x38] ss:$24 sps:$4 sm:$0xff]  }
  0xb5   :  { %6924 = vmatprep.subr.bf16.mxu1 %v7810_v39  ;;  %1454 = vmatprep.mubr.bf16.mxu0 %v7854_v5  ;;  %v7853_v39 = vld [vmem:[#allocation2 + $0x68] ss:$24 sps:$4 sm:$0xff]   ;;  %v7898_v5 = vld [vmem:[#allocation2 + $0x218] ss:$24 sps:$4 sm:$0xff]  }
  0xb7   :  { %1141 = vmatmul.mubr.bf16.gmra.mrb[12].mxu1 %v7774_v38  ;;  %v7851_v38 = vld [vmem:[#allocation2 + $0x6c] ss:$24 sps:$4 sm:$0xff]  }
  0xb8   :  { %1148 = vmatprep.mubr.bf16.mxu1 %v7775_v42  ;;  %6925 = vmatpush3.bf16.msra.mxu1 %v7811_v43  ;;  %v7857_v42 = vld [vmem:[#allocation2 + $0x9c] ss:$24 sps:$4 sm:$0xff]   ;;  %v7871_v43 = vld [vmem:[#allocation2 + $0xf8] ss:$24 sps:$4 sm:$0xff]  }
  0xb9   :  { %6926 = vmatprep.subr.bf16.mxu1 %v7826_v46  ;;  %v7881_v46 = vld [vmem:[#allocation2 + $0x15c] ss:$24 sps:$4 sm:$0xff]  }
  0xbc   :  { %6927 = vmatpush3.bf16.msra.mxu1 %v7827_v47  ;;  %1455 = vmatmul.mubr.bf16.gmra.mrb[8].mxu0 %v7856_v8  ;;  %v7883_v47 = vld [vmem:[#allocation2 + $0x158] ss:$24 sps:$4 sm:$0xff]  }
  0xbd   :  { %7136 = vmatprep.subr.bf16.mxu1 %v7812_v34  ;;  %1462 = vmatprep.mubr.bf16.mxu0 %v7860_v9  ;;  %v7845_v34 = vld [vmem:[#allocation2 + $0x3c] ss:$24 sps:$4 sm:$0xff]   ;;  %v7899_v9 = vld [vmem:[#allocation2 + $0x24c] ss:$24 sps:$4 sm:$0xff]  }
  0xbf   :  { %1149 = vmatmul.mubr.bf16.gmra.mrb[16].mxu1 %v7777_v50  ;;  %v7890_v50 = vld [vmem:[#allocation2 + $0x1bc] ss:$24 sps:$4 sm:$0xff]  }
  0xc0   :  { %1156 = vmatprep.mubr.bf16.mxu1 %v7780_v51  ;;  %v7937_v51 = vld [vmem:[#allocation8 + $0x4] ss:$24 sps:$4 sm:$0xff]  }
  0xc4   :  { %1463 = vmatmul.mubr.bf16.gmra.mrb[12].mxu0 %v7862_v12  ;;  %v7976_v12 = vld [vmem:[#allocation8 + $0x12c] ss:$24 sps:$4 sm:$0xff]  }
  0xc5   :  { %1470 = vmatprep.mubr.bf16.mxu0 %v7866_v13  ;;  %v7974_v13 = vld [vmem:[#allocation8 + $0x128] ss:$24 sps:$4 sm:$0xff]  }
  0xc7   :  { %1157 = vmatmul.mubr.bf16.gmra.mrb[20].mxu1 %v7782_v56  ;;  %v7944_v56 = vld [vmem:[#allocation8 + $0x38] ss:$24 sps:$4 sm:$0xff]  }
  0xc8   :  { %1164 = vmatprep.mubr.bf16.mxu1 %v7783_v57  ;;  %v7893_v57 = vld [vmem:[#allocation2 + $0x1ec] ss:$24 sps:$4 sm:$0xff]  }
  0xcc   :  { %1471 = vmatmul.mubr.bf16.gmra.mrb[16].mxu0 %v7868_v16 }
  0xcd   :  { %1478 = vmatprep.mubr.bf16.mxu0 %v7872_v17  ;;  %v7901_v17 = vld [vmem:[#allocation2 + $0x248] ss:$24 sps:$4 sm:$0xff]  }
  0xcf   :  { %1165 = vmatmul.mubr.bf16.gmra.mrb[24].mxu1 %v7785_v62  ;;  %v7956_v62 = vld [vmem:[#allocation8 + $0x98] ss:$24 sps:$4 sm:$0xff]  }
  0xd0   :  { %1172 = vmatprep.mubr.bf16.mxu1 %v7788_v63  ;;  %v7896_v63 = vld [vmem:[#allocation2 + $0x21c] ss:$24 sps:$4 sm:$0xff]  }
  0xd4   :  { %1479 = vmatmul.mubr.bf16.gmra.mrb[20].mxu0 %v7874_v20 }
  0xd5   :  { %1486 = vmatprep.mubr.bf16.mxu0 %v7878_v21  ;;  %v7902_v21 = vld [vmem:[#allocation2 + $0x27c] ss:$24 sps:$4 sm:$0xff]  }
  0xd7   :  { %1173 = vmatmul.mubr.bf16.gmra.mrb[28].mxu1 %v7790_v2 }
  0xd8   :  { %1180 = vmatprep.mubr.bf16.mxu1 %v7791_v3  ;;  %v7970_v3 = vld [vmem:[#allocation8 + $0xfc] ss:$24 sps:$4 sm:$0xff]  }
  0xdc   :  { %1487 = vmatmul.mubr.bf16.gmra.mrb[24].mxu0 %v7880_v24  ;;  %v10135_v24 = vmov 0  }
  0xdd   :  { %1494 = vmatprep.mubr.bf16.mxu0 %v7884_v25 }
  0xdf   :  { %1181 = vmatmul.mubr.bf16.gmra.mrb[32].mxu1 %v7793_v6  ;;  %v7968_v6 = vld [vmem:[#allocation8 + $0xf8] ss:$24 sps:$4 sm:$0xff]  }
  0xe0   :  { %1188 = vmatprep.mubr.bf16.mxu1 %v7796_v7 }
  0xe4   :  { %1495 = vmatmul.mubr.bf16.gmra.mrb[28].mxu0 %v7886_v28 }
  0xe5   :  { %2160 = vmatprep.mubr.bf16.mxu0 %v10135_v24 }
  0xe7   :  { %1189 = vmatmul.mubr.bf16.gmra.mrb[36].mxu1 %v7798_v10 }
  0xe8   :  { %1196 = vmatprep.mubr.bf16.mxu1 %v7799_v11 }
  0xef   :  { %1197 = vmatmul.mubr.bf16.gmra.mrb[40].mxu1 %v7801_v14 }
  0xf0   :  { %1204 = vmatprep.mubr.bf16.mxu1 %v7804_v15  ;;  %v7982_v15 = vld [vmem:[#allocation8 + $0x15c] ss:$24 sps:$4 sm:$0xff]  }
  0xf7   :  { %1205 = vmatmul.mubr.bf16.gmra.mrb[44].mxu1 %v7806_v18  ;;  %v7980_v18 = vld [vmem:[#allocation8 + $0x158] ss:$24 sps:$4 sm:$0xff]  }
  0xf8   :  { %1212 = vmatprep.mubr.bf16.mxu1 %v7807_v19 }
  0xff   :  { %1213 = vmatmul.mubr.bf16.gmra.mrb[48].mxu1 %v7809_v22 }
 0x100   :  { %1220 = vmatprep.mubr.bf16.mxu1 %v7815_v23 }
 0x107   :  { %1221 = vmatmul.mubr.bf16.gmra.mrb[52].mxu1 %v7818_v26 }
 0x108   :  { %1228 = vmatprep.mubr.bf16.mxu1 %v7822_v27  ;;  %v7904_v27 = vld [vmem:[#allocation2 + $0x278] ss:$24 sps:$4 sm:$0xff]  }
 0x10f   :  { %1229 = vmatmul.mubr.bf16.gmra.mrb[56].mxu1 %v7825_v29 }
 0x110   :  { %1236 = vmatprep.mubr.bf16.mxu1 %v7831_v30  ;;  %v7905_v30 = vld [vmem:[#allocation2 + $0x2ac] ss:$24 sps:$4 sm:$0xff]  }
 0x117   :  { %1237 = vmatmul.mubr.bf16.gmra.mrb[60].mxu1 %v7834_v31 }
 0x118   :  { %1277 = vmatprep.mubr.bf16.mxu1 %v7840_v32 }
 0x11f   :  { %1278 = vmatmul.mubr.bf16.vlgmr.msra.gmra.mrb[64].mxu1 %v7838_v33 }
 0x120   :  { %7144 = vmatpush3.bf16.msra.mxu1 %v8775_v35  ;;  %1285 = vmatprep.mubr.bf16.mxu1 %v7845_v34  ;;  %v7859_v35 = vld [vmem:[#allocation2 + $0x98] ss:$24 sps:$4 sm:$0xff]  }
 0x121   :  { %7137 = vmatprep.subr.bf16.mxu1 %v8777_v36  ;;  %v7863_v36 = vld [vmem:[#allocation2 + $0xcc] ss:$24 sps:$4 sm:$0xff]  }
 0x124   :  { %7145 = vmatpush3.bf16.msra.mxu1 %v8780_v40  ;;  %v7865_v40 = vld [vmem:[#allocation2 + $0xc8] ss:$24 sps:$4 sm:$0xff]  }
 0x125   :  { %7138 = vmatprep.subr.bf16.mxu1 %v8783_v41  ;;  %v7869_v41 = vld [vmem:[#allocation2 + $0xfc] ss:$24 sps:$4 sm:$0xff]  }
 0x127   :  { %1286 = vmatmul.mubr.bf16.gmra.mrb[68].mxu1 %v7847_v37  ;;  %v7907_v37 = vld [vmem:[#allocation2 + $0x2a8] ss:$24 sps:$4 sm:$0xff]  }
 0x128   :  { %1293 = vmatprep.mubr.bf16.mxu1 %v7851_v38  ;;  %7146 = vmatpush3.bf16.msra.mxu1 %v8786_v44  ;;  %v7875_v44 = vld [vmem:[#allocation2 + $0x12c] ss:$24 sps:$4 sm:$0xff]  }
 0x129   :  { %7139 = vmatprep.subr.bf16.mxu1 %v8789_v45  ;;  %v7877_v45 = vld [vmem:[#allocation2 + $0x128] ss:$24 sps:$4 sm:$0xff]  }
 0x12c   :  { %7147 = vmatpush3.bf16.msra.mxu1 %v8792_v48  ;;  %v7887_v48 = vld [vmem:[#allocation2 + $0x18c] ss:$24 sps:$4 sm:$0xff]  }
 0x12d   :  { %7140 = vmatprep.subr.bf16.mxu1 %v8795_v49  ;;  %v7889_v49 = vld [vmem:[#allocation2 + $0x188] ss:$24 sps:$4 sm:$0xff]  }
 0x12f   :  { %1294 = vmatmul.mubr.bf16.gmra.mrb[72].mxu1 %v7853_v39 }
 0x130   :  { %1301 = vmatprep.mubr.bf16.mxu1 %v7857_v42  ;;  %7148 = vmatpush3.bf16.msra.mxu1 %v8798_v52  ;;  %v7938_v52 = vld [vmem:[#allocation8 + $0x8] ss:$24 sps:$4 sm:$0xff]   ;;  %v7908_v42 = vld [vmem:[#allocation2 + $0x2dc] ss:$24 sps:$4 sm:$0xff]  }
 0x131   :  { %7141 = vmatprep.subr.bf16.mxu1 %v8801_v53  ;;  %v7940_v53 = vld [vmem:[#allocation8 + $0xc] ss:$24 sps:$4 sm:$0xff]  }
 0x132   :  { %2128 = vmatprep.subr.bf16.mxu0 %v7940_v53 }
 0x133   :  { %2129 = vmatpush1.bf16.msra.mxu0 %v7938_v52 }
 0x134   :  { %7149 = vmatpush3.bf16.msra.mxu1 %v8804_v54  ;;  %v7946_v54 = vld [vmem:[#allocation8 + $0x3c] ss:$24 sps:$4 sm:$0xff]  }
 0x135   :  { %7142 = vmatprep.subr.bf16.mxu1 %v8807_v55  ;;  %v7892_v55 = vld [vmem:[#allocation2 + $0x1b8] ss:$24 sps:$4 sm:$0xff]   ;;  %2130 = vmatprep.subr.bf16.mxu0 %v7946_v54  ;;  %v7914_v54 = vld [vmem:[#allocation2 + $0x1c4] ss:$24 sps:$4 sm:$0xff]  }
 0x137   :  { %1302 = vmatmul.mubr.bf16.gmra.mrb[76].mxu1 %v7859_v35  ;;  %2131 = vmatpush1.bf16.msra.mxu0 %v7944_v56 }
 0x138   :  { %1309 = vmatprep.mubr.bf16.mxu1 %v7863_v36  ;;  %7150 = vmatpush3.bf16.msra.mxu1 %v8810_v59  ;;  %v7952_v59 = vld [vmem:[#allocation8 + $0x6c] ss:$24 sps:$4 sm:$0xff]  }
 0x139   :  { %7143 = vmatprep.subr.bf16.mxu1 %v8813_v60  ;;  %2132 = vmatprep.subr.bf16.mxu0 %v7952_v59  ;;  %v7958_v60 = vld [vmem:[#allocation8 + $0x9c] ss:$24 sps:$4 sm:$0xff]   ;;  %v7941_v59 = vld [vmem:[#allocation8 + $0x30] ss:$24 sps:$4 sm:$0xff]  }
 0x13b   :  { %2133 = vmatpush1.bf16.msra.mxu0 %v7950_v58 }
 0x13c   :  { %7151 = vmatpush3.bf16.msra.mxu1 %v8816_v61  ;;  %v7895_v61 = vld [vmem:[#allocation2 + $0x1e8] ss:$24 sps:$4 sm:$0xff]   ;;  %2134 = vmatprep.subr.bf16.mxu0 %v7958_v60 }
 0x13d   :  { %1935 = vmatprep.subr.bf16.mxu1 %v7937_v51  ;;  %v7911_v51 = vld [vmem:[#allocation2 + $0x190] ss:$24 sps:$4 sm:$0xff]  }
 0x13e   :  { %v7949_v60 = vld [vmem:[#allocation8 + $0x64] ss:$24 sps:$4 sm:$0xff]  }
 0x13f   :  { %1310 = vmatmul.mubr.bf16.gmra.mrb[80].mxu1 %v7865_v40  ;;  %2135 = vmatpush1.bf16.msra.mxu0 %v7956_v62 }
 0x140   :  { %1317 = vmatprep.mubr.bf16.mxu1 %v7869_v41  ;;  %2136 = vmatprep.subr.bf16.mxu0 %v7964_v1 }
 0x143   :  { %2137 = vmatpush1.bf16.msra.mxu0 %v7962_v0 }
 0x144   :  { %2138 = vmatprep.subr.bf16.mxu0 %v7970_v3  ;;  %v7917_v3 = vld [vmem:[#allocation2 + $0x1f4] ss:$24 sps:$4 sm:$0xff]  }
 0x147   :  { %1318 = vmatmul.mubr.bf16.gmra.mrb[84].mxu1 %v7871_v43  ;;  %2139 = vmatpush1.bf16.msra.mxu0 %v7968_v6  ;;  %v7910_v43 = vld [vmem:[#allocation2 + $0x2d8] ss:$24 sps:$4 sm:$0xff]  }
 0x148   :  { %1325 = vmatprep.mubr.bf16.mxu1 %v7875_v44  ;;  %2140 = vmatprep.subr.bf16.mxu0 %v7976_v12 }
 0x14b   :  { %2141 = vmatpush1.bf16.msra.mxu0 %v7974_v13 }
 0x14c   :  { %2142 = vmatprep.subr.bf16.mxu0 %v7982_v15  ;;  %v7953_v15 = vld [vmem:[#allocation8 + $0x90] ss:$24 sps:$4 sm:$0xff]  }
 0x14f   :  { %1326 = vmatmul.mubr.bf16.gmra.mrb[88].mxu1 %v7877_v45  ;;  %2143 = vmatpush1.bf16.msra.mxu0 %v7980_v18 }
 0x150   :  { %1333 = vmatprep.mubr.bf16.mxu1 %v7881_v46  ;;  %v7913_v46 = vld [vmem:[#allocation2 + $0x194] ss:$24 sps:$4 sm:$0xff]  }
 0x157   :  { %1334 = vmatmul.mubr.bf16.gmra.mrb[92].mxu1 %v7883_v47 }
 0x158   :  { %1341 = vmatprep.mubr.bf16.mxu1 %v7887_v48 }
 0x15f   :  { %1342 = vmatmul.mubr.bf16.gmra.mrb[96].mxu1 %v7889_v49 }
 0x160   :  { %1349 = vmatprep.mubr.bf16.mxu1 %v7890_v50 }
 0x167   :  { %1350 = vmatmul.mubr.bf16.gmra.mrb[100].mxu1 %v7892_v55  ;;  %v7935_v55 = vld [vmem:[#allocation8] ss:$24 sps:$4 sm:$0xff]  }
 0x168   :  { %1357 = vmatprep.mubr.bf16.mxu1 %v7893_v57  ;;  %v7943_v57 = vld [vmem:[#allocation8 + $0x34] ss:$24 sps:$4 sm:$0xff]  }
 0x16f   :  { %1358 = vmatmul.mubr.bf16.gmra.mrb[104].mxu1 %v7895_v61 }
 0x170   :  { %1365 = vmatprep.mubr.bf16.mxu1 %v7896_v63  ;;  %v7916_v63 = vld [vmem:[#allocation2 + $0x1c0] ss:$24 sps:$4 sm:$0xff]  }
 0x172   :  { %v6816_v2 = vpop.f32.mrb[0].mxu1 }
 0x173   :  { %v6817_v4 = vpop.f32.mrb[1].mxu1 }
 0x174   :  { %v8835_v7 = vadd.f32 %v6817_v4, %v6816_v2  ;;  %v6819_v8 = vpop.f32.mrb[2].mxu1  ;;  %v7947_v4 = vld [vmem:[#allocation8 + $0x60] ss:$24 sps:$4 sm:$0xff]  }
 0x175   :  { %v6820_v10 = vpop.f32.mrb[3].mxu1 }
 0x176   :  { %v8837_v11 = vadd.f32 %v6820_v10, %v6819_v8  ;;  %v7955_v8 = vld [vmem:[#allocation8 + $0x94] ss:$24 sps:$4 sm:$0xff]  }
 0x177   :  { %1366 = vmatmul.mubr.bf16.gmra.mrb[108].mxu1 %v7898_v5 }
 0x178   :  { %1373 = vmatprep.mubr.bf16.mxu1 %v7899_v9 }
 0x17a   :  { %v6822_v14 = vpop.f32.mrb[4].mxu1 }
 0x17b   :  { %v6823_v16 = vpop.f32.mrb[5].mxu1 }
 0x17c   :  { %v8839_v19 = vadd.f32 %v6823_v16, %v6822_v14  ;;  %v6825_v20 = vpop.f32.mrb[6].mxu1  ;;  %v7961_v16 = vld [vmem:[#allocation8 + $0xc4] ss:$24 sps:$4 sm:$0xff]  }
 0x17d   :  { %v6826_v22 = vpop.f32.mrb[7].mxu1 }
 0x17e   :  { %v8841_v23 = vadd.f32 %v6826_v22, %v6825_v20  ;;  %v7919_v20 = vld [vmem:[#allocation2 + $0x1f0] ss:$24 sps:$4 sm:$0xff]  }
 0x17f   :  { %1374 = vmatmul.mubr.bf16.gmra.mrb[112].mxu1 %v7901_v17  ;;  %v7040_v0 = vpop.f32.mrb[0].mxu0 }
 0x180   :  { %1381 = vmatprep.mubr.bf16.mxu1 %v7902_v21  ;;  %v7041_v5 = vpop.f32.mrb[1].mxu0 }
 0x181   :  { %v8862_v9 = vadd.f32 %v7041_v5, %v7040_v0  ;;  %v7043_v10 = vpop.f32.mrb[2].mxu0  ;;  %v7926_v5 = vld [vmem:[#allocation2 + $0x284] ss:$24 sps:$4 sm:$0xff]  }
 0x182   :  { %v6828_v25 = vpop.f32.mrb[8].mxu1  ;;  %v7044_v13 = vpop.f32.mrb[3].mxu0 }
 0x183   :  { %v6829_v26 = vpop.f32.mrb[9].mxu1  ;;  %v8866_v14 = vadd.f32 %v7044_v13, %v7043_v10 }
 0x184   :  { %v8844_v28 = vadd.f32 %v6829_v26, %v6828_v25  ;;  %v6831_v29 = vpop.f32.mrb[10].mxu1  ;;  %v7920_v26 = vld [vmem:[#allocation2 + $0x224] ss:$24 sps:$4 sm:$0xff]  }
 0x185   :  { %v6832_v31 = vpop.f32.mrb[11].mxu1 }
 0x186   :  { %v8846_v32 = vadd.f32 %v6832_v31, %v6831_v29  ;;  %v7967_v31 = vld [vmem:[#allocation8 + $0xf4] ss:$24 sps:$4 sm:$0xff]  }
 0x187   :  { %1382 = vmatmul.mubr.bf16.gmra.mrb[116].mxu1 %v7904_v27  ;;  %v7046_v21 = vpop.f32.mrb[4].mxu0  ;;  %v7959_v27 = vld [vmem:[#allocation8 + $0xc0] ss:$24 sps:$4 sm:$0xff]  }
 0x188   :  { %1389 = vmatprep.mubr.bf16.mxu1 %v7905_v30  ;;  %v7047_v29 = vpop.f32.mrb[5].mxu0 }
 0x18a   :  { %v6834_v33 = vpop.f32.mrb[12].mxu1 }
 0x18b   :  { %v6835_v34 = vpop.f32.mrb[13].mxu1 }
 0x18c   :  { %v8848_v38 = vadd.f32 %v6835_v34, %v6834_v33  ;;  %v6837_v39 = vpop.f32.mrb[14].mxu1  ;;  %v8870_v33 = vadd.f32 %v7047_v29, %v7046_v21  ;;  %v7049_v34 = vpop.f32.mrb[6].mxu0  ;;  %v7929_v29 = vld [vmem:[#allocation2 + $0x2b4] ss:$24 sps:$4 sm:$0xff]  }
 0x18d   :  { %v6838_v35 = vpop.f32.mrb[15].mxu1 }
 0x18e   :  { %v8850_v36 = vadd.f32 %v6838_v35, %v6837_v39  ;;  %v7050_v39 = vpop.f32.mrb[7].mxu0  ;;  %v7965_v35 = vld [vmem:[#allocation8 + $0xf0] ss:$24 sps:$4 sm:$0xff]  }
 0x18f   :  { %1390 = vmatmul.mubr.bf16.gmra.mrb[120].mxu1 %v7907_v37 }
 0x190   :  { %1397 = vmatprep.mubr.bf16.mxu1 %v7908_v42  ;;  %v8874_v42 = vadd.f32 %v7050_v39, %v7049_v34 }
 0x192   :  { %v6840_v40 = vpop.f32.mrb[16].mxu1 }
 0x193   :  { %v6841_v41 = vpop.f32.mrb[17].mxu1 }
 0x194   :  { %v8852_v44 = vadd.f32 %v6841_v41, %v6840_v40  ;;  %v6843_v45 = vpop.f32.mrb[18].mxu1  ;;  %v7973_v40 = vld [vmem:[#allocation8 + $0x124] ss:$24 sps:$4 sm:$0xff]  }
 0x195   :  { %v6844_v47 = vpop.f32.mrb[19].mxu1 }
 0x196   :  { %v8854_v48 = vadd.f32 %v6844_v47, %v6843_v45  ;;  %v7922_v45 = vld [vmem:[#allocation2 + $0x220] ss:$24 sps:$4 sm:$0xff]  }
 0x197   :  { %1398 = vmatmul.mubr.bf16.gmra.mrb[124].mxu1 %v7910_v43 }
 0x198   :  { %1502 = vmatprep.mubr.bf16.mxu1 %v7913_v46  ;;  %v7052_v46 = vpop.f32.mrb[8].mxu0 }
 0x19a   :  { %v6846_v49 = vpop.f32.mrb[20].mxu1 }
 0x19b   :  { %v6847_v50 = vpop.f32.mrb[21].mxu1 }
 0x19c   :  { %v8856_v52 = vadd.f32 %v6847_v50, %v6846_v49  ;;  %v6849_v53 = vpop.f32.mrb[22].mxu1  ;;  %v7923_v49 = vld [vmem:[#allocation2 + $0x254] ss:$24 sps:$4 sm:$0xff]   ;;  %v7971_v50 = vld [vmem:[#allocation8 + $0x120] ss:$24 sps:$4 sm:$0xff]  }
 0x19d   :  { %v6850_v56 = vpop.f32.mrb[23].mxu1 }
 0x19e   :  { %v8858_v58 = vadd.f32 %v6850_v56, %v6849_v53 }
 0x19f   :  { %1503 = vmatmul.mubr.bf16.vlgmr.msra.gmra.mrb[128].mxu1 %v7911_v51  ;;  %v7053_v51 = vpop.f32.mrb[9].mxu0 }
 0x1a0   :  { %1510 = vmatprep.mubr.bf16.mxu1 %v7914_v54  ;;  %1936 = vmatpush1.bf16.msra.mxu1 %v7935_v55  ;;  %v7979_v55 = vld [vmem:[#allocation8 + $0x154] ss:$24 sps:$4 sm:$0xff]   ;;  %v8878_v56 = vadd.f32 %v7053_v51, %v7052_v46  ;;  %v7932_v51 = vld [vmem:[#allocation2 + $0x2e4] ss:$24 sps:$4 sm:$0xff]  }
 0x1a1   :  { %1937 = vmatprep.subr.bf16.mxu1 %v7943_v57  ;;  %v7055_v57 = vpop.f32.mrb[10].mxu0 }
 0x1a2   :  { %v6852_v61 = vpop.f32.mrb[24].mxu1 }
 0x1a3   :  { %v6853_v62 = vpop.f32.mrb[25].mxu1 }
 0x1a4   :  { %v8860_v1 = vadd.f32 %v6853_v62, %v6852_v61  ;;  %v6855_v2 = vpop.f32.mrb[26].mxu1  ;;  %1938 = vmatpush1.bf16.msra.mxu1 %v7941_v59  ;;  %v7056_v59 = vpop.f32.mrb[11].mxu0  ;;  %v7977_v62 = vld [vmem:[#allocation8 + $0x150] ss:$24 sps:$4 sm:$0xff]  }
 0x1a5   :  { %v6856_v6 = vpop.f32.mrb[27].mxu1  ;;  %1939 = vmatprep.subr.bf16.mxu1 %v7949_v60  ;;  %v8882_v61 = vadd.f32 %v7056_v59, %v7055_v57 }
 0x1a6   :  { %v8864_v12 = vadd.f32 %v6856_v6, %v6855_v2  ;;  %v7925_v2 = vld [vmem:[#allocation2 + $0x250] ss:$24 sps:$4 sm:$0xff]  }
 0x1a7   :  { %1511 = vmatmul.mubr.bf16.gmra.mrb[132].mxu1 %v7916_v63 }
 0x1a8   :  { %1518 = vmatprep.mubr.bf16.mxu1 %v7917_v3  ;;  %1940 = vmatpush1.bf16.msra.mxu1 %v7947_v4  ;;  %v7058_v3 = vpop.f32.mrb[12].mxu0 }
 0x1a9   :  { %1941 = vmatprep.subr.bf16.mxu1 %v7955_v8  ;;  %v7059_v6 = vpop.f32.mrb[13].mxu0 }
 0x1aa   :  { %v6858_v17 = vpop.f32.mrb[28].mxu1  ;;  %v8886_v13 = vadd.f32 %v7059_v6, %v7058_v3 }
 0x1ab   :  { %v6859_v18 = vpop.f32.mrb[29].mxu1 }
 0x1ac   :  { %v8868_v22 = vadd.f32 %v6859_v18, %v6858_v17  ;;  %v6861_v25 = vpop.f32.mrb[30].mxu1  ;;  %1942 = vmatpush1.bf16.msra.mxu1 %v7953_v15  ;;  %v7061_v15 = vpop.f32.mrb[14].mxu0 }
 0x1ad   :  { %v6862_v30 = vpop.f32.mrb[31].mxu1  ;;  %1943 = vmatprep.subr.bf16.mxu1 %v7961_v16  ;;  %v7062_v16 = vpop.f32.mrb[15].mxu0 }
 0x1ae   :  { %v8872_v37 = vadd.f32 %v6862_v30, %v6861_v25  ;;  %v8890_v18 = vadd.f32 %v7062_v16, %v7061_v15  ;;  %v7928_v25 = vld [vmem:[#allocation2 + $0x280] ss:$24 sps:$4 sm:$0xff]  }
 0x1af   :  { %1519 = vmatmul.mubr.bf16.gmra.mrb[136].mxu1 %v7919_v20 }
 0x1b0   :  { %1526 = vmatprep.mubr.bf16.mxu1 %v7920_v26  ;;  %1944 = vmatpush1.bf16.msra.mxu1 %v7959_v27  ;;  %v7064_v26 = vpop.f32.mrb[16].mxu0 }
 0x1b1   :  { %1945 = vmatprep.subr.bf16.mxu1 %v7967_v31  ;;  %v7065_v30 = vpop.f32.mrb[17].mxu0 }
 0x1b2   :  { %v6864_v41 = vpop.f32.mrb[32].mxu1  ;;  %v8894_v39 = vadd.f32 %v7065_v30, %v7064_v26 }
 0x1b3   :  { %v6865_v43 = vpop.f32.mrb[33].mxu1 }
 0x1b4   :  { %v6867_v47 = vpop.f32.mrb[34].mxu1  ;;  %1946 = vmatpush1.bf16.msra.mxu1 %v7965_v35  ;;  %v8876_v53 = vadd.f32 %v6865_v43, %v6864_v41  ;;  %v7067_v35 = vpop.f32.mrb[18].mxu0 }
 0x1b5   :  { %v6868_v54 = vpop.f32.mrb[35].mxu1  ;;  %1947 = vmatprep.subr.bf16.mxu1 %v7973_v40  ;;  %v7068_v40 = vpop.f32.mrb[19].mxu0 }
 0x1b6   :  { %v8880_v60 = vadd.f32 %v6868_v54, %v6867_v47  ;;  %v8898_v43 = vadd.f32 %v7068_v40, %v7067_v35  ;;  %v7931_v47 = vld [vmem:[#allocation2 + $0x2b0] ss:$24 sps:$4 sm:$0xff]  }
 0x1b7   :  { %1527 = vmatmul.mubr.bf16.gmra.mrb[140].mxu1 %v7922_v45 }
 0x1b8   :  { %1534 = vmatprep.mubr.bf16.mxu1 %v7923_v49  ;;  %1948 = vmatpush1.bf16.msra.mxu1 %v7971_v50  ;;  %v7070_v49 = vpop.f32.mrb[20].mxu0 }
 0x1b9   :  { %1949 = vmatprep.subr.bf16.mxu1 %v7979_v55  ;;  %v7071_v54 = vpop.f32.mrb[21].mxu0 }
 0x1ba   :  { %v6870_v63 = vpop.f32.mrb[36].mxu1  ;;  %v8902_v59 = vadd.f32 %v7071_v54, %v7070_v49 }
 0x1bb   :  { %v6871_v0 = vpop.f32.mrb[37].mxu1 }
 0x1bc   :  { %v6873_v4 = vpop.f32.mrb[38].mxu1  ;;  %1950 = vmatpush1.bf16.msra.mxu1 %v7977_v62  ;;  %v8884_v8 = vadd.f32 %v6871_v0, %v6870_v63  ;;  %v7073_v62 = vpop.f32.mrb[22].mxu0 }
 0x1bd   :  { %v6874_v10 = vpop.f32.mrb[39].mxu1  ;;  %v7074_v63 = vpop.f32.mrb[23].mxu0 }
 0x1be   :  { %v8888_v17 = vadd.f32 %v6874_v10, %v6873_v4  ;;  %v7076_v6 = vpop.f32.mrb[24].mxu0 }
 0x1bf   :  { %1535 = vmatmul.mubr.bf16.gmra.mrb[144].mxu1 %v7925_v2  ;;  %v8906_v2 = vadd.f32 %v7074_v63, %v7073_v62  ;;  %v7077_v15 = vpop.f32.mrb[25].mxu0 }
 0x1c0   :  { %1542 = vmatprep.mubr.bf16.mxu1 %v7926_v5  ;;  %v7934_v5 = vld [vmem:[#allocation2 + $0x2e0] ss:$24 sps:$4 sm:$0xff]  }
 0x1c2   :  { %v6876_v20 = vpop.f32.mrb[40].mxu1 }
 0x1c3   :  { %v6877_v21 = vpop.f32.mrb[41].mxu1 }
 0x1c4   :  { %v6879_v27 = vpop.f32.mrb[42].mxu1  ;;  %v8892_v31 = vadd.f32 %v6877_v21, %v6876_v20  ;;  %v8910_v21 = vadd.f32 %v7077_v15, %v7076_v6 }
 0x1c5   :  { %v6880_v34 = vpop.f32.mrb[43].mxu1 }
 0x1c6   :  { %v8896_v41 = vadd.f32 %v6880_v34, %v6879_v27 }
 0x1c7   :  { %1543 = vmatmul.mubr.bf16.gmra.mrb[148].mxu1 %v7928_v25  ;;  %v7079_v25 = vpop.f32.mrb[26].mxu0 }
 0x1c8   :  { %1550 = vmatprep.mubr.bf16.mxu1 %v7929_v29  ;;  %v7080_v26 = vpop.f32.mrb[27].mxu0 }
 0x1c9   :  { %v8914_v29 = vadd.f32 %v7080_v26, %v7079_v25  ;;  %v7082_v35 = vpop.f32.mrb[28].mxu0 }
 0x1ca   :  { %v6882_v45 = vpop.f32.mrb[44].mxu1 }
 0x1cb   :  { %v6883_v46 = vpop.f32.mrb[45].mxu1 }
 0x1cc   :  { %v6885_v50 = vpop.f32.mrb[46].mxu1  ;;  %v8900_v55 = vadd.f32 %v6883_v46, %v6882_v45  ;;  %v7083_v45 = vpop.f32.mrb[29].mxu0 }
 0x1cd   :  { %v6886_v57 = vpop.f32.mrb[47].mxu1  ;;  %v8919_v49 = vadd.f32 %v7083_v45, %v7082_v35 }
 0x1ce   :  { %v8904_v0 = vadd.f32 %v6886_v57, %v6885_v50  ;;  %v7085_v50 = vpop.f32.mrb[30].mxu0 }
 0x1cf   :  { %1551 = vmatmul.mubr.bf16.gmra.mrb[152].mxu1 %v7931_v47 }
 0x1d0   :  { %1558 = vmatprep.mubr.bf16.mxu1 %v7932_v51  ;;  %v7086_v51 = vpop.f32.mrb[31].mxu0 }
 0x1d1   :  { %v8923_v57 = vadd.f32 %v7086_v51, %v7085_v50 }
 0x1d2   :  { %v6888_v3 = vpop.f32.mrb[48].mxu1 }
 0x1d3   :  { %v6889_v4 = vpop.f32.mrb[49].mxu1 }
 0x1d4   :  { %v6891_v10 = vpop.f32.mrb[50].mxu1  ;;  %v8908_v16 = vadd.f32 %v6889_v4, %v6888_v3 }
 0x1d5   :  { %v6892_v20 = vpop.f32.mrb[51].mxu1 }
 0x1d6   :  { %v8912_v27 = vadd.f32 %v6892_v20, %v6891_v10 }
 0x1d7   :  { %1559 = vmatmul.mubr.bf16.gmra.mrb[156].mxu1 %v7934_v5 }
 0x1d8   :  { %1967 = vmatprep.mubr.bf16.mxu1 %v10135_v24 }
 0x1da   :  { %v6894_v30 = vpop.f32.mrb[52].mxu1 }
 0x1db   :  { %v6895_v34 = vpop.f32.mrb[53].mxu1 }
 0x1dc   :  { %v6897_v40 = vpop.f32.mrb[54].mxu1  ;;  %v8917_v46 = vadd.f32 %v6895_v34, %v6894_v30  ;;  %v8933_v34 = vld [vmem:[#allocation7] ss:$0 sm:$0xff] }
 0x1dd   :  { %v6898_v47 = vpop.f32.mrb[55].mxu1  ;;  %v1119_v45 = vadd.f32 %v8835_v7, %v8933_v34  ;;  %v1127_v24 = vadd.f32 %v8839_v19, %v8933_v34  ;;  %v10193_v19 = vmov 0  }
 0x1de   :  { %v8921_v54 = vadd.f32 %v6898_v47, %v6897_v40 }
 0x1e2   :  { %v6900_v62 = vpop.f32.mrb[56].mxu1 }
 0x1e3   :  { %v6901_v63 = vpop.f32.mrb[57].mxu1 }
 0x1e4   :  { %v6903_v3 = vpop.f32.mrb[58].mxu1  ;;  %v8925_v4 = vadd.f32 %v6901_v63, %v6900_v62  ;;  %v1122_v62 = vadd.f32 %v8837_v11, %v8933_v34  ;;  %v1130_v11 = vadd.f32 %v8841_v23, %v8933_v34  ;;  %v1135_v23 = vadd.f32 %v8844_v28, %v8933_v34 }
 0x1e5   :  { %v6904_v5 = vpop.f32.mrb[59].mxu1 }
 0x1e6   :  { %v8927_v6 = vadd.f32 %v6904_v5, %v6903_v3 }
 0x1ea   :  { %v6906_v10 = vpop.f32.mrb[60].mxu1 }
 0x1eb   :  { %v6907_v15 = vpop.f32.mrb[61].mxu1 }
 0x1ec   :  { %v6909_v20 = vpop.f32.mrb[62].mxu1  ;;  %v8929_v25 = vadd.f32 %v6907_v15, %v6906_v10 }
 0x1ed   :  { %v6910_v26 = vpop.f32.mrb[63].mxu1 }
 0x1ee   :  { %10191 = vst [vmem:[#allocation20_spill] sm:$0xff] %v8929_v25  ;;  %v8931_v30 = vadd.f32 %v6910_v26, %v6909_v20 }
 0x1f0   :  { %10192 = vst [vmem:[#allocation21_spill] sm:$0xff] %v8931_v30 }
 0x1f2   :  { %v6928_v35 = vpop.f32.mrb[64].mxu1 }
 0x1f3   :  { %v6929_v40 = vpop.f32.mrb[65].mxu1 }
 0x1f4   :  { %v6931_v47 = vpop.f32.mrb[66].mxu1  ;;  %v6930_v50 = vadd.f32 %v6929_v40, %v6928_v35 }
 0x1f5   :  { %v6932_v51 = vpop.f32.mrb[67].mxu1 }
 0x1f6   :  { %v1280_v63 = vadd.f32 %v6930_v50, %v1119_v45  ;;  %v6933_v3 = vadd.f32 %v6932_v51, %v6931_v47 }
 0x1f8   :  { %v1441_v5 = vadd.f32 %v8862_v9, %v1280_v63  ;;  %v1283_v10 = vadd.f32 %v6933_v3, %v1122_v62 }
 0x1fa   :  { %v1444_v15 = vadd.f32 %v8866_v14, %v1283_v10  ;;  %v6934_v20 = vpop.f32.mrb[68].mxu1  ;;  %v1567_v30 = vmax.f32 %v1441_v5, 0.0  ;;  %v1138_v5 = vadd.f32 %v8846_v32, %v8933_v34  ;;  %v1143_v32 = vadd.f32 %v8848_v38, %v8933_v34 }
 0x1fb   :  { %v6935_v26 = vpop.f32.mrb[69].mxu1 }
 0x1fc   :  { %v1568_v7 = vmax.f32 %v1444_v15, 0.0  ;;  %v6937_v25 = vpop.f32.mrb[70].mxu1  ;;  %v6936_v35 = vadd.f32 %v6935_v26, %v6934_v20 }
 0x1fd   :  { %v6938_v40 = vpop.f32.mrb[71].mxu1 }
 0x1fe   :  { %v8945_v45 = vpack.c.bf16 %v1568_v7, %v1567_v30  ;;  %v1288_v47 = vadd.f32 %v6936_v35, %v1127_v24  ;;  %v6939_v9 = vadd.f32 %v6938_v40, %v6937_v25 }
 0x200   :  { %v1449_v50 = vadd.f32 %v8870_v33, %v1288_v47  ;;  %v1291_v14 = vadd.f32 %v6939_v9, %v1130_v11  ;;  %1968 = vmatmul.mubr.bf16.vlgmr.msra.gmra.mrb[160].mxu1 %v8945_v45  ;;  %2161 = vmatmul.mubr.bf16.vlgmr.msra.gmra.mrb[32].mxu0 %v8945_v45 }
 0x201   :  { %1977 = vmatprep.mubr.bf16.mxu1 %v10193_v19  ;;  %2170 = vmatprep.mubr.bf16.mxu0 %v10193_v19 }
 0x202   :  { %v1452_v51 = vadd.f32 %v8874_v42, %v1291_v14  ;;  %v6940_v62 = vpop.f32.mrb[72].mxu1  ;;  %v1569_v24 = vmax.f32 %v1449_v50, 0.0  ;;  %v1146_v50 = vadd.f32 %v8850_v36, %v8933_v34  ;;  %v1151_v36 = vadd.f32 %v8852_v44, %v8933_v34 }
 0x203   :  { %v6941_v63 = vpop.f32.mrb[73].mxu1 }
 0x204   :  { %v1570_v25 = vmax.f32 %v1452_v51, 0.0  ;;  %v6943_v30 = vpop.f32.mrb[74].mxu1  ;;  %v6942_v33 = vadd.f32 %v6941_v63, %v6940_v62 }
 0x205   :  { %v6944_v3 = vpop.f32.mrb[75].mxu1 }
 0x206   :  { %v1296_v10 = vadd.f32 %v6942_v33, %v1135_v23  ;;  %v6945_v15 = vadd.f32 %v6944_v3, %v6943_v30  ;;  %v8957_v20 = vpack.c.bf16 %v1570_v25, %v1569_v24 }
 0x208   :  { %v1457_v26 = vadd.f32 %v8878_v56, %v1296_v10  ;;  %v1299_v42 = vadd.f32 %v6945_v15, %v1138_v5  ;;  %1978 = vmatmul.mubr.bf16.gmra.mrb[164].mxu1 %v8957_v20  ;;  %2171 = vmatmul.mubr.bf16.gmra.mrb[36].mxu0 %v8957_v20  ;;  %v1154_v5 = vadd.f32 %v8854_v48, %v8933_v34  ;;  %v7985_v48 = vld [vmem:[#allocation11 + $0x4] ss:$24 sps:$4 sm:$0xff]  }
 0x209   :  { %1987 = vmatprep.mubr.bf16.mxu1 %v10193_v19  ;;  %2180 = vmatprep.mubr.bf16.mxu0 %v10193_v19 }
 0x20a   :  { %v1460_v28 = vadd.f32 %v8882_v61, %v1299_v42  ;;  %v6946_v7 = vpop.f32.mrb[76].mxu1  ;;  %v1571_v40 = vmax.f32 %v1457_v26, 0.0  ;;  %4370 = vmatprep.subr.bf16.mxu0 %v7985_v48 }
 0x20b   :  { %v6947_v35 = vpop.f32.mrb[77].mxu1 }
 0x20c   :  { %v1572_v11 = vmax.f32 %v1460_v28, 0.0  ;;  %v6949_v47 = vpop.f32.mrb[78].mxu1  ;;  %v6948_v56 = vadd.f32 %v6947_v35, %v6946_v7  ;;  %v7983_v7 = vld [vmem:[#allocation11] ss:$24 sps:$4 sm:$0xff]  }
 0x20d   :  { %v6950_v9 = vpop.f32.mrb[79].mxu1  ;;  %4371 = vmatpush1.bf16.msra.mxu0 %v7983_v7 }
 0x20e   :  { %v1304_v14 = vadd.f32 %v6948_v56, %v1143_v32  ;;  %v6951_v51 = vadd.f32 %v6950_v9, %v6949_v47  ;;  %v8969_v62 = vpack.c.bf16 %v1572_v11, %v1571_v40  ;;  %v1159_v32 = vadd.f32 %v8856_v52, %v8933_v34  ;;  %v7988_v56 = vld [vmem:[#allocation8 + $0x14] ss:$24 sps:$4 sm:$0xff]  }
 0x20f   :  { %2321 = vmatprep.subr.bf16.mxu1 %v7988_v56  ;;  %v7989_v52 = vld [vmem:[#allocation11 + $0x30] ss:$24 sps:$4 sm:$0xff]   ;;  %v8009_v56 = vld [vmem:[#allocation11 + $0xc4] ss:$24 sps:$4 sm:$0xff]  }
 0x210   :  { %v1465_v63 = vadd.f32 %v8886_v13, %v1304_v14  ;;  %v1307_v61 = vadd.f32 %v6951_v51, %v1146_v50  ;;  %1988 = vmatmul.mubr.bf16.gmra.mrb[168].mxu1 %v8969_v62  ;;  %2181 = vmatmul.mubr.bf16.gmra.mrb[40].mxu0 %v8969_v62  ;;  %v7986_v50 = vld [vmem:[#allocation8 + $0x10] ss:$24 sps:$4 sm:$0xff]   ;;  %v1162_v14 = vadd.f32 %v8858_v58, %v8933_v34  ;;  %v7992_v58 = vld [vmem:[#allocation8 + $0x40] ss:$24 sps:$4 sm:$0xff]  }
 0x211   :  { %1997 = vmatprep.mubr.bf16.mxu1 %v10193_v19  ;;  %2190 = vmatprep.mubr.bf16.mxu0 %v10193_v19 }
 0x212   :  { %v1468_v38 = vadd.f32 %v8890_v18, %v1307_v61  ;;  %v6952_v23 = vpop.f32.mrb[80].mxu1  ;;  %v1573_v25 = vmax.f32 %v1465_v63, 0.0  ;;  %v7991_v61 = vld [vmem:[#allocation11 + $0x34] ss:$24 sps:$4 sm:$0xff]   ;;  %2322 = vmatpush1.bf16.msra.mxu1 %v7986_v50  ;;  %v1175_v50 = vadd.f32 %v8868_v22, %v8933_v34  ;;  %v8013_v22 = vld [vmem:[#allocation11 + $0xf0] ss:$24 sps:$4 sm:$0xff]  }
 0x213   :  { %v6953_v24 = vpop.f32.mrb[81].mxu1  ;;  %4372 = vmatprep.subr.bf16.mxu0 %v7991_v61 }
 0x214   :  { %v1574_v30 = vmax.f32 %v1468_v38, 0.0  ;;  %v6955_v33 = vpop.f32.mrb[82].mxu1  ;;  %v6954_v13 = vadd.f32 %v6953_v24, %v6952_v23  ;;  %v7994_v24 = vld [vmem:[#allocation8 + $0x44] ss:$24 sps:$4 sm:$0xff]   ;;  %4373 = vmatpush1.bf16.msra.mxu0 %v7989_v52  ;;  %v8012_v52 = vld [vmem:[#allocation8 + $0xd4] ss:$24 sps:$4 sm:$0xff]  }
 0x215   :  { %v6956_v3 = vpop.f32.mrb[83].mxu1  ;;  %2323 = vmatprep.subr.bf16.mxu1 %v7994_v24 }
 0x216   :  { %v1312_v10 = vadd.f32 %v6954_v13, %v1151_v36  ;;  %v6957_v15 = vadd.f32 %v6956_v3, %v6955_v33  ;;  %v8981_v26 = vpack.c.bf16 %v1574_v30, %v1573_v25  ;;  %v7997_v30 = vld [vmem:[#allocation11 + $0x64] ss:$24 sps:$4 sm:$0xff]   ;;  %2324 = vmatpush1.bf16.msra.mxu1 %v7992_v58  ;;  %v1167_v13 = vadd.f32 %v8860_v1, %v8933_v34  ;;  %v8001_v1 = vld [vmem:[#allocation11 + $0x90] ss:$24 sps:$4 sm:$0xff]  }
 0x217   :  { %4374 = vmatprep.subr.bf16.mxu0 %v7997_v30 }
 0x218   :  { %v1473_v42 = vadd.f32 %v8894_v39, %v1312_v10  ;;  %v1315_v18 = vadd.f32 %v6957_v15, %v1154_v5  ;;  %1998 = vmatmul.mubr.bf16.gmra.mrb[172].mxu1 %v8981_v26  ;;  %2191 = vmatmul.mubr.bf16.gmra.mrb[44].mxu0 %v8981_v26 }
 0x219   :  { %2007 = vmatprep.mubr.bf16.mxu1 %v10193_v19  ;;  %2200 = vmatprep.mubr.bf16.mxu0 %v10193_v19 }
 0x21a   :  { %v1476_v44 = vadd.f32 %v8898_v43, %v1315_v18  ;;  %v6958_v28 = vpop.f32.mrb[84].mxu1  ;;  %v1575_v40 = vmax.f32 %v1473_v42, 0.0  ;;  %v8000_v42 = vld [vmem:[#allocation8 + $0x74] ss:$24 sps:$4 sm:$0xff]  }
 0x21b   :  { %v6959_v35 = vpop.f32.mrb[85].mxu1  ;;  %2325 = vmatprep.subr.bf16.mxu1 %v8000_v42 }
 0x21c   :  { %v1576_v39 = vmax.f32 %v1476_v44, 0.0  ;;  %v6961_v11 = vpop.f32.mrb[86].mxu1  ;;  %v6960_v47 = vadd.f32 %v6959_v35, %v6958_v28  ;;  %v7998_v44 = vld [vmem:[#allocation8 + $0x70] ss:$24 sps:$4 sm:$0xff]  }
 0x21d   :  { %v6962_v9 = vpop.f32.mrb[87].mxu1  ;;  %v8003_v35 = vld [vmem:[#allocation11 + $0x94] ss:$24 sps:$4 sm:$0xff]   ;;  %2326 = vmatpush1.bf16.msra.mxu1 %v7998_v44 }
 0x21e   :  { %v1320_v43 = vadd.f32 %v6960_v47, %v1159_v32  ;;  %v6963_v51 = vadd.f32 %v6962_v9, %v6961_v11  ;;  %v8993_v63 = vpack.c.bf16 %v1576_v39, %v1575_v40  ;;  %v8006_v39 = vld [vmem:[#allocation8 + $0xa4] ss:$24 sps:$4 sm:$0xff]  }
 0x21f   :  { %2327 = vmatprep.subr.bf16.mxu1 %v8006_v39  ;;  %v8027_v39 = vld [vmem:[#allocation11 + $0x154] ss:$24 sps:$4 sm:$0xff]  }
 0x220   :  { %v1481_v38 = vadd.f32 %v8902_v59, %v1320_v43  ;;  %v1323_v23 = vadd.f32 %v6963_v51, %v1162_v14  ;;  %2008 = vmatmul.mubr.bf16.gmra.mrb[176].mxu1 %v8993_v63  ;;  %2201 = vmatmul.mubr.bf16.gmra.mrb[48].mxu0 %v8993_v63  ;;  %v7995_v59 = vld [vmem:[#allocation11 + $0x60] ss:$24 sps:$4 sm:$0xff]  }
 0x221   :  { %2017 = vmatprep.mubr.bf16.mxu1 %v10193_v19  ;;  %2210 = vmatprep.mubr.bf16.mxu0 %v10193_v19 }
 0x222   :  { %v1484_v36 = vadd.f32 %v8906_v2, %v1323_v23  ;;  %v6964_v25 = vpop.f32.mrb[88].mxu1  ;;  %v1577_v3 = vmax.f32 %v1481_v38, 0.0  ;;  %v1170_v2 = vadd.f32 %v8864_v12, %v8933_v34  ;;  %4375 = vmatpush1.bf16.msra.mxu0 %v7995_v59  ;;  %v8004_v12 = vld [vmem:[#allocation8 + $0xa0] ss:$24 sps:$4 sm:$0xff]   ;;  %v8010_v23 = vld [vmem:[#allocation8 + $0xd0] ss:$24 sps:$4 sm:$0xff]  }
 0x223   :  { %v6965_v33 = vpop.f32.mrb[89].mxu1  ;;  %4376 = vmatprep.subr.bf16.mxu0 %v8003_v35  ;;  %2328 = vmatpush1.bf16.msra.mxu1 %v8004_v12  ;;  %v8018_v59 = vld [vmem:[#allocation8 + $0x104] ss:$24 sps:$4 sm:$0xff]   ;;  %v8022_v35 = vld [vmem:[#allocation8 + $0x130] ss:$24 sps:$4 sm:$0xff]  }
 0x224   :  { %v1578_v5 = vmax.f32 %v1484_v36, 0.0  ;;  %v6967_v10 = vpop.f32.mrb[90].mxu1  ;;  %v6966_v15 = vadd.f32 %v6965_v33, %v6964_v25  ;;  %2329 = vmatprep.subr.bf16.mxu1 %v8012_v52  ;;  %v8015_v25 = vld [vmem:[#allocation11 + $0xf4] ss:$24 sps:$4 sm:$0xff]   ;;  %v8025_v12 = vld [vmem:[#allocation11 + $0x150] ss:$24 sps:$4 sm:$0xff]   ;;  %v1194_v52 = vadd.f32 %v8888_v17, %v8933_v34 }
 0x225   :  { %v6968_v18 = vpop.f32.mrb[91].mxu1 }
 0x226   :  { %v1328_v28 = vadd.f32 %v6966_v15, %v1167_v13  ;;  %v6969_v7 = vadd.f32 %v6968_v18, %v6967_v10  ;;  %v9005_v48 = vpack.c.bf16 %v1578_v5, %v1577_v3  ;;  %4377 = vmatpush1.bf16.msra.mxu0 %v8001_v1  ;;  %v8021_v5 = vld [vmem:[#allocation11 + $0x124] ss:$24 sps:$4 sm:$0xff]   ;;  %v1183_v18 = vadd.f32 %v8876_v53, %v8933_v34 }
 0x227   :  { %4378 = vmatprep.subr.bf16.mxu0 %v8009_v56  ;;  %2330 = vmatpush1.bf16.msra.mxu1 %v8010_v23  ;;  %v1186_v1 = vadd.f32 %v8880_v60, %v8933_v34  ;;  %v8028_v53 = vld [vmem:[#allocation8 + $0x160] ss:$24 sps:$4 sm:$0xff]  }
 0x228   :  { %v1489_v32 = vadd.f32 %v8910_v21, %v1328_v28  ;;  %v1331_v40 = vadd.f32 %v6969_v7, %v1170_v2  ;;  %2018 = vmatmul.mubr.bf16.gmra.mrb[180].mxu1 %v9005_v48  ;;  %2211 = vmatmul.mubr.bf16.gmra.mrb[52].mxu0 %v9005_v48  ;;  %v8007_v21 = vld [vmem:[#allocation11 + $0xc0] ss:$24 sps:$4 sm:$0xff]   ;;  %v8024_v28 = vld [vmem:[#allocation8 + $0x134] ss:$24 sps:$4 sm:$0xff]  }
 0x229   :  { %2027 = vmatprep.mubr.bf16.mxu1 %v10193_v19  ;;  %2220 = vmatprep.mubr.bf16.mxu0 %v10193_v19  ;;  %v8033_v56 = vld [vmem:[#allocation11 + $0x184] ss:$24 sps:$4 sm:$0xff]   ;;  %v8036_v23 = vld [vmem:[#allocation11 + $0x1b4] ss:$24 sps:$4 sm:$0xff]  }
 0x22a   :  { %v1492_v11 = vadd.f32 %v8914_v29, %v1331_v40  ;;  %v6970_v47 = vpop.f32.mrb[92].mxu1  ;;  %v1579_v14 = vmax.f32 %v1489_v32, 0.0  ;;  %v1178_v29 = vadd.f32 %v8872_v37, %v8933_v34  ;;  %4379 = vmatpush1.bf16.msra.mxu0 %v8007_v21  ;;  %v8016_v37 = vld [vmem:[#allocation8 + $0x100] ss:$24 sps:$4 sm:$0xff]   ;;  %2331 = vmatprep.subr.bf16.mxu1 %v8018_v59 }
 0x22b   :  { %v6971_v9 = vpop.f32.mrb[93].mxu1  ;;  %4380 = vmatprep.subr.bf16.mxu0 %v8015_v25  ;;  %2332 = vmatpush1.bf16.msra.mxu1 %v8016_v37  ;;  %v8031_v21 = vld [vmem:[#allocation11 + $0x180] ss:$24 sps:$4 sm:$0xff]  }
 0x22c   :  { %v1580_v43 = vmax.f32 %v1492_v11, 0.0  ;;  %v6973_v51 = vpop.f32.mrb[94].mxu1  ;;  %v6972_v61 = vadd.f32 %v6971_v9, %v6970_v47  ;;  %2333 = vmatprep.subr.bf16.mxu1 %v8024_v28  ;;  %v8030_v11 = vld [vmem:[#allocation8 + $0x164] ss:$24 sps:$4 sm:$0xff]  }
 0x22d   :  { %v6974_v38 = vpop.f32.mrb[95].mxu1 }
 0x22e   :  { %v1336_v24 = vadd.f32 %v6972_v61, %v1175_v50  ;;  %v6975_v58 = vadd.f32 %v6974_v38, %v6973_v51  ;;  %v9017_v36 = vpack.c.bf16 %v1580_v43, %v1579_v14  ;;  %4381 = vmatpush1.bf16.msra.mxu0 %v8013_v22  ;;  %v1191_v50 = vadd.f32 %v8884_v8, %v8933_v34  ;;  %v8037_v8 = vld [vmem:[#allocation11 + $0x1e0] ss:$24 sps:$4 sm:$0xff]  }
 0x22f   :  { %4382 = vmatprep.subr.bf16.mxu0 %v8021_v5  ;;  %2334 = vmatpush1.bf16.msra.mxu1 %v8022_v35  ;;  %v8042_v5 = vld [vmem:[#allocation11 + $0x214] ss:$24 sps:$4 sm:$0xff]   ;;  %v1210_v35 = vadd.f32 %v8904_v0, %v8933_v34 }
 0x230   :  { %v1497_v30 = vadd.f32 %v8919_v49, %v1336_v24  ;;  %v1339_v33 = vadd.f32 %v6975_v58, %v1178_v29  ;;  %2028 = vmatmul.mubr.bf16.gmra.mrb[184].mxu1 %v9017_v36  ;;  %2221 = vmatmul.mubr.bf16.gmra.mrb[56].mxu0 %v9017_v36  ;;  %v8019_v49 = vld [vmem:[#allocation11 + $0x120] ss:$24 sps:$4 sm:$0xff]   ;;  %v8034_v29 = vld [vmem:[#allocation11 + $0x1b0] ss:$24 sps:$4 sm:$0xff]   ;;  %v8039_v58 = vld [vmem:[#allocation11 + $0x1e4] ss:$24 sps:$4 sm:$0xff]  }
 0x231   :  { %2037 = vmatprep.mubr.bf16.mxu1 %v10193_v19  ;;  %2230 = vmatprep.mubr.bf16.mxu0 %v10193_v19 }
 0x232   :  { %v1500_v13 = vadd.f32 %v8923_v57, %v1339_v33  ;;  %v6976_v3 = vpop.f32.mrb[96].mxu1  ;;  %v1581_v15 = vmax.f32 %v1497_v30, 0.0  ;;  %4383 = vmatpush1.bf16.msra.mxu0 %v8019_v49  ;;  %2335 = vmatprep.subr.bf16.mxu1 %v8030_v11  ;;  %v1199_v30 = vadd.f32 %v8892_v31, %v8933_v34  ;;  %v8043_v31 = vld [vmem:[#allocation11 + $0x240] ss:$24 sps:$4 sm:$0xff]   ;;  %v8051_v11 = vld [vmem:[#allocation11 + $0x2a4] ss:$24 sps:$4 sm:$0xff]  }
 0x233   :  { %v6977_v10 = vpop.f32.mrb[97].mxu1  ;;  %4384 = vmatprep.subr.bf16.mxu0 %v8027_v39  ;;  %2336 = vmatpush1.bf16.msra.mxu1 %v8028_v53  ;;  %v8046_v39 = vld [vmem:[#allocation11 + $0x270] ss:$24 sps:$4 sm:$0xff]  }
 0x234   :  { %v1582_v42 = vmax.f32 %v1500_v13, 0.0  ;;  %v6978_v44 = vadd.f32 %v6977_v10, %v6976_v3  ;;  %v6979_v2 = vpop.f32.mrb[98].mxu1  ;;  %v1202_v13 = vadd.f32 %v8896_v41, %v8933_v34  ;;  %v8040_v10 = vld [vmem:[#allocation11 + $0x210] ss:$24 sps:$4 sm:$0xff]  }
 0x235   :  { %v6980_v7 = vpop.f32.mrb[99].mxu1 }
 0x236   :  { %v9027_v57 = vadd.f32 %v6978_v44, %v1183_v18  ;;  %v6981_v32 = vadd.f32 %v6980_v7, %v6979_v2  ;;  %v9031_v40 = vpack.c.bf16 %v1582_v42, %v1581_v15  ;;  %4385 = vmatpush1.bf16.msra.mxu0 %v8025_v12  ;;  %v8045_v15 = vld [vmem:[#allocation11 + $0x244] ss:$24 sps:$4 sm:$0xff]   ;;  %v1207_v44 = vadd.f32 %v8900_v55, %v8933_v34  ;;  %v8049_v55 = vld [vmem:[#allocation11 + $0x2a0] ss:$24 sps:$4 sm:$0xff]  }
 0x237   :  { %4386 = vmatprep.subr.bf16.mxu0 %v8033_v56 }
 0x238   :  { %v9033_v47 = vadd.f32 %v6981_v32, %v1186_v1  ;;  %2038 = vmatmul.mubr.bf16.gmra.mrb[188].mxu1 %v9031_v40  ;;  %2231 = vmatmul.mubr.bf16.gmra.mrb[60].mxu0 %v9031_v40  ;;  %v8048_v32 = vld [vmem:[#allocation11 + $0x274] ss:$24 sps:$4 sm:$0xff]  }
 0x239   :  { %2047 = vmatprep.mubr.bf16.mxu1 %v10193_v19  ;;  %2240 = vmatprep.mubr.bf16.mxu0 %v10193_v19 }
 0x23a   :  { %v6982_v60 = vpop.f32.mrb[100].mxu1  ;;  %4387 = vmatpush1.bf16.msra.mxu0 %v8031_v21 }
 0x23b   :  { %v6983_v9 = vpop.f32.mrb[101].mxu1  ;;  %4388 = vmatprep.subr.bf16.mxu0 %v8036_v23 }
 0x23c   :  { %v6984_v14 = vadd.f32 %v6983_v9, %v6982_v60  ;;  %v6985_v43 = vpop.f32.mrb[102].mxu1  ;;  %v1215_v60 = vadd.f32 %v8908_v16, %v8933_v34  ;;  %v1223_v16 = vadd.f32 %v8917_v46, %v8933_v34 }
 0x23d   :  { %v6986_v51 = vpop.f32.mrb[103].mxu1 }
 0x23e   :  { %v9041_v61 = vadd.f32 %v6984_v14, %v1191_v50  ;;  %v6987_v38 = vadd.f32 %v6986_v51, %v6985_v43  ;;  %4389 = vmatpush1.bf16.msra.mxu0 %v8034_v29  ;;  %v1218_v14 = vadd.f32 %v8912_v27, %v8933_v34  ;;  %v8054_v51 = vld [vmem:[#allocation11 + $0x2d4] ss:$24 sps:$4 sm:$0xff]   ;;  %v1226_v27 = vadd.f32 %v8921_v54, %v8933_v34 }
 0x23f   :  { %4390 = vmatprep.subr.bf16.mxu0 %v8039_v58 }
 0x240   :  { %v9045_v24 = vadd.f32 %v6987_v38, %v1194_v52  ;;  %v8052_v52 = vld [vmem:[#allocation11 + $0x2d0] ss:$24 sps:$4 sm:$0xff]  }
 0x242   :  { %v6988_v25 = vpop.f32.mrb[104].mxu1  ;;  %4391 = vmatpush1.bf16.msra.mxu0 %v8037_v8 }
 0x243   :  { %v6989_v22 = vpop.f32.mrb[105].mxu1  ;;  %4392 = vmatprep.subr.bf16.mxu0 %v8042_v5 }
 0x244   :  { %v6990_v33 = vadd.f32 %v6989_v22, %v6988_v25  ;;  %v6991_v59 = vpop.f32.mrb[106].mxu1 }
 0x245   :  { %v6992_v37 = vpop.f32.mrb[107].mxu1 }
 0x246   :  { %v9049_v17 = vadd.f32 %v6990_v33, %v1199_v30  ;;  %v6993_v3 = vadd.f32 %v6992_v37, %v6991_v59  ;;  %4393 = vmatpush1.bf16.msra.mxu0 %v8040_v10 }
 0x247   :  { %4394 = vmatprep.subr.bf16.mxu0 %v8045_v15  ;;  %v1234_v15 = vadd.f32 %v8927_v6, %v8933_v34 }
 0x248   :  { %v9053_v49 = vadd.f32 %v6993_v3, %v1202_v13  ;;  %v1231_v13 = vadd.f32 %v8925_v4, %v8933_v34 }
 0x24a   :  { %v6994_v42 = vpop.f32.mrb[108].mxu1  ;;  %4395 = vmatpush1.bf16.msra.mxu0 %v8043_v31 }
 0x24b   :  { %v6995_v18 = vpop.f32.mrb[109].mxu1  ;;  %4396 = vmatprep.subr.bf16.mxu0 %v8048_v32 }
 0x24c   :  { %v6996_v2 = vadd.f32 %v6995_v18, %v6994_v42  ;;  %v6997_v28 = vpop.f32.mrb[110].mxu1 }
 0x24d   :  { %v6998_v7 = vpop.f32.mrb[111].mxu1 }
 0x24e   :  { %v9057_v41 = vadd.f32 %v6996_v2, %v1207_v44  ;;  %v6999_v1 = vadd.f32 %v6998_v7, %v6997_v28  ;;  %4397 = vmatpush1.bf16.msra.mxu0 %v8046_v39  ;;  %v10194_v44 = vld [vmem:[#allocation20_spill] sm:$0xff] }
 0x24f   :  { %4398 = vmatprep.subr.bf16.mxu0 %v8051_v11  ;;  %v1239_v2 = vadd.f32 %v10194_v44, %v8933_v34 }
 0x250   :  { %v9061_v12 = vadd.f32 %v6999_v1, %v1210_v35  ;;  %v10195_v1 = vld [vmem:[#allocation21_spill] sm:$0xff] }
 0x251   :  { %v1242_v32 = vadd.f32 %v10195_v1, %v8933_v34 }
 0x252   :  { %v7000_v53 = vpop.f32.mrb[112].mxu1  ;;  %4399 = vmatpush1.bf16.msra.mxu0 %v8049_v55 }
 0x253   :  { %v7001_v56 = vpop.f32.mrb[113].mxu1  ;;  %4400 = vmatprep.subr.bf16.mxu0 %v8054_v51 }
 0x254   :  { %v7002_v9 = vadd.f32 %v7001_v56, %v7000_v53  ;;  %v7003_v21 = vpop.f32.mrb[114].mxu1 }
 0x255   :  { %v7004_v50 = vpop.f32.mrb[115].mxu1 }
 0x256   :  { %v9065_v0 = vadd.f32 %v7002_v9, %v1215_v60  ;;  %v7005_v43 = vadd.f32 %v7004_v50, %v7003_v21  ;;  %4401 = vmatpush1.bf16.msra.mxu0 %v8052_v52 }
 0x258   :  { %v9069_v38 = vadd.f32 %v7005_v43, %v1218_v14 }
 0x25a   :  { %v7006_v23 = vpop.f32.mrb[116].mxu1 }
 0x25b   :  { %v7007_v29 = vpop.f32.mrb[117].mxu1 }
 0x25c   :  { %v7008_v58 = vadd.f32 %v7007_v29, %v7006_v23  ;;  %v7009_v25 = vpop.f32.mrb[118].mxu1 }
 0x25d   :  { %v7010_v22 = vpop.f32.mrb[119].mxu1 }
 0x25e   :  { %v9073_v8 = vadd.f32 %v7008_v58, %v1223_v16  ;;  %v7011_v30 = vadd.f32 %v7010_v22, %v7009_v25  ;;  %v8057_v16 = vld [vmem:[#allocation11 + $0xc] ss:$24 sps:$4 sm:$0xff]  }
 0x25f   :  { %4949 = vmatprep.subr.bf16.mxu1 %v8057_v16 }
 0x260   :  { %v9077_v33 = vadd.f32 %v7011_v30, %v1226_v27 }
 0x262   :  { %v7012_v59 = vpop.f32.mrb[120].mxu1 }
 0x263   :  { %v7013_v37 = vpop.f32.mrb[121].mxu1 }
 0x264   :  { %v7014_v3 = vadd.f32 %v7013_v37, %v7012_v59  ;;  %v7015_v5 = vpop.f32.mrb[122].mxu1 }
 0x265   :  { %v7016_v10 = vpop.f32.mrb[123].mxu1 }
 0x266   :  { %v9081_v46 = vadd.f32 %v7014_v3, %v1231_v13  ;;  %v7017_v42 = vadd.f32 %v7016_v10, %v7015_v5 }
 0x268   :  { %v9085_v18 = vadd.f32 %v7017_v42, %v1234_v15 }
 0x26a   :  { %v7018_v54 = vpop.f32.mrb[124].mxu1 }
 0x26b   :  { %v7019_v31 = vpop.f32.mrb[125].mxu1 }
 0x26c   :  { %v7020_v28 = vadd.f32 %v7019_v31, %v7018_v54  ;;  %v7021_v7 = vpop.f32.mrb[126].mxu1 }
 0x26d   :  { %v7022_v35 = vpop.f32.mrb[127].mxu1 }
 0x26e   :  { %v9089_v4 = vadd.f32 %v7020_v28, %v1239_v2  ;;  %v7023_v39 = vadd.f32 %v7022_v35, %v7021_v7 }
 0x270   :  { %v9093_v53 = vadd.f32 %v7023_v39, %v1242_v32 }
 0x272   :  { %v7088_v6 = vpop.f32.mrb[128].mxu1 }
 0x273   :  { %v7089_v11 = vpop.f32.mrb[129].mxu1 }
 0x274   :  { %v7090_v56 = vadd.f32 %v7089_v11, %v7088_v6  ;;  %v7091_v55 = vpop.f32.mrb[130].mxu1 }
 0x275   :  { %v7092_v60 = vpop.f32.mrb[131].mxu1 }
 0x276   :  { %v1505_v9 = vadd.f32 %v7090_v56, %v9027_v57  ;;  %v7093_v21 = vadd.f32 %v7092_v60, %v7091_v55 }
 0x278   :  { %v1508_v50 = vadd.f32 %v7093_v21, %v9033_v47  ;;  %v1583_v14 = vmax.f32 %v1505_v9, 0.0  ;;  %v8078_v21 = vld [vmem:[#allocation11 + $0x304] ss:$24 sps:$4 sm:$0xff]  }
 0x279   :  { %4563 = vmatprep.subr.bf16.mxu0 %v8078_v21 }
 0x27a   :  { %v1584_v43 = vmax.f32 %v1508_v50, 0.0  ;;  %v7094_v51 = vpop.f32.mrb[132].mxu1 }
 0x27b   :  { %v7095_v52 = vpop.f32.mrb[133].mxu1 }
 0x27c   :  { %v7096_v23 = vadd.f32 %v7095_v52, %v7094_v51  ;;  %v7097_v29 = vpop.f32.mrb[134].mxu1  ;;  %v9097_v34 = vpack.c.bf16 %v1584_v43, %v1583_v14 }
 0x27d   :  { %v7098_v58 = vpop.f32.mrb[135].mxu1 }
 0x27e   :  { %v1513_v25 = vadd.f32 %v7096_v23, %v9041_v61  ;;  %v7099_v22 = vadd.f32 %v7098_v58, %v7097_v29  ;;  %2048 = vmatmul.mubr.bf16.gmra.mrb[192].mxu1 %v9097_v34  ;;  %2241 = vmatmul.mubr.bf16.gmra.mrb[64].mxu0 %v9097_v34 }
 0x27f   :  { %2057 = vmatprep.mubr.bf16.mxu1 %v10193_v19  ;;  %2250 = vmatprep.mubr.bf16.mxu0 %v10193_v19 }
 0x280   :  { %v1516_v57 = vadd.f32 %v7099_v22, %v9045_v24  ;;  %v1585_v47 = vmax.f32 %v1513_v25, 0.0 }
 0x282   :  { %v1586_v27 = vmax.f32 %v1516_v57, 0.0  ;;  %v7100_v30 = vpop.f32.mrb[136].mxu1 }
 0x283   :  { %v7101_v59 = vpop.f32.mrb[137].mxu1 }
 0x284   :  { %v7102_v37 = vadd.f32 %v7101_v59, %v7100_v30  ;;  %v7103_v13 = vpop.f32.mrb[138].mxu1  ;;  %v9105_v3 = vpack.c.bf16 %v1586_v27, %v1585_v47 }
 0x285   :  { %v7104_v61 = vpop.f32.mrb[139].mxu1 }
 0x286   :  { %v1521_v5 = vadd.f32 %v7102_v37, %v9049_v17  ;;  %v7105_v10 = vadd.f32 %v7104_v61, %v7103_v13  ;;  %2058 = vmatmul.mubr.bf16.gmra.mrb[196].mxu1 %v9105_v3  ;;  %2251 = vmatmul.mubr.bf16.gmra.mrb[68].mxu0 %v9105_v3 }
 0x287   :  { %2067 = vmatprep.mubr.bf16.mxu1 %v10193_v19  ;;  %2260 = vmatprep.mubr.bf16.mxu0 %v10193_v19 }
 0x288   :  { %v1524_v24 = vadd.f32 %v7105_v10, %v9053_v49  ;;  %v1587_v15 = vmax.f32 %v1521_v5, 0.0 }
 0x28a   :  { %v1588_v42 = vmax.f32 %v1524_v24, 0.0  ;;  %v7106_v54 = vpop.f32.mrb[140].mxu1 }
 0x28b   :  { %v7107_v31 = vpop.f32.mrb[141].mxu1 }
 0x28c   :  { %v7108_v44 = vadd.f32 %v7107_v31, %v7106_v54  ;;  %v7109_v2 = vpop.f32.mrb[142].mxu1  ;;  %v9113_v28 = vpack.c.bf16 %v1588_v42, %v1587_v15 }
 0x28d   :  { %v7110_v17 = vpop.f32.mrb[143].mxu1 }
 0x28e   :  { %v1529_v7 = vadd.f32 %v7108_v44, %v9057_v41  ;;  %v7111_v35 = vadd.f32 %v7110_v17, %v7109_v2  ;;  %2068 = vmatmul.mubr.bf16.gmra.mrb[200].mxu1 %v9113_v28  ;;  %2261 = vmatmul.mubr.bf16.gmra.mrb[72].mxu0 %v9113_v28 }
 0x28f   :  { %2077 = vmatprep.mubr.bf16.mxu1 %v10193_v19  ;;  %2270 = vmatprep.mubr.bf16.mxu0 %v10193_v19 }
 0x290   :  { %v1532_v49 = vadd.f32 %v7111_v35, %v9061_v12  ;;  %v1589_v1 = vmax.f32 %v1529_v7, 0.0  ;;  %v8060_v35 = vld [vmem:[#allocation11 + $0x3c] ss:$24 sps:$4 sm:$0xff]  }
 0x292   :  { %v1590_v32 = vmax.f32 %v1532_v49, 0.0  ;;  %v7112_v39 = vpop.f32.mrb[144].mxu1  ;;  %v8058_v49 = vld [vmem:[#allocation11 + $0x38] ss:$24 sps:$4 sm:$0xff]  }
 0x293   :  { %v7113_v6 = vpop.f32.mrb[145].mxu1 }
 0x294   :  { %v7114_v11 = vadd.f32 %v7113_v6, %v7112_v39  ;;  %v7115_v56 = vpop.f32.mrb[146].mxu1  ;;  %v9121_v55 = vpack.c.bf16 %v1590_v32, %v1589_v1  ;;  %v8061_v1 = vld [vmem:[#allocation11 + $0x68] ss:$24 sps:$4 sm:$0xff]   ;;  %v8066_v32 = vld [vmem:[#allocation11 + $0x9c] ss:$24 sps:$4 sm:$0xff]   ;;  %v1665_v39 = vlaneseq }
 0x295   :  { %v7116_v41 = vpop.f32.mrb[147].mxu1  ;;  %v8064_v6 = vld [vmem:[#allocation11 + $0x98] ss:$24 sps:$4 sm:$0xff]  }
 0x296   :  { %v1537_v60 = vadd.f32 %v7114_v11, %v9065_v0  ;;  %v7117_v9 = vadd.f32 %v7116_v41, %v7115_v56  ;;  %2078 = vmatmul.mubr.bf16.gmra.mrb[204].mxu1 %v9121_v55  ;;  %2271 = vmatmul.mubr.bf16.gmra.mrb[76].mxu0 %v9121_v55  ;;  %v8069_v11 = vld [vmem:[#allocation11 + $0xcc] ss:$24 sps:$4 sm:$0xff]   ;;  %v8067_v56 = vld [vmem:[#allocation11 + $0xc8] ss:$24 sps:$4 sm:$0xff]   ;;  %v8072_v41 = vld [vmem:[#allocation11 + $0xfc] ss:$24 sps:$4 sm:$0xff]  }
 0x297   :  { %2087 = vmatprep.mubr.bf16.mxu1 %v10193_v19  ;;  %2280 = vmatprep.mubr.bf16.mxu0 %v10193_v19 }
 0x298   :  { %v1540_v12 = vadd.f32 %v7117_v9, %v9069_v38  ;;  %v1591_v50 = vmax.f32 %v1537_v60, 0.0  ;;  %v1663_v9 = vld [vmem:[#allocation10] sm:$0x3f] }
 0x29a   :  { %v1592_v14 = vmax.f32 %v1540_v12, 0.0  ;;  %v7118_v43 = vpop.f32.mrb[148].mxu1 }
 0x29b   :  { %v7119_v51 = vpop.f32.mrb[149].mxu1 }
 0x29c   :  { %v7120_v52 = vadd.f32 %v7119_v51, %v7118_v43  ;;  %v7121_v23 = vpop.f32.mrb[150].mxu1  ;;  %v9129_v0 = vpack.c.bf16 %v1592_v14, %v1591_v50  ;;  %v8070_v50 = vld [vmem:[#allocation11 + $0xf8] ss:$24 sps:$4 sm:$0xff]   ;;  %v8075_v14 = vld [vmem:[#allocation11 + $0x12c] ss:$24 sps:$4 sm:$0xff]  }
 0x29d   :  { %v7122_v29 = vpop.f32.mrb[151].mxu1 }
 0x29e   :  { %v1545_v16 = vadd.f32 %v7120_v52, %v9073_v8  ;;  %v7123_v58 = vadd.f32 %v7122_v29, %v7121_v23  ;;  %2088 = vmatmul.mubr.bf16.gmra.mrb[208].mxu1 %v9129_v0  ;;  %2281 = vmatmul.mubr.bf16.gmra.mrb[80].mxu0 %v9129_v0 }
 0x29f   :  { %2097 = vmatprep.mubr.bf16.mxu1 %v10193_v19  ;;  %2290 = vmatprep.mubr.bf16.mxu0 %v10193_v19 }
 0x2a0   :  { %v1548_v38 = vadd.f32 %v7123_v58, %v9077_v33  ;;  %v1593_v25 = vmax.f32 %v1545_v16, 0.0  ;;  %v8073_v16 = vld [vmem:[#allocation11 + $0x128] ss:$24 sps:$4 sm:$0xff]  }
 0x2a2   :  { %v1594_v22 = vmax.f32 %v1548_v38, 0.0  ;;  %v7124_v57 = vpop.f32.mrb[152].mxu1 }
 0x2a3   :  { %v7125_v47 = vpop.f32.mrb[153].mxu1 }
 0x2a4   :  { %v7126_v27 = vadd.f32 %v7125_v47, %v7124_v57  ;;  %v7127_v30 = vpop.f32.mrb[154].mxu1  ;;  %v9137_v59 = vpack.c.bf16 %v1594_v22, %v1593_v25  ;;  %v8081_v25 = vld [vmem:[#allocation11 + $0x15c] ss:$24 sps:$4 sm:$0xff]  }
 0x2a5   :  { %v7128_v8 = vpop.f32.mrb[155].mxu1 }
 0x2a6   :  { %v1553_v37 = vadd.f32 %v7126_v27, %v9081_v46  ;;  %v7129_v13 = vadd.f32 %v7128_v8, %v7127_v30  ;;  %2098 = vmatmul.mubr.bf16.gmra.mrb[212].mxu1 %v9137_v59  ;;  %2291 = vmatmul.mubr.bf16.gmra.mrb[84].mxu0 %v9137_v59 }
 0x2a7   :  { %2107 = vmatprep.mubr.bf16.mxu1 %v10193_v19  ;;  %2300 = vmatprep.mubr.bf16.mxu0 %v10193_v19 }
 0x2a8   :  { %v1556_v33 = vadd.f32 %v7129_v13, %v9085_v18  ;;  %v1595_v61 = vmax.f32 %v1553_v37, 0.0 }
 0x2aa   :  { %v1596_v5 = vmax.f32 %v1556_v33, 0.0  ;;  %v7130_v10 = vpop.f32.mrb[156].mxu1 }
 0x2ab   :  { %v7131_v24 = vpop.f32.mrb[157].mxu1 }
 0x2ac   :  { %v7132_v15 = vadd.f32 %v7131_v24, %v7130_v10  ;;  %v7133_v42 = vpop.f32.mrb[158].mxu1  ;;  %v9145_v54 = vpack.c.bf16 %v1596_v5, %v1595_v61  ;;  %v8079_v24 = vld [vmem:[#allocation11 + $0x158] ss:$24 sps:$4 sm:$0xff]  }
 0x2ad   :  { %v7134_v46 = vpop.f32.mrb[159].mxu1 }
 0x2ae   :  { %v1561_v31 = vadd.f32 %v7132_v15, %v9089_v4  ;;  %v7135_v44 = vadd.f32 %v7134_v46, %v7133_v42  ;;  %2108 = vmatmul.mubr.bf16.gmra.mrb[216].mxu1 %v9145_v54  ;;  %2301 = vmatmul.mubr.bf16.gmra.mrb[88].mxu0 %v9145_v54  ;;  %v8055_v4 = vld [vmem:[#allocation11 + $0x8] ss:$24 sps:$4 sm:$0xff]   ;;  %v8084_v46 = vld [vmem:[#allocation11 + $0x18c] ss:$24 sps:$4 sm:$0xff]  }
 0x2af   :  { %2117 = vmatprep.mubr.bf16.mxu1 %v10193_v19  ;;  %2310 = vmatprep.mubr.bf16.mxu0 %v10193_v19 }
 0x2b0   :  { %v1564_v18 = vadd.f32 %v7135_v44, %v9093_v53  ;;  %v1597_v2 = vmax.f32 %v1561_v31, 0.0  ;;  %v8063_v53 = vld [vmem:[#allocation11 + $0x6c] ss:$24 sps:$4 sm:$0xff]  }
 0x2b2   :  { %v1598_v17 = vmax.f32 %v1564_v18, 0.0  ;;  %v8087_v18 = vld [vmem:[#allocation11 + $0x334] ss:$24 sps:$4 sm:$0xff]  }
 0x2b4   :  { %v9153_v7 = vpack.c.bf16 %v1598_v17, %v1597_v2 }
 0x2b6   :  { %2118 = vmatmul.mubr.bf16.gmra.mrb[220].mxu1 %v9153_v7  ;;  %2311 = vmatmul.mubr.bf16.gmra.mrb[92].mxu0 %v9153_v7 }
 0x2b7   :  { %2353 = vmatprep.mubr.bf16.mxu1 %v10193_v19 }
 0x2be   :  { %2354 = vmatmul.mubr.bf16.vlgmr.msra.gmra.mrb[224].mxu1 %v8945_v45  ;;  %v9162_v45 = vshrl.u32 %v1665_v39, 7 }
 0x2bf   :  { %2363 = vmatprep.mubr.bf16.mxu1 %v10193_v19  ;;  %4950 = vmatpush1.bf16.msra.mxu1 %v8055_v4  ;;  %v8082_v4 = vld [vmem:[#allocation11 + $0x188] ss:$24 sps:$4 sm:$0xff]  }
 0x2c0   :  { %4951 = vmatprep.subr.bf16.mxu1 %v8060_v35  ;;  %10196 = vst [vmem:[#allocation20_spill] sm:$0xff] %v9162_v45  ;;  %v10140_v60 = vsub.s32 0, %v9162_v45  ;;  %v10138_v21 = vsub.s32 2, %v9162_v45  ;;  %v10137_v12 = vsub.s32 3, %v9162_v45 }
 0x2c2   :  { %v9172_v43 = vrot.slane %v1663_v9, %v10140_v60  ;;  %v9184_v29 = vrot.slane %v1663_v9, %v10137_v12 }
 0x2c3   :  { %4952 = vmatpush1.bf16.msra.mxu1 %v8058_v49 }
 0x2c4   :  { %4953 = vmatprep.subr.bf16.mxu1 %v8063_v53  ;;  %v8090_v53 = vld [vmem:[#allocation11 + $0x1bc] ss:$24 sps:$4 sm:$0xff]  }
 0x2c6   :  { %2364 = vmatmul.mubr.bf16.gmra.mrb[228].mxu1 %v8957_v20  ;;  %v10139_v20 = vsub.s32 1, %v9162_v45 }
 0x2c7   :  { %2373 = vmatprep.mubr.bf16.mxu1 %v10193_v19  ;;  %4954 = vmatpush1.bf16.msra.mxu1 %v8061_v1 }
 0x2c8   :  { %4955 = vmatprep.subr.bf16.mxu1 %v8066_v32  ;;  %v9180_v51 = vrot.slane %v1663_v9, %v10139_v20 }
 0x2cb   :  { %4956 = vmatpush1.bf16.msra.mxu1 %v8064_v6 }
 0x2cc   :  { %4957 = vmatprep.subr.bf16.mxu1 %v8069_v11  ;;  %v8085_v11 = vld [vmem:[#allocation11 + $0x330] ss:$24 sps:$4 sm:$0xff]  }
 0x2ce   :  { %2374 = vmatmul.mubr.bf16.gmra.mrb[232].mxu1 %v8969_v62  ;;  %v9176_v62 = vrot.slane %v1663_v9, %v10138_v21 }
 0x2cf   :  { %2383 = vmatprep.mubr.bf16.mxu1 %v10193_v19  ;;  %4958 = vmatpush1.bf16.msra.mxu1 %v8067_v56 }
 0x2d0   :  { %4959 = vmatprep.subr.bf16.mxu1 %v8072_v41 }
 0x2d3   :  { %v1969_v52 = vpop.f32.mrb[160].mxu1  ;;  %v2162_v23 = vpop.f32.mrb[32].mxu0  ;;  %4960 = vmatpush1.bf16.msra.mxu1 %v8070_v50 }
 0x2d4   :  { %v1971_v58 = vpop.f32.mrb[161].mxu1  ;;  %v2164_v38 = vpop.f32.mrb[33].mxu0  ;;  %4961 = vmatprep.subr.bf16.mxu1 %v8075_v14  ;;  %v1970_v22 = vadd.f32 %v1969_v52, %v9172_v43  ;;  %v2163_v27 = vadd.f32 %v2162_v23, %v9176_v62  ;;  %v8096_v52 = vld [vmem:[#allocation11 + $0x364] ss:$24 sps:$4 sm:$0xff]  }
 0x2d5   :  { %v1973_v57 = vpop.f32.mrb[162].mxu1  ;;  %v2166_v47 = vpop.f32.mrb[34].mxu0  ;;  %v1972_v30 = vadd.f32 %v1971_v58, %v9180_v51  ;;  %v2165_v61 = vadd.f32 %v2164_v38, %v9184_v29  ;;  %v8088_v38 = vld [vmem:[#allocation11 + $0x1b8] ss:$24 sps:$4 sm:$0xff]  }
 0x2d6   :  { %v1974_v8 = vadd.f32 %v1973_v57, %v9172_v43  ;;  %v2167_v37 = vadd.f32 %v2166_v47, %v9176_v62  ;;  %v1975_v13 = vpop.f32.mrb[163].mxu1  ;;  %v2168_v33 = vpop.f32.mrb[35].mxu0  ;;  %2384 = vmatmul.mubr.bf16.gmra.mrb[236].mxu1 %v8981_v26  ;;  %v8076_v26 = vld [vmem:[#allocation11 + $0x300] ss:$24 sps:$4 sm:$0xff]   ;;  %v8093_v57 = vld [vmem:[#allocation11 + $0x1ec] ss:$24 sps:$4 sm:$0xff]  }
 0x2d7   :  { %v1976_v5 = vadd.f32 %v1975_v13, %v9180_v51  ;;  %v2169_v10 = vadd.f32 %v2168_v33, %v9184_v29  ;;  %2393 = vmatprep.mubr.bf16.mxu1 %v10193_v19  ;;  %4962 = vmatpush1.bf16.msra.mxu1 %v8073_v16  ;;  %v8091_v13 = vld [vmem:[#allocation11 + $0x1e8] ss:$24 sps:$4 sm:$0xff]  }
 0x2d8   :  { %v9196_v15 = vpack.c.bf16 %v1974_v8, %v1970_v22  ;;  %v9198_v42 = vpack.c.bf16 %v2167_v37, %v2163_v27  ;;  %4963 = vmatprep.subr.bf16.mxu1 %v8081_v25  ;;  %v8094_v27 = vld [vmem:[#allocation11 + $0x360] ss:$24 sps:$4 sm:$0xff]  }
 0x2d9   :  { %v9200_v31 = vpack.c.bf16 %v1976_v5, %v1972_v30  ;;  %v9202_v44 = vpack.c.bf16 %v2169_v10, %v2165_v61  ;;  %v8105_v30 = vld [vmem:[#allocation11 + $0x394] ss:$24 sps:$4 sm:$0xff]  }
 0x2da   :  { %10197 = vst [vmem:[#allocation21_spill] sm:$0xff] %v9198_v42  ;;  %v8099_v5 = vld [vmem:[#allocation11 + $0x21c] ss:$24 sps:$4 sm:$0xff]  }
 0x2db   :  { %10198 = vst [vmem:[#allocation22_spill] sm:$0xff] %v9202_v44  ;;  %v1979_v2 = vpop.f32.mrb[164].mxu1  ;;  %v2172_v17 = vpop.f32.mrb[36].mxu0  ;;  %4402 = vmatprep.mubr.bf16.mxu0 %v9200_v31  ;;  %4964 = vmatpush1.bf16.msra.mxu1 %v8079_v24 }
 0x2dc   :  { %v1981_v35 = vpop.f32.mrb[165].mxu1  ;;  %v2174_v49 = vpop.f32.mrb[37].mxu0  ;;  %4403 = vmatmul.mubr.bf16.vlgmr.msra.gmra.mrb[96].mxu0 %v9196_v15  ;;  %4965 = vmatprep.subr.bf16.mxu1 %v8084_v46  ;;  %v1980_v1 = vadd.f32 %v1979_v2, %v9172_v43  ;;  %v2173_v32 = vadd.f32 %v2172_v17, %v9176_v62 }
 0x2dd   :  { %v1983_v39 = vpop.f32.mrb[166].mxu1  ;;  %v2176_v6 = vpop.f32.mrb[38].mxu0  ;;  %4564 = vmatpush1.bf16.msra.mxu0 %v8076_v26  ;;  %v1982_v56 = vadd.f32 %v1981_v35, %v9180_v51  ;;  %v2175_v23 = vadd.f32 %v2174_v49, %v9184_v29 }
 0x2de   :  { %v1984_v41 = vadd.f32 %v1983_v39, %v9172_v43  ;;  %v2177_v9 = vadd.f32 %v2176_v6, %v9176_v62  ;;  %v1985_v50 = vpop.f32.mrb[167].mxu1  ;;  %v2178_v14 = vpop.f32.mrb[39].mxu0  ;;  %2394 = vmatmul.mubr.bf16.gmra.mrb[240].mxu1 %v8993_v63  ;;  %4565 = vmatprep.subr.bf16.mxu0 %v8087_v18  ;;  %v8103_v18 = vld [vmem:[#allocation11 + $0x390] ss:$24 sps:$4 sm:$0xff]  }
 0x2df   :  { %v1986_v16 = vadd.f32 %v1985_v50, %v9180_v51  ;;  %v2179_v58 = vadd.f32 %v2178_v14, %v9184_v29  ;;  %2403 = vmatprep.mubr.bf16.mxu1 %v10193_v19  ;;  %4966 = vmatpush1.bf16.msra.mxu1 %v8082_v4  ;;  %v8097_v6 = vld [vmem:[#allocation11 + $0x218] ss:$24 sps:$4 sm:$0xff]   ;;  %v8120_v14 = vld [vmem:[#allocation11 + $0x3f4] ss:$24 sps:$4 sm:$0xff]  }
 0x2e0   :  { %v9216_v25 = vpack.c.bf16 %v1984_v41, %v1980_v1  ;;  %v9218_v22 = vpack.c.bf16 %v2177_v9, %v2173_v32  ;;  %4967 = vmatprep.subr.bf16.mxu1 %v8090_v53  ;;  %v8114_v53 = vld [vmem:[#allocation11 + $0x3c4] ss:$24 sps:$4 sm:$0xff]   ;;  %v8112_v50 = vld [vmem:[#allocation11 + $0x3c0] ss:$24 sps:$4 sm:$0xff]  }
 0x2e1   :  { %v9220_v47 = vpack.c.bf16 %v1986_v16, %v1982_v56  ;;  %v9222_v63 = vpack.c.bf16 %v2179_v58, %v2175_v23  ;;  %4566 = vmatpush1.bf16.msra.mxu0 %v8085_v11  ;;  %v8102_v41 = vld [vmem:[#allocation11 + $0x24c] ss:$24 sps:$4 sm:$0xff]   ;;  %v8100_v16 = vld [vmem:[#allocation11 + $0x248] ss:$24 sps:$4 sm:$0xff]  }
 0x2e2   :  { %10199 = vst [vmem:[#allocation23_spill] sm:$0xff] %v9216_v25  ;;  %10200 = vst [vmem:[#allocation24_spill] sm:$0xff] %v9218_v22  ;;  %4567 = vmatprep.subr.bf16.mxu0 %v8096_v52 }
 0x2e3   :  { %10201 = vst [vmem:[#allocation25_spill] sm:$0xff] %v9220_v47  ;;  %10202 = vst [vmem:[#allocation26_spill] sm:$0xff] %v9222_v63  ;;  %v1989_v8 = vpop.f32.mrb[168].mxu1  ;;  %v2182_v37 = vpop.f32.mrb[40].mxu0  ;;  %4412 = vmatprep.mubr.bf16.mxu0 %v9220_v47  ;;  %4968 = vmatpush1.bf16.msra.mxu1 %v8088_v38 }
 0x2e4   :  { %v1991_v33 = vpop.f32.mrb[169].mxu1  ;;  %v2184_v61 = vpop.f32.mrb[41].mxu0  ;;  %4413 = vmatmul.mubr.bf16.gmra.mrb[100].mxu0 %v9216_v25  ;;  %4969 = vmatprep.subr.bf16.mxu1 %v8093_v57  ;;  %v1990_v10 = vadd.f32 %v1989_v8, %v9172_v43  ;;  %v2183_v24 = vadd.f32 %v2182_v37, %v9176_v62  ;;  %v8108_v57 = vld [vmem:[#allocation11 + $0x27c] ss:$24 sps:$4 sm:$0xff]  }
 0x2e5   :  { %v1993_v46 = vpop.f32.mrb[170].mxu1  ;;  %v2186_v26 = vpop.f32.mrb[42].mxu0  ;;  %4568 = vmatpush1.bf16.msra.mxu0 %v8094_v27  ;;  %v1992_v2 = vadd.f32 %v1991_v33, %v9180_v51  ;;  %v2185_v1 = vadd.f32 %v2184_v61, %v9184_v29 }
 0x2e6   :  { %v1994_v17 = vadd.f32 %v1993_v46, %v9172_v43  ;;  %v2187_v4 = vadd.f32 %v2186_v26, %v9176_v62  ;;  %v1995_v35 = vpop.f32.mrb[171].mxu1  ;;  %v2188_v49 = vpop.f32.mrb[43].mxu0  ;;  %2404 = vmatmul.mubr.bf16.gmra.mrb[244].mxu1 %v9005_v48  ;;  %4569 = vmatprep.subr.bf16.mxu0 %v8105_v30  ;;  %v8123_v46 = vld [vmem:[#allocation11 + $0x424] ss:$24 sps:$4 sm:$0xff]  }
 0x2e7   :  { %v1996_v32 = vadd.f32 %v1995_v35, %v9180_v51  ;;  %v2189_v39 = vadd.f32 %v2188_v49, %v9184_v29  ;;  %2413 = vmatprep.mubr.bf16.mxu1 %v10193_v19  ;;  %4970 = vmatpush1.bf16.msra.mxu1 %v8091_v13  ;;  %v8118_v13 = vld [vmem:[#allocation11 + $0x3f0] ss:$24 sps:$4 sm:$0xff]   ;;  %v8111_v49 = vld [vmem:[#allocation11 + $0x2ac] ss:$24 sps:$4 sm:$0xff]  }
 0x2e8   :  { %v9236_v11 = vpack.c.bf16 %v1994_v17, %v1990_v10  ;;  %v9238_v56 = vpack.c.bf16 %v2187_v4, %v2183_v24  ;;  %4971 = vmatprep.subr.bf16.mxu1 %v8099_v5  ;;  %v8106_v17 = vld [vmem:[#allocation11 + $0x278] ss:$24 sps:$4 sm:$0xff]  }
 0x2e9   :  { %v9240_v9 = vpack.c.bf16 %v1996_v32, %v1992_v2  ;;  %v9242_v48 = vpack.c.bf16 %v2189_v39, %v2185_v1  ;;  %4570 = vmatpush1.bf16.msra.mxu0 %v8103_v18  ;;  %v8121_v1 = vld [vmem:[#allocation11 + $0x420] ss:$24 sps:$4 sm:$0xff]   ;;  %v8126_v32 = vld [vmem:[#allocation11 + $0x454] ss:$24 sps:$4 sm:$0xff]  }
 0x2ea   :  { %10203 = vst [vmem:[#allocation27_spill] sm:$0xff] %v9236_v11  ;;  %10204 = vst [vmem:[#allocation28_spill] sm:$0xff] %v9238_v56  ;;  %4571 = vmatprep.subr.bf16.mxu0 %v8114_v53 }
 0x2eb   :  { %10205 = vst [vmem:[#allocation29_spill] sm:$0xff] %v9240_v9  ;;  %10206 = vst [vmem:[#allocation30_spill] sm:$0xff] %v9242_v48  ;;  %v1999_v52 = vpop.f32.mrb[172].mxu1  ;;  %v2192_v23 = vpop.f32.mrb[44].mxu0  ;;  %4422 = vmatprep.mubr.bf16.mxu0 %v9240_v9  ;;  %4972 = vmatpush1.bf16.msra.mxu1 %v8097_v6 }
 0x2ec   :  { %v2001_v58 = vpop.f32.mrb[173].mxu1  ;;  %v2194_v38 = vpop.f32.mrb[45].mxu0  ;;  %4423 = vmatmul.mubr.bf16.gmra.mrb[104].mxu0 %v9236_v11  ;;  %4973 = vmatprep.subr.bf16.mxu1 %v8102_v41  ;;  %v2000_v27 = vadd.f32 %v1999_v52, %v9172_v43  ;;  %v2193_v30 = vadd.f32 %v2192_v23, %v9176_v62  ;;  %v8109_v41 = vld [vmem:[#allocation11 + $0x2a8] ss:$24 sps:$4 sm:$0xff]   ;;  %v8117_v52 = vld [vmem:[#allocation11 + $0x2dc] ss:$24 sps:$4 sm:$0xff]  }
 0x2ed   :  { %v2003_v8 = vpop.f32.mrb[174].mxu1  ;;  %v2196_v37 = vpop.f32.mrb[46].mxu0  ;;  %4572 = vmatpush1.bf16.msra.mxu0 %v8112_v50  ;;  %v2002_v33 = vadd.f32 %v2001_v58, %v9180_v51  ;;  %v2195_v26 = vadd.f32 %v2194_v38, %v9184_v29 }
 0x2ee   :  { %v2004_v61 = vadd.f32 %v2003_v8, %v9172_v43  ;;  %v2197_v5 = vadd.f32 %v2196_v37, %v9176_v62  ;;  %v2005_v10 = vpop.f32.mrb[175].mxu1  ;;  %v2198_v24 = vpop.f32.mrb[47].mxu0  ;;  %2414 = vmatmul.mubr.bf16.gmra.mrb[248].mxu1 %v9017_v36  ;;  %4573 = vmatprep.subr.bf16.mxu0 %v8120_v14 }
 0x2ef   :  { %v2006_v18 = vadd.f32 %v2005_v10, %v9180_v51  ;;  %v2199_v2 = vadd.f32 %v2198_v24, %v9184_v29  ;;  %2423 = vmatprep.mubr.bf16.mxu1 %v10193_v19  ;;  %4974 = vmatpush1.bf16.msra.mxu1 %v8100_v16  ;;  %v8115_v24 = vld [vmem:[#allocation11 + $0x2d8] ss:$24 sps:$4 sm:$0xff]  }
 0x2f0   :  { %v9256_v4 = vpack.c.bf16 %v2004_v61, %v2000_v27  ;;  %v9258_v35 = vpack.c.bf16 %v2197_v5, %v2193_v30  ;;  %4975 = vmatprep.subr.bf16.mxu1 %v8108_v57  ;;  %v8124_v57 = vld [vmem:[#allocation11 + $0x450] ss:$24 sps:$4 sm:$0xff]  }
 0x2f1   :  { %v9260_v53 = vpack.c.bf16 %v2006_v18, %v2002_v33  ;;  %v9262_v36 = vpack.c.bf16 %v2199_v2, %v2195_v26  ;;  %4574 = vmatpush1.bf16.msra.mxu0 %v8118_v13  ;;  %v8129_v33 = vld [vmem:[#allocation11 + $0x484] ss:$24 sps:$4 sm:$0xff]   ;;  %v8127_v2 = vld [vmem:[#allocation11 + $0x480] ss:$24 sps:$4 sm:$0xff]  }
 0x2f2   :  { %10207 = vst [vmem:[#allocation31_spill] sm:$0xff] %v9256_v4  ;;  %4575 = vmatprep.subr.bf16.mxu0 %v8123_v46 }
 0x2f3   :  { %10208 = vst [vmem:[#allocation32_spill] sm:$0xff] %v9260_v53  ;;  %10209 = vst [vmem:[#allocation33_spill] sm:$0xff] %v9262_v36  ;;  %v2009_v39 = vpop.f32.mrb[176].mxu1  ;;  %v2202_v6 = vpop.f32.mrb[48].mxu0  ;;  %4432 = vmatprep.mubr.bf16.mxu0 %v9260_v53  ;;  %4976 = vmatpush1.bf16.msra.mxu1 %v8106_v17  ;;  %v8132_v17 = vld [vmem:[#allocation11 + $0x4b4] ss:$24 sps:$4 sm:$0xff]  }
 0x2f4   :  { %v2011_v50 = vpop.f32.mrb[177].mxu1  ;;  %v2204_v14 = vpop.f32.mrb[49].mxu0  ;;  %4433 = vmatmul.mubr.bf16.gmra.mrb[108].mxu0 %v9256_v4  ;;  %4977 = vmatprep.subr.bf16.mxu1 %v8111_v49  ;;  %v2010_v23 = vadd.f32 %v2009_v39, %v9172_v43  ;;  %v2203_v16 = vadd.f32 %v2202_v6, %v9176_v62  ;;  %v8144_v6 = vld [vmem:[#allocation11 + $0x30c] ss:$24 sps:$4 sm:$0xff]  }
 0x2f5   :  { %v2013_v58 = vpop.f32.mrb[178].mxu1  ;;  %v2206_v38 = vpop.f32.mrb[50].mxu0  ;;  %4576 = vmatpush1.bf16.msra.mxu0 %v8121_v1  ;;  %v2012_v27 = vadd.f32 %v2011_v50, %v9180_v51  ;;  %v2205_v61 = vadd.f32 %v2204_v14, %v9184_v29 }
 0x2f6   :  { %v2014_v30 = vadd.f32 %v2013_v58, %v9172_v43  ;;  %v2207_v8 = vadd.f32 %v2206_v38, %v9176_v62  ;;  %v2015_v37 = vpop.f32.mrb[179].mxu1  ;;  %v2208_v13 = vpop.f32.mrb[51].mxu0  ;;  %2424 = vmatmul.mubr.bf16.gmra.mrb[252].mxu1 %v9031_v40  ;;  %4577 = vmatprep.subr.bf16.mxu0 %v8126_v32 }
 0x2f7   :  { %v2016_v5 = vadd.f32 %v2015_v37, %v9180_v51  ;;  %v2209_v10 = vadd.f32 %v2208_v13, %v9184_v29  ;;  %2433 = vmatprep.mubr.bf16.mxu1 %v10193_v19  ;;  %4978 = vmatpush1.bf16.msra.mxu1 %v8109_v41 }
 0x2f8   :  { %v9276_v46 = vpack.c.bf16 %v2014_v30, %v2010_v23  ;;  %v9278_v26 = vpack.c.bf16 %v2207_v8, %v2203_v16  ;;  %4979 = vmatprep.subr.bf16.mxu1 %v8117_v52  ;;  %v8130_v23 = vld [vmem:[#allocation11 + $0x4b0] ss:$24 sps:$4 sm:$0xff]   ;;  %v8135_v30 = vld [vmem:[#allocation11 + $0x4e4] ss:$24 sps:$4 sm:$0xff]  }
 0x2f9   :  { %v9280_v18 = vpack.c.bf16 %v2016_v5, %v2012_v27  ;;  %v9282_v40 = vpack.c.bf16 %v2209_v10, %v2205_v61  ;;  %4578 = vmatpush1.bf16.msra.mxu0 %v8124_v57 }
 0x2fa   :  { %10210 = vst [vmem:[#allocation34_spill] sm:$0xff] %v9276_v46  ;;  %10211 = vst [vmem:[#allocation35_spill] sm:$0xff] %v9278_v26  ;;  %4579 = vmatprep.subr.bf16.mxu0 %v8129_v33 }
 0x2fb   :  { %10212 = vst [vmem:[#allocation36_spill] sm:$0xff] %v9280_v18  ;;  %v2019_v49 = vpop.f32.mrb[180].mxu1  ;;  %v2212_v1 = vpop.f32.mrb[52].mxu0  ;;  %4442 = vmatprep.mubr.bf16.mxu0 %v9280_v18  ;;  %4980 = vmatpush1.bf16.msra.mxu1 %v8115_v24  ;;  %v8138_v24 = vld [vmem:[#allocation11 + $0x514] ss:$24 sps:$4 sm:$0xff]  }
 0x2fc   :  { %v2021_v32 = vpop.f32.mrb[181].mxu1  ;;  %v2214_v39 = vpop.f32.mrb[53].mxu0  ;;  %4443 = vmatmul.mubr.bf16.gmra.mrb[112].mxu0 %v9276_v46  ;;  %v2020_v41 = vadd.f32 %v2019_v49, %v9172_v43  ;;  %v2213_v50 = vadd.f32 %v2212_v1, %v9176_v62  ;;  %5142 = vmatprep.subr.bf16.mxu1 %v8144_v6 }
 0x2fd   :  { %v2023_v14 = vpop.f32.mrb[182].mxu1  ;;  %v2216_v52 = vpop.f32.mrb[54].mxu0  ;;  %4580 = vmatpush1.bf16.msra.mxu0 %v8127_v2  ;;  %v2022_v16 = vadd.f32 %v2021_v32, %v9180_v51  ;;  %v2215_v8 = vadd.f32 %v2214_v39, %v9184_v29 }
 0x2fe   :  { %v2024_v58 = vadd.f32 %v2023_v14, %v9172_v43  ;;  %v2217_v38 = vadd.f32 %v2216_v52, %v9176_v62  ;;  %v2025_v57 = vpop.f32.mrb[183].mxu1  ;;  %v2218_v27 = vpop.f32.mrb[55].mxu0  ;;  %2434 = vmatmul.mubr.bf16.gmra.mrb[0].mxu1 %v9097_v34  ;;  %4581 = vmatprep.subr.bf16.mxu0 %v8132_v17  ;;  %v8133_v34 = vld [vmem:[#allocation11 + $0x4e0] ss:$24 sps:$4 sm:$0xff]  }
 0x2ff   :  { %v2026_v37 = vadd.f32 %v2025_v57, %v9180_v51  ;;  %v2219_v13 = vadd.f32 %v2218_v27, %v9184_v29  ;;  %2443 = vmatprep.mubr.bf16.mxu1 %v10193_v19 }
 0x300   :  { %v9296_v33 = vpack.c.bf16 %v2024_v58, %v2020_v41  ;;  %v9298_v61 = vpack.c.bf16 %v2217_v38, %v2213_v50  ;;  %v8136_v41 = vld [vmem:[#allocation11 + $0x510] ss:$24 sps:$4 sm:$0xff]   ;;  %v8141_v58 = vld [vmem:[#allocation11 + $0x544] ss:$24 sps:$4 sm:$0xff]  }
 0x301   :  { %v9300_v5 = vpack.c.bf16 %v2026_v37, %v2022_v16  ;;  %v9302_v10 = vpack.c.bf16 %v2219_v13, %v2215_v8  ;;  %4582 = vmatpush1.bf16.msra.mxu0 %v8130_v23 }
 0x302   :  { %10213 = vst [vmem:[#allocation37_spill] sm:$0xff] %v9296_v33  ;;  %10214 = vst [vmem:[#allocation38_spill] sm:$0xff] %v9298_v61  ;;  %4583 = vmatprep.subr.bf16.mxu0 %v8135_v30 }
 0x303   :  { %10215 = vst [vmem:[#allocation39_spill] sm:$0xff] %v9300_v5  ;;  %10216 = vst [vmem:[#allocation40_spill] sm:$0xff] %v9302_v10  ;;  %v2029_v2 = vpop.f32.mrb[184].mxu1  ;;  %v2222_v17 = vpop.f32.mrb[56].mxu0  ;;  %4452 = vmatprep.mubr.bf16.mxu0 %v9300_v5 }
 0x304   :  { %v2031_v49 = vpop.f32.mrb[185].mxu1  ;;  %v2224_v1 = vpop.f32.mrb[57].mxu0  ;;  %4453 = vmatmul.mubr.bf16.gmra.mrb[116].mxu0 %v9296_v33  ;;  %v2030_v32 = vadd.f32 %v2029_v2, %v9172_v43  ;;  %v2223_v50 = vadd.f32 %v2222_v17, %v9176_v62 }
 0x305   :  { %v2033_v39 = vpop.f32.mrb[186].mxu1  ;;  %v2226_v6 = vpop.f32.mrb[58].mxu0  ;;  %4584 = vmatpush1.bf16.msra.mxu0 %v8133_v34  ;;  %v2032_v38 = vadd.f32 %v2031_v49, %v9180_v51  ;;  %v2225_v57 = vadd.f32 %v2224_v1, %v9184_v29 }
 0x306   :  { %v2034_v14 = vadd.f32 %v2033_v39, %v9172_v43  ;;  %v2227_v52 = vadd.f32 %v2226_v6, %v9176_v62  ;;  %v2035_v23 = vpop.f32.mrb[187].mxu1  ;;  %v2228_v16 = vpop.f32.mrb[59].mxu0  ;;  %2444 = vmatmul.mubr.bf16.gmra.mrb[4].mxu1 %v9105_v3  ;;  %4585 = vmatprep.subr.bf16.mxu0 %v8138_v24  ;;  %v8139_v3 = vld [vmem:[#allocation11 + $0x540] ss:$24 sps:$4 sm:$0xff]   ;;  %v8147_v24 = vld [vmem:[#allocation11 + $0x574] ss:$24 sps:$4 sm:$0xff]  }
 0x307   :  { %v2036_v27 = vadd.f32 %v2035_v23, %v9180_v51  ;;  %v2229_v30 = vadd.f32 %v2228_v16, %v9184_v29  ;;  %2453 = vmatprep.mubr.bf16.mxu1 %v10193_v19 }
 0x308   :  { %v9316_v8 = vpack.c.bf16 %v2034_v14, %v2030_v32  ;;  %v9318_v37 = vpack.c.bf16 %v2227_v52, %v2223_v50  ;;  %v8145_v50 = vld [vmem:[#allocation11 + $0x570] ss:$24 sps:$4 sm:$0xff]  }
 0x309   :  { %v9320_v13 = vpack.c.bf16 %v2036_v27, %v2032_v38  ;;  %v9322_v34 = vpack.c.bf16 %v2229_v30, %v2225_v57  ;;  %4586 = vmatpush1.bf16.msra.mxu0 %v8136_v41 }
 0x30a   :  { %10217 = vst [vmem:[#allocation41_spill] sm:$0xff] %v9316_v8  ;;  %4587 = vmatprep.subr.bf16.mxu0 %v8141_v58  ;;  %v8156_v58 = vld [vmem:[#allocation11 + $0x5a4] ss:$24 sps:$4 sm:$0xff]  }
 0x30b   :  { %10218 = vst [vmem:[#allocation42_spill] sm:$0xff] %v9320_v13  ;;  %10219 = vst [vmem:[#allocation43_spill] sm:$0xff] %v9322_v34  ;;  %v2039_v2 = vpop.f32.mrb[188].mxu1  ;;  %v2232_v17 = vpop.f32.mrb[60].mxu0  ;;  %4462 = vmatprep.mubr.bf16.mxu0 %v9320_v13 }
 0x30c   :  { %v2041_v49 = vpop.f32.mrb[189].mxu1  ;;  %v2234_v1 = vpop.f32.mrb[61].mxu0  ;;  %4463 = vmatmul.mubr.bf16.gmra.mrb[120].mxu0 %v9316_v8  ;;  %v2040_v32 = vadd.f32 %v2039_v2, %v9172_v43  ;;  %v2233_v14 = vadd.f32 %v2232_v17, %v9176_v62 }
 0x30d   :  { %v2043_v39 = vpop.f32.mrb[190].mxu1  ;;  %v2236_v6 = vpop.f32.mrb[62].mxu0  ;;  %4588 = vmatpush1.bf16.msra.mxu0 %v8139_v3  ;;  %v2042_v38 = vadd.f32 %v2041_v49, %v9180_v51  ;;  %v2235_v57 = vadd.f32 %v2234_v1, %v9184_v29  ;;  %v8163_v49 = vld [vmem:[#allocation11 + $0x5d0] ss:$24 sps:$4 sm:$0xff]   ;;  %v8174_v1 = vld [vmem:[#allocation11 + $0x604] ss:$24 sps:$4 sm:$0xff]  }
 0x30e   :  { %v2044_v41 = vadd.f32 %v2043_v39, %v9172_v43  ;;  %v2237_v52 = vadd.f32 %v2236_v6, %v9176_v62  ;;  %v2045_v23 = vpop.f32.mrb[191].mxu1  ;;  %v2238_v16 = vpop.f32.mrb[63].mxu0  ;;  %2454 = vmatmul.mubr.bf16.gmra.mrb[8].mxu1 %v9113_v28  ;;  %4589 = vmatprep.subr.bf16.mxu0 %v8147_v24  ;;  %v8154_v28 = vld [vmem:[#allocation11 + $0x5a0] ss:$24 sps:$4 sm:$0xff]   ;;  %v8165_v24 = vld [vmem:[#allocation11 + $0x5d4] ss:$24 sps:$4 sm:$0xff]  }
 0x30f   :  { %v2046_v27 = vadd.f32 %v2045_v23, %v9180_v51  ;;  %v2239_v30 = vadd.f32 %v2238_v16, %v9184_v29  ;;  %2463 = vmatprep.mubr.bf16.mxu1 %v10193_v19  ;;  %v8151_v6 = vld [vmem:[#allocation11 + $0x368] ss:$24 sps:$4 sm:$0xff]  }
 0x310   :  { %v9336_v3 = vpack.c.bf16 %v2044_v41, %v2040_v32  ;;  %v9338_v2 = vpack.c.bf16 %v2237_v52, %v2233_v14  ;;  %v8150_v32 = vld [vmem:[#allocation11 + $0x33c] ss:$24 sps:$4 sm:$0xff]   ;;  %v8166_v41 = vld [vmem:[#allocation11 + $0x3f8] ss:$24 sps:$4 sm:$0xff]   ;;  %v8171_v52 = vld [vmem:[#allocation11 + $0x42c] ss:$24 sps:$4 sm:$0xff]  }
 0x311   :  { %v9340_v17 = vpack.c.bf16 %v2046_v27, %v2042_v38  ;;  %v9342_v39 = vpack.c.bf16 %v2239_v30, %v2235_v57  ;;  %4590 = vmatpush1.bf16.msra.mxu0 %v8145_v50  ;;  %v8160_v50 = vld [vmem:[#allocation11 + $0x3c8] ss:$24 sps:$4 sm:$0xff]   ;;  %v8168_v14 = vld [vmem:[#allocation11 + $0x3fc] ss:$24 sps:$4 sm:$0xff]  }
 0x312   :  { %10220 = vst [vmem:[#allocation44_spill] sm:$0xff] %v9336_v3  ;;  %4591 = vmatprep.subr.bf16.mxu0 %v8156_v58  ;;  %v8169_v30 = vld [vmem:[#allocation11 + $0x428] ss:$24 sps:$4 sm:$0xff]  }
 0x313   :  { %10221 = vst [vmem:[#allocation45_spill] sm:$0xff] %v9340_v17  ;;  %10222 = vst [vmem:[#allocation46_spill] sm:$0xff] %v9342_v39  ;;  %4472 = vmatprep.mubr.bf16.mxu0 %v9340_v17 }
 0x314   :  { %4473 = vmatmul.mubr.bf16.gmra.mrb[124].mxu0 %v9336_v3 }
 0x315   :  { %4592 = vmatpush1.bf16.msra.mxu0 %v8154_v28 }
 0x316   :  { %2464 = vmatmul.mubr.bf16.gmra.mrb[12].mxu1 %v9121_v55  ;;  %4593 = vmatprep.subr.bf16.mxu0 %v8165_v24  ;;  %v8142_v55 = vld [vmem:[#allocation11 + $0x308] ss:$24 sps:$4 sm:$0xff]  }
 0x317   :  { %2473 = vmatprep.mubr.bf16.mxu1 %v10193_v19 }
 0x319   :  { %4594 = vmatpush1.bf16.msra.mxu0 %v8163_v49 }
 0x31a   :  { %4756 = vmatprep.subr.bf16.mxu0 %v8174_v1 }
 0x31e   :  { %2474 = vmatmul.mubr.bf16.gmra.mrb[16].mxu1 %v9129_v0  ;;  %v8148_v0 = vld [vmem:[#allocation11 + $0x338] ss:$24 sps:$4 sm:$0xff]  }
 0x31f   :  { %2483 = vmatprep.mubr.bf16.mxu1 %v10193_v19 }
 0x326   :  { %2484 = vmatmul.mubr.bf16.gmra.mrb[20].mxu1 %v9137_v59  ;;  %v8153_v59 = vld [vmem:[#allocation11 + $0x36c] ss:$24 sps:$4 sm:$0xff]  }
 0x327   :  { %2493 = vmatprep.mubr.bf16.mxu1 %v10193_v19 }
 0x32e   :  { %2494 = vmatmul.mubr.bf16.gmra.mrb[24].mxu1 %v9145_v54  ;;  %v8159_v54 = vld [vmem:[#allocation11 + $0x39c] ss:$24 sps:$4 sm:$0xff]  }
 0x32f   :  { %2503 = vmatprep.mubr.bf16.mxu1 %v10193_v19  ;;  %v8157_v19 = vld [vmem:[#allocation11 + $0x398] ss:$24 sps:$4 sm:$0xff]  }
 0x336   :  { %2504 = vmatmul.mubr.bf16.gmra.mrb[28].mxu1 %v9153_v7  ;;  %v8162_v7 = vld [vmem:[#allocation11 + $0x3cc] ss:$24 sps:$4 sm:$0xff]  }
 0x337   :  { %4981 = vmatprep.mubr.bf16.mxu1 %v9200_v31 }
 0x33e   :  { %4982 = vmatmul.mubr.bf16.vlgmr.msra.gmra.mrb[32].mxu1 %v9196_v15 }
 0x33f   :  { %4991 = vmatprep.mubr.bf16.mxu1 %v9220_v47  ;;  %5143 = vmatpush1.bf16.msra.mxu1 %v8142_v55 }
 0x340   :  { %5144 = vmatprep.subr.bf16.mxu1 %v8150_v32 }
 0x343   :  { %5145 = vmatpush1.bf16.msra.mxu1 %v8148_v0  ;;  %v8177_v0 = vld [vmem:[#allocation11 + $0x45c] ss:$24 sps:$4 sm:$0xff]  }
 0x344   :  { %5146 = vmatprep.subr.bf16.mxu1 %v8153_v59 }
 0x346   :  { %4992 = vmatmul.mubr.bf16.gmra.mrb[36].mxu1 %v9216_v25 }
 0x347   :  { %5001 = vmatprep.mubr.bf16.mxu1 %v9240_v9  ;;  %5147 = vmatpush1.bf16.msra.mxu1 %v8151_v6 }
 0x348   :  { %5148 = vmatprep.subr.bf16.mxu1 %v8159_v54 }
 0x34b   :  { %5149 = vmatpush1.bf16.msra.mxu1 %v8157_v19 }
 0x34c   :  { %5150 = vmatprep.subr.bf16.mxu1 %v8162_v7 }
 0x34e   :  { %5002 = vmatmul.mubr.bf16.gmra.mrb[40].mxu1 %v9236_v11 }
 0x34f   :  { %5011 = vmatprep.mubr.bf16.mxu1 %v9260_v53  ;;  %5151 = vmatpush1.bf16.msra.mxu1 %v8160_v50 }
 0x350   :  { %5152 = vmatprep.subr.bf16.mxu1 %v8168_v14 }
 0x351   :  { %v2049_v23 = vpop.f32.mrb[192].mxu1  ;;  %v2242_v16 = vpop.f32.mrb[64].mxu0 }
 0x352   :  { %v2051_v58 = vpop.f32.mrb[193].mxu1  ;;  %v2244_v38 = vpop.f32.mrb[65].mxu0  ;;  %v2050_v28 = vadd.f32 %v2049_v23, %v9172_v43  ;;  %v2243_v24 = vadd.f32 %v2242_v16, %v9176_v62  ;;  %v8180_v23 = vld [vmem:[#allocation11 + $0x48c] ss:$24 sps:$4 sm:$0xff]  }
 0x353   :  { %v2053_v57 = vpop.f32.mrb[194].mxu1  ;;  %v2246_v27 = vpop.f32.mrb[66].mxu0  ;;  %5153 = vmatpush1.bf16.msra.mxu1 %v8166_v41  ;;  %v2052_v59 = vadd.f32 %v2051_v58, %v9180_v51  ;;  %v2245_v6 = vadd.f32 %v2244_v38, %v9184_v29 }
 0x354   :  { %v2054_v49 = vadd.f32 %v2053_v57, %v9172_v43  ;;  %v2247_v1 = vadd.f32 %v2246_v27, %v9176_v62  ;;  %v2055_v55 = vpop.f32.mrb[195].mxu1  ;;  %v2248_v32 = vpop.f32.mrb[67].mxu0  ;;  %5154 = vmatprep.subr.bf16.mxu1 %v8171_v52  ;;  %v8175_v52 = vld [vmem:[#allocation11 + $0x458] ss:$24 sps:$4 sm:$0xff]  }
 0x355   :  { %v2056_v54 = vadd.f32 %v2055_v55, %v9180_v51  ;;  %v2249_v19 = vadd.f32 %v2248_v32, %v9184_v29 }
 0x356   :  { %v9370_v7 = vpack.c.bf16 %v2054_v49, %v2050_v28  ;;  %v9372_v50 = vpack.c.bf16 %v2247_v1, %v2243_v24  ;;  %5012 = vmatmul.mubr.bf16.gmra.mrb[44].mxu1 %v9256_v4  ;;  %v8178_v24 = vld [vmem:[#allocation11 + $0x488] ss:$24 sps:$4 sm:$0xff]  }
 0x357   :  { %v9375_v14 = vpack.c.bf16 %v2056_v54, %v2052_v59  ;;  %v9377_v41 = vpack.c.bf16 %v2249_v19, %v2245_v6  ;;  %5021 = vmatprep.mubr.bf16.mxu1 %v9280_v18  ;;  %5155 = vmatpush1.bf16.msra.mxu1 %v8169_v30  ;;  %v8186_v59 = vld [vmem:[#allocation11 + $0x4bc] ss:$24 sps:$4 sm:$0xff]  }
 0x358   :  { %10223 = vst [vmem:[#allocation47_spill] sm:$0xff] %v9370_v7  ;;  %5156 = vmatprep.subr.bf16.mxu1 %v8177_v0 }
 0x359   :  { %10224 = vst [vmem:[#allocation48_spill] sm:$0xff] %v9375_v14  ;;  %10225 = vst [vmem:[#allocation49_spill] sm:$0xff] %v9377_v41  ;;  %v2059_v16 = vpop.f32.mrb[196].mxu1  ;;  %v2252_v58 = vpop.f32.mrb[68].mxu0  ;;  %4482 = vmatprep.mubr.bf16.mxu0 %v9375_v14 }
 0x35a   :  { %v2061_v38 = vpop.f32.mrb[197].mxu1  ;;  %v2254_v57 = vpop.f32.mrb[69].mxu0  ;;  %4483 = vmatmul.mubr.bf16.gmra.mrb[128].mxu0 %v9370_v7  ;;  %v2060_v49 = vadd.f32 %v2059_v16, %v9172_v43  ;;  %v2253_v1 = vadd.f32 %v2252_v58, %v9176_v62 }
 0x35b   :  { %v2063_v27 = vpop.f32.mrb[198].mxu1  ;;  %v2256_v28 = vpop.f32.mrb[70].mxu0  ;;  %5157 = vmatpush1.bf16.msra.mxu1 %v8175_v52  ;;  %v2062_v6 = vadd.f32 %v2061_v38, %v9180_v51  ;;  %v2255_v54 = vadd.f32 %v2254_v57, %v9184_v29  ;;  %v8189_v38 = vld [vmem:[#allocation11 + $0x4ec] ss:$24 sps:$4 sm:$0xff]  }
 0x35c   :  { %v2064_v30 = vadd.f32 %v2063_v27, %v9172_v43  ;;  %v2257_v55 = vadd.f32 %v2256_v28, %v9176_v62  ;;  %v2065_v32 = vpop.f32.mrb[199].mxu1  ;;  %v2258_v0 = vpop.f32.mrb[71].mxu0  ;;  %5158 = vmatprep.subr.bf16.mxu1 %v8180_v23  ;;  %v8184_v23 = vld [vmem:[#allocation11 + $0x4b8] ss:$24 sps:$4 sm:$0xff]  }
 0x35d   :  { %v2066_v19 = vadd.f32 %v2065_v32, %v9180_v51  ;;  %v2259_v52 = vadd.f32 %v2258_v0, %v9184_v29  ;;  %v8187_v32 = vld [vmem:[#allocation11 + $0x4e8] ss:$24 sps:$4 sm:$0xff]  }
 0x35e   :  { %v9390_v12 = vpack.c.bf16 %v2064_v30, %v2060_v49  ;;  %v9392_v16 = vpack.c.bf16 %v2257_v55, %v2253_v1  ;;  %5022 = vmatmul.mubr.bf16.gmra.mrb[48].mxu1 %v9276_v46 }
 0x35f   :  { %v9395_v58 = vpack.c.bf16 %v2066_v19, %v2062_v6  ;;  %v9397_v27 = vpack.c.bf16 %v2259_v52, %v2255_v54  ;;  %5031 = vmatprep.mubr.bf16.mxu1 %v9300_v5  ;;  %5159 = vmatpush1.bf16.msra.mxu1 %v8178_v24  ;;  %v8195_v52 = vld [vmem:[#allocation11 + $0x51c] ss:$24 sps:$4 sm:$0xff]  }
 0x360   :  { %10226 = vst [vmem:[#allocation50_spill] sm:$0xff] %v9390_v12  ;;  %5160 = vmatprep.subr.bf16.mxu1 %v8186_v59 }
 0x361   :  { %10227 = vst [vmem:[#allocation51_spill] sm:$0xff] %v9395_v58  ;;  %10228 = vst [vmem:[#allocation52_spill] sm:$0xff] %v9397_v27  ;;  %v2069_v57 = vpop.f32.mrb[200].mxu1  ;;  %v2262_v28 = vpop.f32.mrb[72].mxu0  ;;  %4492 = vmatprep.mubr.bf16.mxu0 %v9395_v58 }
 0x362   :  { %v2071_v49 = vpop.f32.mrb[201].mxu1  ;;  %v2264_v30 = vpop.f32.mrb[73].mxu0  ;;  %4493 = vmatmul.mubr.bf16.gmra.mrb[132].mxu0 %v9390_v12  ;;  %v2070_v0 = vadd.f32 %v2069_v57, %v9172_v43  ;;  %v2263_v6 = vadd.f32 %v2262_v28, %v9176_v62 }
 0x363   :  { %v2073_v1 = vpop.f32.mrb[202].mxu1  ;;  %v2266_v55 = vpop.f32.mrb[74].mxu0  ;;  %5161 = vmatpush1.bf16.msra.mxu1 %v8184_v23  ;;  %v2072_v21 = vadd.f32 %v2071_v49, %v9180_v51  ;;  %v2265_v20 = vadd.f32 %v2264_v30, %v9184_v29  ;;  %v8198_v49 = vld [vmem:[#allocation11 + $0x54c] ss:$24 sps:$4 sm:$0xff]  }
 0x364   :  { %v2074_v24 = vadd.f32 %v2073_v1, %v9172_v43  ;;  %v2267_v59 = vadd.f32 %v2266_v55, %v9176_v62  ;;  %v2075_v54 = vpop.f32.mrb[203].mxu1  ;;  %v2268_v19 = vpop.f32.mrb[75].mxu0  ;;  %5162 = vmatprep.subr.bf16.mxu1 %v8189_v38  ;;  %v8193_v38 = vld [vmem:[#allocation11 + $0x518] ss:$24 sps:$4 sm:$0xff]  }
 0x365   :  { %v2076_v60 = vadd.f32 %v2075_v54, %v9180_v51  ;;  %v2269_v23 = vadd.f32 %v2268_v19, %v9184_v29 }
 0x366   :  { %v9410_v5 = vpack.c.bf16 %v2074_v24, %v2070_v0  ;;  %v9412_v57 = vpack.c.bf16 %v2267_v59, %v2263_v6  ;;  %5032 = vmatmul.mubr.bf16.gmra.mrb[52].mxu1 %v9296_v33 }
 0x367   :  { %v9415_v28 = vpack.c.bf16 %v2076_v60, %v2072_v21  ;;  %v9417_v1 = vpack.c.bf16 %v2269_v23, %v2265_v20  ;;  %5041 = vmatprep.mubr.bf16.mxu1 %v9320_v13  ;;  %5163 = vmatpush1.bf16.msra.mxu1 %v8187_v32  ;;  %v8196_v60 = vld [vmem:[#allocation11 + $0x548] ss:$24 sps:$4 sm:$0xff]   ;;  %v8204_v23 = vld [vmem:[#allocation11 + $0x57c] ss:$24 sps:$4 sm:$0xff]  }
 0x368   :  { %5164 = vmatprep.subr.bf16.mxu1 %v8195_v52 }
 0x369   :  { %10229 = vst [vmem:[#allocation53_spill] sm:$0xff] %v9415_v28  ;;  %v2079_v30 = vpop.f32.mrb[204].mxu1  ;;  %v2272_v55 = vpop.f32.mrb[76].mxu0  ;;  %4502 = vmatprep.mubr.bf16.mxu0 %v9415_v28 }
 0x36a   :  { %v2081_v0 = vpop.f32.mrb[205].mxu1  ;;  %v2274_v24 = vpop.f32.mrb[77].mxu0  ;;  %4503 = vmatmul.mubr.bf16.gmra.mrb[136].mxu0 %v9410_v5  ;;  %v2080_v21 = vadd.f32 %v2079_v30, %v9172_v43  ;;  %v2273_v20 = vadd.f32 %v2272_v55, %v9176_v62 }
 0x36b   :  { %v2083_v6 = vpop.f32.mrb[206].mxu1  ;;  %v2276_v59 = vpop.f32.mrb[78].mxu0  ;;  %5165 = vmatpush1.bf16.msra.mxu1 %v8193_v38  ;;  %v2082_v13 = vadd.f32 %v2081_v0, %v9180_v51  ;;  %v2275_v33 = vadd.f32 %v2274_v24, %v9184_v29  ;;  %v8207_v0 = vld [vmem:[#allocation11 + $0x5ac] ss:$24 sps:$4 sm:$0xff]  }
 0x36c   :  { %v2084_v32 = vadd.f32 %v2083_v6, %v9172_v43  ;;  %v2277_v54 = vadd.f32 %v2276_v59, %v9176_v62  ;;  %v2085_v19 = vpop.f32.mrb[207].mxu1  ;;  %v2278_v52 = vpop.f32.mrb[79].mxu0  ;;  %5166 = vmatprep.subr.bf16.mxu1 %v8198_v49  ;;  %v8202_v49 = vld [vmem:[#allocation11 + $0x578] ss:$24 sps:$4 sm:$0xff]  }
 0x36d   :  { %v2086_v46 = vadd.f32 %v2085_v19, %v9180_v51  ;;  %v2279_v38 = vadd.f32 %v2278_v52, %v9184_v29 }
 0x36e   :  { %v9430_v18 = vpack.c.bf16 %v2084_v32, %v2080_v21  ;;  %v9432_v30 = vpack.c.bf16 %v2277_v54, %v2273_v20  ;;  %5042 = vmatmul.mubr.bf16.gmra.mrb[56].mxu1 %v9316_v8 }
 0x36f   :  { %v9435_v55 = vpack.c.bf16 %v2086_v46, %v2082_v13  ;;  %v9437_v6 = vpack.c.bf16 %v2279_v38, %v2275_v33  ;;  %5051 = vmatprep.mubr.bf16.mxu1 %v9340_v17  ;;  %5167 = vmatpush1.bf16.msra.mxu1 %v8196_v60  ;;  %v8205_v46 = vld [vmem:[#allocation11 + $0x5a8] ss:$24 sps:$4 sm:$0xff]   ;;  %v8213_v38 = vld [vmem:[#allocation11 + $0x5dc] ss:$24 sps:$4 sm:$0xff]  }
 0x370   :  { %10230 = vst [vmem:[#allocation54_spill] sm:$0xff] %v9430_v18  ;;  %5168 = vmatprep.subr.bf16.mxu1 %v8204_v23 }
 0x371   :  { %10231 = vst [vmem:[#allocation55_spill] sm:$0xff] %v9435_v55  ;;  %v2089_v24 = vpop.f32.mrb[208].mxu1  ;;  %v2282_v59 = vpop.f32.mrb[80].mxu0  ;;  %4512 = vmatprep.mubr.bf16.mxu0 %v9435_v55 }
 0x372   :  { %v2091_v21 = vpop.f32.mrb[209].mxu1  ;;  %v2284_v32 = vpop.f32.mrb[81].mxu0  ;;  %4513 = vmatmul.mubr.bf16.gmra.mrb[140].mxu0 %v9430_v18  ;;  %v2090_v33 = vadd.f32 %v2089_v24, %v9172_v43  ;;  %v2283_v13 = vadd.f32 %v2282_v59, %v9176_v62 }
 0x373   :  { %v2093_v20 = vpop.f32.mrb[210].mxu1  ;;  %v2286_v54 = vpop.f32.mrb[82].mxu0  ;;  %5169 = vmatpush1.bf16.msra.mxu1 %v8202_v49  ;;  %v2092_v17 = vadd.f32 %v2091_v21, %v9180_v51  ;;  %v2285_v8 = vadd.f32 %v2284_v32, %v9184_v29 }
 0x374   :  { %v2094_v60 = vadd.f32 %v2093_v20, %v9172_v43  ;;  %v2287_v19 = vadd.f32 %v2286_v54, %v9176_v62  ;;  %v2095_v52 = vpop.f32.mrb[211].mxu1  ;;  %v2288_v23 = vpop.f32.mrb[83].mxu0  ;;  %5170 = vmatprep.subr.bf16.mxu1 %v8207_v0  ;;  %v8211_v0 = vld [vmem:[#allocation11 + $0x5d8] ss:$24 sps:$4 sm:$0xff]  }
 0x375   :  { %v2096_v4 = vadd.f32 %v2095_v52, %v9180_v51  ;;  %v2289_v49 = vadd.f32 %v2288_v23, %v9184_v29  ;;  %v8240_v23 = vld [vmem:[#allocation11 + $0x60c] ss:$24 sps:$4 sm:$0xff]  }
 0x376   :  { %v9450_v53 = vpack.c.bf16 %v2094_v60, %v2090_v33  ;;  %v9452_v24 = vpack.c.bf16 %v2287_v19, %v2283_v13  ;;  %5052 = vmatmul.mubr.bf16.gmra.mrb[60].mxu1 %v9336_v3 }
 0x377   :  { %v9455_v59 = vpack.c.bf16 %v2096_v4, %v2092_v17  ;;  %v9457_v20 = vpack.c.bf16 %v2289_v49, %v2285_v8  ;;  %5061 = vmatprep.mubr.bf16.mxu1 %v9375_v14  ;;  %5171 = vmatpush1.bf16.msra.mxu1 %v8205_v46 }
 0x378   :  { %10232 = vst [vmem:[#allocation56_spill] sm:$0xff] %v9450_v53  ;;  %5172 = vmatprep.subr.bf16.mxu1 %v8213_v38 }
 0x379   :  { %10233 = vst [vmem:[#allocation57_spill] sm:$0xff] %v9455_v59  ;;  %v2099_v21 = vpop.f32.mrb[212].mxu1  ;;  %v2292_v32 = vpop.f32.mrb[84].mxu0  ;;  %4522 = vmatprep.mubr.bf16.mxu0 %v9455_v59 }
 0x37a   :  { %v2101_v54 = vpop.f32.mrb[213].mxu1  ;;  %v2294_v33 = vpop.f32.mrb[85].mxu0  ;;  %4523 = vmatmul.mubr.bf16.gmra.mrb[144].mxu0 %v9450_v53  ;;  %v2100_v4 = vadd.f32 %v2099_v21, %v9172_v43  ;;  %v2293_v8 = vadd.f32 %v2292_v32, %v9176_v62 }
 0x37b   :  { %v2103_v13 = vpop.f32.mrb[214].mxu1  ;;  %v2296_v60 = vpop.f32.mrb[86].mxu0  ;;  %5173 = vmatpush1.bf16.msra.mxu1 %v8211_v0  ;;  %v2102_v38 = vadd.f32 %v2101_v54, %v9180_v51  ;;  %v2295_v49 = vadd.f32 %v2294_v33, %v9184_v29 }
 0x37c   :  { %v2104_v17 = vadd.f32 %v2103_v13, %v9172_v43  ;;  %v2297_v46 = vadd.f32 %v2296_v60, %v9176_v62  ;;  %v2105_v19 = vpop.f32.mrb[215].mxu1  ;;  %v2298_v52 = vpop.f32.mrb[87].mxu0  ;;  %5335 = vmatprep.subr.bf16.mxu1 %v8240_v23 }
 0x37d   :  { %v2106_v14 = vadd.f32 %v2105_v19, %v9180_v51  ;;  %v2299_v3 = vadd.f32 %v2298_v52, %v9184_v29 }
 0x37e   :  { %v9470_v0 = vpack.c.bf16 %v2104_v17, %v2100_v4  ;;  %v9472_v21 = vpack.c.bf16 %v2297_v46, %v2293_v8  ;;  %5062 = vmatmul.mubr.bf16.gmra.mrb[64].mxu1 %v9370_v7 }
 0x37f   :  { %v9475_v32 = vpack.c.bf16 %v2106_v14, %v2102_v38  ;;  %v9477_v13 = vpack.c.bf16 %v2299_v3, %v2295_v49  ;;  %5071 = vmatprep.mubr.bf16.mxu1 %v9395_v58 }
 0x380   :  { %10234 = vst [vmem:[#allocation58_spill] sm:$0xff] %v9470_v0 }
 0x381   :  { %10235 = vst [vmem:[#allocation59_spill] sm:$0xff] %v9475_v32  ;;  %v2109_v54 = vpop.f32.mrb[216].mxu1  ;;  %v2302_v60 = vpop.f32.mrb[88].mxu0  ;;  %4532 = vmatprep.mubr.bf16.mxu0 %v9475_v32 }
 0x382   :  { %v2111_v33 = vpop.f32.mrb[217].mxu1  ;;  %v2304_v19 = vpop.f32.mrb[89].mxu0  ;;  %4533 = vmatmul.mubr.bf16.gmra.mrb[148].mxu0 %v9470_v0  ;;  %v2110_v17 = vadd.f32 %v2109_v54, %v9172_v43  ;;  %v2303_v46 = vadd.f32 %v2302_v60, %v9176_v62 }
 0x383   :  { %v2113_v4 = vpop.f32.mrb[218].mxu1  ;;  %v2306_v8 = vpop.f32.mrb[90].mxu0  ;;  %v2112_v38 = vadd.f32 %v2111_v33, %v9180_v51  ;;  %v2305_v49 = vadd.f32 %v2304_v19, %v9184_v29 }
 0x384   :  { %v2114_v14 = vadd.f32 %v2113_v4, %v9172_v43  ;;  %v2307_v3 = vadd.f32 %v2306_v8, %v9176_v62  ;;  %v2115_v52 = vpop.f32.mrb[219].mxu1  ;;  %v2308_v23 = vpop.f32.mrb[91].mxu0 }
 0x385   :  { %v2116_v58 = vadd.f32 %v2115_v52, %v9180_v51  ;;  %v2309_v7 = vadd.f32 %v2308_v23, %v9184_v29 }
 0x386   :  { %v9490_v11 = vpack.c.bf16 %v2114_v14, %v2110_v17  ;;  %v9492_v9 = vpack.c.bf16 %v2307_v3, %v2303_v46  ;;  %5072 = vmatmul.mubr.bf16.gmra.mrb[68].mxu1 %v9390_v12 }
 0x387   :  { %v9495_v54 = vpack.c.bf16 %v2116_v58, %v2112_v38  ;;  %v9497_v60 = vpack.c.bf16 %v2309_v7, %v2305_v49  ;;  %5081 = vmatprep.mubr.bf16.mxu1 %v9415_v28 }
 0x388   :  { %10236 = vst [vmem:[#allocation60_spill] sm:$0xff] %v9490_v11 }
 0x389   :  { %10237 = vst [vmem:[#allocation61_spill] sm:$0xff] %v9495_v54  ;;  %v2119_v4 = vpop.f32.mrb[220].mxu1  ;;  %v2312_v33 = vpop.f32.mrb[92].mxu0  ;;  %4542 = vmatprep.mubr.bf16.mxu0 %v9495_v54 }
 0x38a   :  { %v2121_v19 = vpop.f32.mrb[221].mxu1  ;;  %v2314_v8 = vpop.f32.mrb[93].mxu0  ;;  %4543 = vmatmul.mubr.bf16.gmra.mrb[152].mxu0 %v9490_v11  ;;  %v2120_v58 = vadd.f32 %v2119_v4, %v9172_v43  ;;  %v2313_v7 = vadd.f32 %v2312_v33, %v9176_v62  ;;  %v10240_v33 = vsub.s32 4, %v9162_v45 }
 0x38b   :  { %v2123_v17 = vpop.f32.mrb[222].mxu1  ;;  %v2316_v14 = vpop.f32.mrb[94].mxu0  ;;  %v2122_v28 = vadd.f32 %v2121_v19, %v9180_v51  ;;  %v2315_v12 = vadd.f32 %v2314_v8, %v9184_v29 }
 0x38c   :  { %v2124_v52 = vadd.f32 %v2123_v17, %v9172_v43  ;;  %v2317_v23 = vadd.f32 %v2316_v14, %v9176_v62  ;;  %v2125_v38 = vpop.f32.mrb[223].mxu1  ;;  %v2318_v49 = vpop.f32.mrb[95].mxu0  ;;  %v8439_v62 = vld [vmem:[#allocation10] sm:$0x3f] }
 0x38d   :  { %v2126_v25 = vadd.f32 %v2125_v38, %v9180_v51  ;;  %v2319_v46 = vadd.f32 %v2318_v49, %v9184_v29  ;;  %v9524_v19 = vrot.slane %v8439_v62, %v10240_v33  ;;  %v10241_v29 = vsub.s32 5, %v9162_v45  ;;  %v8183_v38 = vld [vmem:[#allocation11 + $0x634] ss:$24 sps:$4 sm:$0xff]  }
 0x38e   :  { %v9512_v47 = vpack.c.bf16 %v2124_v52, %v2120_v58  ;;  %v9514_v3 = vpack.c.bf16 %v2317_v23, %v2313_v7  ;;  %5082 = vmatmul.mubr.bf16.gmra.mrb[72].mxu1 %v9410_v5  ;;  %v8172_v23 = vld [vmem:[#allocation11 + $0x600] ss:$24 sps:$4 sm:$0xff]  }
 0x38f   :  { %v9517_v4 = vpack.c.bf16 %v2126_v25, %v2122_v28  ;;  %v9519_v43 = vpack.c.bf16 %v2319_v46, %v2315_v12  ;;  %5091 = vmatprep.mubr.bf16.mxu1 %v9435_v55  ;;  %v9529_v8 = vrot.slane %v8439_v62, %v10241_v29 }
 0x390   :  { %10238 = vst [vmem:[#allocation62_spill] sm:$0xff] %v9512_v47 }
 0x391   :  { %10239 = vst [vmem:[#allocation63_spill] sm:$0xff] %v9517_v4  ;;  %v2355_v51 = vpop.f32.mrb[224].mxu1  ;;  %4552 = vmatprep.mubr.bf16.mxu0 %v9517_v4 }
 0x392   :  { %v2357_v17 = vpop.f32.mrb[225].mxu1  ;;  %4553 = vmatmul.mubr.bf16.gmra.mrb[156].mxu0 %v9512_v47  ;;  %v2356_v12 = vadd.f32 %v2355_v51, %v9524_v19  ;;  %v8181_v51 = vld [vmem:[#allocation11 + $0x630] ss:$24 sps:$4 sm:$0xff]  }
 0x393   :  { %v2359_v25 = vpop.f32.mrb[226].mxu1  ;;  %4595 = vmatprep.mubr.bf16.mxu0 %v9202_v44  ;;  %v2358_v46 = vadd.f32 %v2357_v17, %v9529_v8 }
 0x394   :  { %v2360_v28 = vadd.f32 %v2359_v25, %v9524_v19  ;;  %v2361_v14 = vpop.f32.mrb[227].mxu1 }
 0x395   :  { %v2362_v58 = vadd.f32 %v2361_v14, %v9529_v8 }
 0x396   :  { %v9537_v7 = vpack.c.bf16 %v2360_v28, %v2356_v12  ;;  %5092 = vmatmul.mubr.bf16.gmra.mrb[76].mxu1 %v9430_v18  ;;  %v8192_v12 = vld [vmem:[#allocation11 + $0x664] ss:$24 sps:$4 sm:$0xff]  }
 0x397   :  { %v9540_v52 = vpack.c.bf16 %v2362_v58, %v2358_v46  ;;  %5101 = vmatprep.mubr.bf16.mxu1 %v9455_v59 }
 0x399   :  { %v2365_v49 = vpop.f32.mrb[228].mxu1 }
 0x39a   :  { %v2367_v62 = vpop.f32.mrb[229].mxu1  ;;  %4596 = vmatmul.mubr.bf16.vlgmr.msra.gmra.mrb[96].mxu0 %v9198_v42  ;;  %v2366_v29 = vadd.f32 %v2365_v49, %v9524_v19  ;;  %v8201_v49 = vld [vmem:[#allocation11 + $0x694] ss:$24 sps:$4 sm:$0xff]  }
 0x39b   :  { %v2369_v33 = vpop.f32.mrb[230].mxu1  ;;  %4605 = vmatprep.mubr.bf16.mxu0 %v9222_v63  ;;  %4757 = vmatpush1.bf16.msra.mxu0 %v8172_v23  ;;  %v2368_v28 = vadd.f32 %v2367_v62, %v9529_v8  ;;  %v8190_v23 = vld [vmem:[#allocation11 + $0x660] ss:$24 sps:$4 sm:$0xff]   ;;  %v8199_v62 = vld [vmem:[#allocation11 + $0x690] ss:$24 sps:$4 sm:$0xff]  }
 0x39c   :  { %v2370_v17 = vadd.f32 %v2369_v33, %v9524_v19  ;;  %v2371_v25 = vpop.f32.mrb[231].mxu1  ;;  %4758 = vmatprep.subr.bf16.mxu0 %v8183_v38 }
 0x39d   :  { %v2372_v14 = vadd.f32 %v2371_v25, %v9529_v8 }
 0x39e   :  { %v9549_v46 = vpack.c.bf16 %v2370_v17, %v2366_v29  ;;  %5102 = vmatmul.mubr.bf16.gmra.mrb[80].mxu1 %v9450_v53 }
 0x39f   :  { %v9552_v58 = vpack.c.bf16 %v2372_v14, %v2368_v28  ;;  %5111 = vmatprep.mubr.bf16.mxu1 %v9475_v32  ;;  %4759 = vmatpush1.bf16.msra.mxu0 %v8181_v51  ;;  %v8210_v28 = vld [vmem:[#allocation11 + $0x6c4] ss:$24 sps:$4 sm:$0xff]  }
 0x3a0   :  { %4760 = vmatprep.subr.bf16.mxu0 %v8192_v12 }
 0x3a1   :  { %v2375_v33 = vpop.f32.mrb[232].mxu1 }
 0x3a2   :  { %v2377_v59 = vpop.f32.mrb[233].mxu1  ;;  %4606 = vmatmul.mubr.bf16.gmra.mrb[100].mxu0 %v9218_v22  ;;  %v2376_v29 = vadd.f32 %v2375_v33, %v9524_v19  ;;  %v8216_v33 = vld [vmem:[#allocation11 + $0x6f4] ss:$24 sps:$4 sm:$0xff]  }
 0x3a3   :  { %v2379_v38 = vpop.f32.mrb[234].mxu1  ;;  %4615 = vmatprep.mubr.bf16.mxu0 %v9242_v48  ;;  %4761 = vmatpush1.bf16.msra.mxu0 %v8190_v23  ;;  %v2378_v51 = vadd.f32 %v2377_v59, %v9529_v8  ;;  %v8208_v23 = vld [vmem:[#allocation11 + $0x6c0] ss:$24 sps:$4 sm:$0xff]   ;;  %v8214_v59 = vld [vmem:[#allocation11 + $0x6f0] ss:$24 sps:$4 sm:$0xff]  }
 0x3a4   :  { %v2380_v17 = vadd.f32 %v2379_v38, %v9524_v19  ;;  %v2381_v25 = vpop.f32.mrb[235].mxu1  ;;  %4762 = vmatprep.subr.bf16.mxu0 %v8201_v49 }
 0x3a5   :  { %v2382_v12 = vadd.f32 %v2381_v25, %v9529_v8 }
 0x3a6   :  { %v9561_v14 = vpack.c.bf16 %v2380_v17, %v2376_v29  ;;  %5112 = vmatmul.mubr.bf16.gmra.mrb[84].mxu1 %v9470_v0 }
 0x3a7   :  { %v9564_v32 = vpack.c.bf16 %v2382_v12, %v2378_v51  ;;  %5121 = vmatprep.mubr.bf16.mxu1 %v9495_v54  ;;  %4763 = vmatpush1.bf16.msra.mxu0 %v8199_v62  ;;  %v8219_v51 = vld [vmem:[#allocation11 + $0x724] ss:$24 sps:$4 sm:$0xff]  }
 0x3a8   :  { %4764 = vmatprep.subr.bf16.mxu0 %v8210_v28 }
 0x3a9   :  { %v2385_v38 = vpop.f32.mrb[236].mxu1 }
 0x3aa   :  { %v2387_v53 = vpop.f32.mrb[237].mxu1  ;;  %4616 = vmatmul.mubr.bf16.gmra.mrb[104].mxu0 %v9238_v56  ;;  %v2386_v29 = vadd.f32 %v2385_v38, %v9524_v19  ;;  %v8222_v38 = vld [vmem:[#allocation11 + $0x754] ss:$24 sps:$4 sm:$0xff]  }
 0x3ab   :  { %v2389_v49 = vpop.f32.mrb[238].mxu1  ;;  %4625 = vmatprep.mubr.bf16.mxu0 %v9262_v36  ;;  %4765 = vmatpush1.bf16.msra.mxu0 %v8208_v23  ;;  %v2388_v62 = vadd.f32 %v2387_v53, %v9529_v8  ;;  %v8217_v23 = vld [vmem:[#allocation11 + $0x720] ss:$24 sps:$4 sm:$0xff]   ;;  %v8220_v53 = vld [vmem:[#allocation11 + $0x750] ss:$24 sps:$4 sm:$0xff]  }
 0x3ac   :  { %v2390_v17 = vadd.f32 %v2389_v49, %v9524_v19  ;;  %v2391_v25 = vpop.f32.mrb[239].mxu1  ;;  %4766 = vmatprep.subr.bf16.mxu0 %v8216_v33 }
 0x3ad   :  { %v2392_v28 = vadd.f32 %v2391_v25, %v9529_v8 }
 0x3ae   :  { %v9573_v12 = vpack.c.bf16 %v2390_v17, %v2386_v29  ;;  %5122 = vmatmul.mubr.bf16.gmra.mrb[88].mxu1 %v9490_v11 }
 0x3af   :  { %v9576_v54 = vpack.c.bf16 %v2392_v28, %v2388_v62  ;;  %5131 = vmatprep.mubr.bf16.mxu1 %v9517_v4  ;;  %4767 = vmatpush1.bf16.msra.mxu0 %v8214_v59  ;;  %v8225_v62 = vld [vmem:[#allocation11 + $0x784] ss:$24 sps:$4 sm:$0xff]  }
 0x3b0   :  { %4768 = vmatprep.subr.bf16.mxu0 %v8219_v51 }
 0x3b1   :  { %v2395_v49 = vpop.f32.mrb[240].mxu1 }
 0x3b2   :  { %v2397_v0 = vpop.f32.mrb[241].mxu1  ;;  %4626 = vmatmul.mubr.bf16.gmra.mrb[108].mxu0 %v9258_v35  ;;  %v2396_v29 = vadd.f32 %v2395_v49, %v9524_v19  ;;  %v8228_v49 = vld [vmem:[#allocation11 + $0x7b4] ss:$24 sps:$4 sm:$0xff]  }
 0x3b3   :  { %v2399_v33 = vpop.f32.mrb[242].mxu1  ;;  %4635 = vmatprep.mubr.bf16.mxu0 %v9282_v40  ;;  %4769 = vmatpush1.bf16.msra.mxu0 %v8217_v23  ;;  %v2398_v59 = vadd.f32 %v2397_v0, %v9529_v8  ;;  %v8223_v23 = vld [vmem:[#allocation11 + $0x780] ss:$24 sps:$4 sm:$0xff]   ;;  %v8226_v0 = vld [vmem:[#allocation11 + $0x7b0] ss:$24 sps:$4 sm:$0xff]  }
 0x3b4   :  { %v2400_v17 = vadd.f32 %v2399_v33, %v9524_v19  ;;  %v2401_v25 = vpop.f32.mrb[243].mxu1  ;;  %4770 = vmatprep.subr.bf16.mxu0 %v8222_v38 }
 0x3b5   :  { %v2402_v51 = vadd.f32 %v2401_v25, %v9529_v8 }
 0x3b6   :  { %v9585_v28 = vpack.c.bf16 %v2400_v17, %v2396_v29  ;;  %5132 = vmatmul.mubr.bf16.gmra.mrb[92].mxu1 %v9512_v47 }
 0x3b7   :  { %v9588_v4 = vpack.c.bf16 %v2402_v51, %v2398_v59  ;;  %5174 = vmatprep.mubr.bf16.mxu1 %v9202_v44  ;;  %4771 = vmatpush1.bf16.msra.mxu0 %v8220_v53  ;;  %v8231_v59 = vld [vmem:[#allocation11 + $0x7e4] ss:$24 sps:$4 sm:$0xff]   ;;  %v8238_v53 = vld [vmem:[#allocation11 + $0x608] ss:$24 sps:$4 sm:$0xff]  }
 0x3b8   :  { %4772 = vmatprep.subr.bf16.mxu0 %v8225_v62  ;;  %v8246_v44 = vld [vmem:[#allocation11 + $0x63c] ss:$24 sps:$4 sm:$0xff]  }
 0x3b9   :  { %v2405_v33 = vpop.f32.mrb[244].mxu1 }
 0x3ba   :  { %v2407_v11 = vpop.f32.mrb[245].mxu1  ;;  %4636 = vmatmul.mubr.bf16.gmra.mrb[112].mxu0 %v9278_v26  ;;  %v2406_v29 = vadd.f32 %v2405_v33, %v9524_v19  ;;  %v8234_v33 = vld [vmem:[#allocation11 + $0x814] ss:$24 sps:$4 sm:$0xff]  }
 0x3bb   :  { %v2409_v38 = vpop.f32.mrb[246].mxu1  ;;  %4645 = vmatprep.mubr.bf16.mxu0 %v9302_v10  ;;  %4773 = vmatpush1.bf16.msra.mxu0 %v8223_v23  ;;  %v2408_v62 = vadd.f32 %v2407_v11, %v9529_v8  ;;  %v8229_v23 = vld [vmem:[#allocation11 + $0x7e0] ss:$24 sps:$4 sm:$0xff]   ;;  %v8249_v11 = vld [vmem:[#allocation11 + $0x66c] ss:$24 sps:$4 sm:$0xff]  }
 0x3bc   :  { %v2410_v17 = vadd.f32 %v2409_v38, %v9524_v19  ;;  %v2411_v25 = vpop.f32.mrb[247].mxu1  ;;  %4774 = vmatprep.subr.bf16.mxu0 %v8228_v49  ;;  %v8244_v49 = vld [vmem:[#allocation11 + $0x638] ss:$24 sps:$4 sm:$0xff]  }
 0x3bd   :  { %v2412_v51 = vadd.f32 %v2411_v25, %v9529_v8 }
 0x3be   :  { %v9597_v47 = vpack.c.bf16 %v2410_v17, %v2406_v29  ;;  %5175 = vmatmul.mubr.bf16.vlgmr.msra.gmra.mrb[32].mxu1 %v9198_v42  ;;  %v8232_v17 = vld [vmem:[#allocation11 + $0x810] ss:$24 sps:$4 sm:$0xff]  }
 0x3bf   :  { %v9600_v18 = vpack.c.bf16 %v2412_v51, %v2408_v62  ;;  %5184 = vmatprep.mubr.bf16.mxu1 %v9222_v63  ;;  %4775 = vmatpush1.bf16.msra.mxu0 %v8226_v0  ;;  %v8255_v63 = vld [vmem:[#allocation11 + $0x69c] ss:$24 sps:$4 sm:$0xff]  }
 0x3c0   :  { %4776 = vmatprep.subr.bf16.mxu0 %v8231_v59  ;;  %5336 = vmatpush1.bf16.msra.mxu1 %v8238_v53  ;;  %v8237_v59 = vld [vmem:[#allocation11 + $0x844] ss:$24 sps:$4 sm:$0xff]   ;;  %v8247_v53 = vld [vmem:[#allocation11 + $0x668] ss:$24 sps:$4 sm:$0xff]  }
 0x3c1   :  { %v2415_v38 = vpop.f32.mrb[248].mxu1  ;;  %5337 = vmatprep.subr.bf16.mxu1 %v8246_v44 }
 0x3c2   :  { %v2417_v55 = vpop.f32.mrb[249].mxu1  ;;  %4646 = vmatmul.mubr.bf16.gmra.mrb[116].mxu0 %v9298_v61  ;;  %v2416_v25 = vadd.f32 %v2415_v38, %v9524_v19  ;;  %v8235_v38 = vld [vmem:[#allocation11 + $0x840] ss:$24 sps:$4 sm:$0xff]  }
 0x3c3   :  { %v2419_v29 = vpop.f32.mrb[250].mxu1  ;;  %4655 = vmatprep.mubr.bf16.mxu0 %v9322_v34  ;;  %4777 = vmatpush1.bf16.msra.mxu0 %v8229_v23  ;;  %v2418_v44 = vadd.f32 %v2417_v55, %v9529_v8  ;;  %v8258_v55 = vld [vmem:[#allocation11 + $0x6cc] ss:$24 sps:$4 sm:$0xff]  }
 0x3c4   :  { %v2420_v0 = vadd.f32 %v2419_v29, %v9524_v19  ;;  %v2421_v62 = vpop.f32.mrb[251].mxu1  ;;  %4778 = vmatprep.subr.bf16.mxu0 %v8234_v33  ;;  %5338 = vmatpush1.bf16.msra.mxu1 %v8244_v49  ;;  %v8243_v33 = vld [vmem:[#allocation11 + $0x874] ss:$24 sps:$4 sm:$0xff]   ;;  %v8253_v49 = vld [vmem:[#allocation11 + $0x698] ss:$24 sps:$4 sm:$0xff]  }
 0x3c5   :  { %v2422_v51 = vadd.f32 %v2421_v62, %v9529_v8  ;;  %5339 = vmatprep.subr.bf16.mxu1 %v8249_v11 }
 0x3c6   :  { %v9609_v42 = vpack.c.bf16 %v2420_v0, %v2416_v25  ;;  %5185 = vmatmul.mubr.bf16.gmra.mrb[36].mxu1 %v9218_v22  ;;  %v8241_v25 = vld [vmem:[#allocation11 + $0x870] ss:$24 sps:$4 sm:$0xff]  }
 0x3c7   :  { %v9612_v23 = vpack.c.bf16 %v2422_v51, %v2418_v44  ;;  %5194 = vmatprep.mubr.bf16.mxu1 %v9242_v48  ;;  %4779 = vmatpush1.bf16.msra.mxu0 %v8232_v17  ;;  %v8264_v48 = vld [vmem:[#allocation11 + $0x6fc] ss:$24 sps:$4 sm:$0xff]  }
 0x3c8   :  { %4780 = vmatprep.subr.bf16.mxu0 %v8237_v59  ;;  %5340 = vmatpush1.bf16.msra.mxu1 %v8247_v53  ;;  %v8252_v59 = vld [vmem:[#allocation11 + $0x8a4] ss:$24 sps:$4 sm:$0xff]   ;;  %v8256_v53 = vld [vmem:[#allocation11 + $0x6c8] ss:$24 sps:$4 sm:$0xff]  }
 0x3c9   :  { %v2425_v29 = vpop.f32.mrb[252].mxu1  ;;  %5341 = vmatprep.subr.bf16.mxu1 %v8255_v63 }
 0x3ca   :  { %v2427_v62 = vpop.f32.mrb[253].mxu1  ;;  %4656 = vmatmul.mubr.bf16.gmra.mrb[120].mxu0 %v9318_v37  ;;  %v2426_v0 = vadd.f32 %v2425_v29, %v9524_v19  ;;  %v8250_v29 = vld [vmem:[#allocation11 + $0x8a0] ss:$24 sps:$4 sm:$0xff]  }
 0x3cb   :  { %v2429_v11 = vpop.f32.mrb[254].mxu1  ;;  %4665 = vmatprep.mubr.bf16.mxu0 %v9342_v39  ;;  %4781 = vmatpush1.bf16.msra.mxu0 %v8235_v38  ;;  %v2428_v63 = vadd.f32 %v2427_v62, %v9529_v8  ;;  %v8267_v62 = vld [vmem:[#allocation11 + $0x72c] ss:$24 sps:$4 sm:$0xff]  }
 0x3cc   :  { %v2430_v17 = vadd.f32 %v2429_v11, %v9524_v19  ;;  %v2431_v44 = vpop.f32.mrb[255].mxu1  ;;  %4782 = vmatprep.subr.bf16.mxu0 %v8243_v33  ;;  %5342 = vmatpush1.bf16.msra.mxu1 %v8253_v49  ;;  %v8261_v33 = vld [vmem:[#allocation11 + $0x8d4] ss:$24 sps:$4 sm:$0xff]   ;;  %v8262_v49 = vld [vmem:[#allocation11 + $0x6f8] ss:$24 sps:$4 sm:$0xff]  }
 0x3cd   :  { %v2432_v51 = vadd.f32 %v2431_v44, %v9529_v8  ;;  %5343 = vmatprep.subr.bf16.mxu1 %v8258_v55 }
 0x3ce   :  { %v9621_v22 = vpack.c.bf16 %v2430_v17, %v2426_v0  ;;  %5195 = vmatmul.mubr.bf16.gmra.mrb[40].mxu1 %v9238_v56  ;;  %v8259_v0 = vld [vmem:[#allocation11 + $0x8d0] ss:$24 sps:$4 sm:$0xff]  }
 0x3cf   :  { %v9624_v38 = vpack.c.bf16 %v2432_v51, %v2428_v63  ;;  %5204 = vmatprep.mubr.bf16.mxu1 %v9262_v36  ;;  %4783 = vmatpush1.bf16.msra.mxu0 %v8241_v25  ;;  %v8270_v36 = vld [vmem:[#allocation11 + $0x75c] ss:$24 sps:$4 sm:$0xff]  }
 0x3d0   :  { %4784 = vmatprep.subr.bf16.mxu0 %v8252_v59  ;;  %5344 = vmatpush1.bf16.msra.mxu1 %v8256_v53  ;;  %v8265_v59 = vld [vmem:[#allocation11 + $0x728] ss:$24 sps:$4 sm:$0xff]   ;;  %v8273_v53 = vld [vmem:[#allocation11 + $0x14] ss:$24 sps:$4 sm:$0xff]  }
 0x3d1   :  { %v2435_v11 = vpop.f32.mrb[0].mxu1  ;;  %5345 = vmatprep.subr.bf16.mxu1 %v8264_v48 }
 0x3d2   :  { %v2437_v44 = vpop.f32.mrb[1].mxu1  ;;  %4666 = vmatmul.mubr.bf16.gmra.mrb[124].mxu0 %v9338_v2  ;;  %v2436_v17 = vadd.f32 %v2435_v11, %v9524_v19  ;;  %v8276_v11 = vld [vmem:[#allocation11 + $0x78c] ss:$24 sps:$4 sm:$0xff]  }
 0x3d3   :  { %v2439_v55 = vpop.f32.mrb[2].mxu1  ;;  %4675 = vmatprep.mubr.bf16.mxu0 %v9377_v41  ;;  %4785 = vmatpush1.bf16.msra.mxu0 %v8250_v29  ;;  %v2438_v48 = vadd.f32 %v2437_v44, %v9529_v8 }
 0x3d4   :  { %v2440_v25 = vadd.f32 %v2439_v55, %v9524_v19  ;;  %v2441_v63 = vpop.f32.mrb[3].mxu1  ;;  %4786 = vmatprep.subr.bf16.mxu0 %v8261_v33  ;;  %5346 = vmatpush1.bf16.msra.mxu1 %v8262_v49  ;;  %v8268_v33 = vld [vmem:[#allocation11 + $0x758] ss:$24 sps:$4 sm:$0xff]  }
 0x3d5   :  { %v2442_v51 = vadd.f32 %v2441_v63, %v9529_v8  ;;  %5347 = vmatprep.subr.bf16.mxu1 %v8267_v62  ;;  %v8274_v63 = vld [vmem:[#allocation11 + $0x788] ss:$24 sps:$4 sm:$0xff]  }
 0x3d6   :  { %v9633_v56 = vpack.c.bf16 %v2440_v25, %v2436_v17  ;;  %5205 = vmatmul.mubr.bf16.gmra.mrb[44].mxu1 %v9258_v35 }
 0x3d7   :  { %v9636_v29 = vpack.c.bf16 %v2442_v51, %v2438_v48  ;;  %5214 = vmatprep.mubr.bf16.mxu1 %v9282_v40  ;;  %4787 = vmatpush1.bf16.msra.mxu0 %v8259_v0  ;;  %v8277_v51 = vld [vmem:[#allocation11 + $0x7b8] ss:$24 sps:$4 sm:$0xff]  }
 0x3d8   :  { %5348 = vmatpush1.bf16.msra.mxu1 %v8265_v59  ;;  %5528 = vmatprep.subr.bf16.mxu0 %v8273_v53 }
 0x3d9   :  { %v2445_v49 = vpop.f32.mrb[4].mxu1  ;;  %5349 = vmatprep.subr.bf16.mxu1 %v8270_v36  ;;  %v8279_v36 = vld [vmem:[#allocation11 + $0x7bc] ss:$24 sps:$4 sm:$0xff]  }
 0x3da   :  { %v2447_v44 = vpop.f32.mrb[5].mxu1  ;;  %4676 = vmatmul.mubr.bf16.gmra.mrb[128].mxu0 %v9372_v50  ;;  %v2446_v55 = vadd.f32 %v2445_v49, %v9524_v19 }
 0x3db   :  { %v2449_v62 = vpop.f32.mrb[6].mxu1  ;;  %4685 = vmatprep.mubr.bf16.mxu0 %v9397_v27  ;;  %v2448_v0 = vadd.f32 %v2447_v44, %v9529_v8 }
 0x3dc   :  { %v2450_v17 = vadd.f32 %v2449_v62, %v9524_v19  ;;  %v2451_v25 = vpop.f32.mrb[7].mxu1  ;;  %5350 = vmatpush1.bf16.msra.mxu1 %v8268_v33  ;;  %v8285_v33 = vld [vmem:[#allocation11 + $0x7ec] ss:$24 sps:$4 sm:$0xff]  }
 0x3dd   :  { %v2452_v59 = vadd.f32 %v2451_v25, %v9529_v8  ;;  %5351 = vmatprep.subr.bf16.mxu1 %v8276_v11  ;;  %v8283_v25 = vld [vmem:[#allocation11 + $0x7e8] ss:$24 sps:$4 sm:$0xff]  }
 0x3de   :  { %v9645_v53 = vpack.c.bf16 %v2450_v17, %v2446_v55  ;;  %5215 = vmatmul.mubr.bf16.gmra.mrb[48].mxu1 %v9278_v26 }
 0x3df   :  { %v9648_v48 = vpack.c.bf16 %v2452_v59, %v2448_v0  ;;  %5224 = vmatprep.mubr.bf16.mxu1 %v9302_v10  ;;  %v8288_v59 = vld [vmem:[#allocation11 + $0x81c] ss:$24 sps:$4 sm:$0xff]  }
 0x3e0   :  { %5352 = vmatpush1.bf16.msra.mxu1 %v8274_v63 }
 0x3e1   :  { %v2455_v49 = vpop.f32.mrb[8].mxu1  ;;  %5353 = vmatprep.subr.bf16.mxu1 %v8279_v36 }
 0x3e2   :  { %v2457_v62 = vpop.f32.mrb[9].mxu1  ;;  %4686 = vmatmul.mubr.bf16.gmra.mrb[132].mxu0 %v9392_v16  ;;  %v2456_v11 = vadd.f32 %v2455_v49, %v9524_v19  ;;  %v8286_v49 = vld [vmem:[#allocation11 + $0x818] ss:$24 sps:$4 sm:$0xff]  }
 0x3e3   :  { %v2459_v44 = vpop.f32.mrb[10].mxu1  ;;  %4695 = vmatprep.mubr.bf16.mxu0 %v9417_v1  ;;  %v2458_v0 = vadd.f32 %v2457_v62, %v9529_v8 }
 0x3e4   :  { %v2460_v55 = vadd.f32 %v2459_v44, %v9524_v19  ;;  %v2461_v17 = vpop.f32.mrb[11].mxu1  ;;  %5354 = vmatpush1.bf16.msra.mxu1 %v8277_v51  ;;  %v8294_v51 = vld [vmem:[#allocation11 + $0x84c] ss:$24 sps:$4 sm:$0xff]  }
 0x3e5   :  { %v2462_v63 = vadd.f32 %v2461_v17, %v9529_v8  ;;  %5355 = vmatprep.subr.bf16.mxu1 %v8285_v33  ;;  %v8292_v17 = vld [vmem:[#allocation11 + $0x848] ss:$24 sps:$4 sm:$0xff]  }
 0x3e6   :  { %v9657_v36 = vpack.c.bf16 %v2460_v55, %v2456_v11  ;;  %5225 = vmatmul.mubr.bf16.gmra.mrb[52].mxu1 %v9298_v61 }
 0x3e7   :  { %v9660_v10 = vpack.c.bf16 %v2462_v63, %v2458_v0  ;;  %5234 = vmatprep.mubr.bf16.mxu1 %v9322_v34  ;;  %v8297_v63 = vld [vmem:[#allocation11 + $0x87c] ss:$24 sps:$4 sm:$0xff]  }
 0x3e8   :  { %5356 = vmatpush1.bf16.msra.mxu1 %v8283_v25 }
 0x3e9   :  { %v2465_v44 = vpop.f32.mrb[12].mxu1  ;;  %5357 = vmatprep.subr.bf16.mxu1 %v8288_v59 }
 0x3ea   :  { %v2467_v26 = vpop.f32.mrb[13].mxu1  ;;  %4696 = vmatmul.mubr.bf16.gmra.mrb[136].mxu0 %v9412_v57  ;;  %v2466_v33 = vadd.f32 %v2465_v44, %v9524_v19  ;;  %v8295_v44 = vld [vmem:[#allocation11 + $0x878] ss:$24 sps:$4 sm:$0xff]  }
 0x3eb   :  { %v2469_v62 = vpop.f32.mrb[14].mxu1  ;;  %4705 = vmatprep.mubr.bf16.mxu0 %v9437_v6  ;;  %v2468_v0 = vadd.f32 %v2467_v26, %v9529_v8 }
 0x3ec   :  { %v2470_v11 = vadd.f32 %v2469_v62, %v9524_v19  ;;  %v2471_v55 = vpop.f32.mrb[15].mxu1  ;;  %5358 = vmatpush1.bf16.msra.mxu1 %v8286_v49  ;;  %v8303_v49 = vld [vmem:[#allocation11 + $0x8ac] ss:$24 sps:$4 sm:$0xff]  }
 0x3ed   :  { %v2472_v25 = vadd.f32 %v2471_v55, %v9529_v8  ;;  %5359 = vmatprep.subr.bf16.mxu1 %v8294_v51  ;;  %v8301_v55 = vld [vmem:[#allocation11 + $0x8a8] ss:$24 sps:$4 sm:$0xff]  }
 0x3ee   :  { %v9669_v59 = vpack.c.bf16 %v2470_v11, %v2466_v33  ;;  %5235 = vmatmul.mubr.bf16.gmra.mrb[56].mxu1 %v9318_v37 }
 0x3ef   :  { %v9672_v34 = vpack.c.bf16 %v2472_v25, %v2468_v0  ;;  %5244 = vmatprep.mubr.bf16.mxu1 %v9342_v39  ;;  %v8306_v25 = vld [vmem:[#allocation11 + $0x8dc] ss:$24 sps:$4 sm:$0xff]  }
 0x3f0   :  { %5360 = vmatpush1.bf16.msra.mxu1 %v8292_v17 }
 0x3f1   :  { %v2475_v62 = vpop.f32.mrb[16].mxu1  ;;  %5361 = vmatprep.subr.bf16.mxu1 %v8297_v63 }
 0x3f2   :  { %v2477_v61 = vpop.f32.mrb[17].mxu1  ;;  %4706 = vmatmul.mubr.bf16.gmra.mrb[140].mxu0 %v9432_v30  ;;  %v2476_v51 = vadd.f32 %v2475_v62, %v9524_v19  ;;  %v8304_v62 = vld [vmem:[#allocation11 + $0x8d8] ss:$24 sps:$4 sm:$0xff]  }
 0x3f3   :  { %v2479_v26 = vpop.f32.mrb[18].mxu1  ;;  %4715 = vmatprep.mubr.bf16.mxu0 %v9457_v20  ;;  %v2478_v0 = vadd.f32 %v2477_v61, %v9529_v8 }
 0x3f4   :  { %v2480_v33 = vadd.f32 %v2479_v26, %v9524_v19  ;;  %v2481_v11 = vpop.f32.mrb[19].mxu1  ;;  %5362 = vmatpush1.bf16.msra.mxu1 %v8295_v44 }
 0x3f5   :  { %v2482_v17 = vadd.f32 %v2481_v11, %v9529_v8  ;;  %5363 = vmatprep.subr.bf16.mxu1 %v8303_v49 }
 0x3f6   :  { %v9681_v63 = vpack.c.bf16 %v2480_v33, %v2476_v51  ;;  %5245 = vmatmul.mubr.bf16.gmra.mrb[60].mxu1 %v9338_v2 }
 0x3f7   :  { %v9684_v39 = vpack.c.bf16 %v2482_v17, %v2478_v0  ;;  %5254 = vmatprep.mubr.bf16.mxu1 %v9377_v41 }
 0x3f8   :  { %5364 = vmatpush1.bf16.msra.mxu1 %v8301_v55 }
 0x3f9   :  { %v2485_v26 = vpop.f32.mrb[20].mxu1  ;;  %5365 = vmatprep.subr.bf16.mxu1 %v8306_v25 }
 0x3fa   :  { %v2487_v44 = vpop.f32.mrb[21].mxu1  ;;  %4716 = vmatmul.mubr.bf16.gmra.mrb[144].mxu0 %v9452_v24  ;;  %v2486_v49 = vadd.f32 %v2485_v26, %v9524_v19 }
 0x3fb   :  { %v2489_v61 = vpop.f32.mrb[22].mxu1  ;;  %4725 = vmatprep.mubr.bf16.mxu0 %v9477_v13  ;;  %v2488_v11 = vadd.f32 %v2487_v44, %v9529_v8 }
 0x3fc   :  { %v2490_v51 = vadd.f32 %v2489_v61, %v9524_v19  ;;  %v2491_v33 = vpop.f32.mrb[23].mxu1  ;;  %5366 = vmatpush1.bf16.msra.mxu1 %v8304_v62 }
 0x3fd   :  { %v2492_v0 = vadd.f32 %v2491_v33, %v9529_v8 }
 0x3fe   :  { %v9693_v55 = vpack.c.bf16 %v2490_v51, %v2486_v49  ;;  %5255 = vmatmul.mubr.bf16.gmra.mrb[64].mxu1 %v9372_v50 }
 0x3ff   :  { %v9696_v17 = vpack.c.bf16 %v2492_v0, %v2488_v11  ;;  %5264 = vmatprep.mubr.bf16.mxu1 %v9397_v27 }
 0x400   :  { %10242 = vst [vmem:[#allocation64_spill] sm:$0xff] %v9693_v55 }
 0x401   :  { %v2495_v25 = vpop.f32.mrb[24].mxu1 }
 0x402   :  { %v2497_v41 = vpop.f32.mrb[25].mxu1  ;;  %4726 = vmatmul.mubr.bf16.gmra.mrb[148].mxu0 %v9472_v21  ;;  %v2496_v62 = vadd.f32 %v2495_v25, %v9524_v19 }
 0x403   :  { %v2499_v26 = vpop.f32.mrb[26].mxu1  ;;  %4735 = vmatprep.mubr.bf16.mxu0 %v9497_v60  ;;  %v2498_v49 = vadd.f32 %v2497_v41, %v9529_v8 }
 0x404   :  { %v2500_v44 = vadd.f32 %v2499_v26, %v9524_v19  ;;  %v2501_v61 = vpop.f32.mrb[27].mxu1 }
 0x405   :  { %v2502_v51 = vadd.f32 %v2501_v61, %v9529_v8 }
 0x406   :  { %v9705_v33 = vpack.c.bf16 %v2500_v44, %v2496_v62  ;;  %5265 = vmatmul.mubr.bf16.gmra.mrb[68].mxu1 %v9392_v16 }
 0x407   :  { %v9708_v11 = vpack.c.bf16 %v2502_v51, %v2498_v49  ;;  %5274 = vmatprep.mubr.bf16.mxu1 %v9417_v1 }
 0x408   :  { %10243 = vst [vmem:[#allocation65_spill] sm:$0xff] %v9705_v33 }
 0x409   :  { %10244 = vst [vmem:[#allocation66_spill] sm:$0xff] %v9708_v11  ;;  %v2505_v0 = vpop.f32.mrb[28].mxu1 }
 0x40a   :  { %v2507_v27 = vpop.f32.mrb[29].mxu1  ;;  %4736 = vmatmul.mubr.bf16.gmra.mrb[152].mxu0 %v9492_v9  ;;  %v2506_v26 = vadd.f32 %v2505_v0, %v9524_v19  ;;  %v8291_v0 = vld [vmem:[#allocation11 + $0x74] ss:$24 sps:$4 sm:$0xff]  }
 0x40b   :  { %v2509_v25 = vpop.f32.mrb[30].mxu1  ;;  %4745 = vmatprep.mubr.bf16.mxu0 %v9519_v43  ;;  %v2508_v62 = vadd.f32 %v2507_v27, %v9529_v8  ;;  %v8282_v27 = vld [vmem:[#allocation11 + $0x44] ss:$24 sps:$4 sm:$0xff]  }
 0x40c   :  { %v2510_v41 = vadd.f32 %v2509_v25, %v9524_v19  ;;  %v2511_v61 = vpop.f32.mrb[31].mxu1  ;;  %v8271_v19 = vld [vmem:[#allocation11 + $0x10] ss:$24 sps:$4 sm:$0xff]  }
 0x40d   :  { %v2512_v44 = vadd.f32 %v2511_v61, %v9529_v8  ;;  %v8280_v8 = vld [vmem:[#allocation11 + $0x40] ss:$24 sps:$4 sm:$0xff]   ;;  %v8289_v25 = vld [vmem:[#allocation11 + $0x70] ss:$24 sps:$4 sm:$0xff]   ;;  %v8309_v61 = vld [vmem:[#allocation11 + $0xd4] ss:$24 sps:$4 sm:$0xff]  }
 0x40e   :  { %v9717_v49 = vpack.c.bf16 %v2510_v41, %v2506_v26  ;;  %5275 = vmatmul.mubr.bf16.gmra.mrb[72].mxu1 %v9412_v57  ;;  %v8300_v26 = vld [vmem:[#allocation11 + $0xa4] ss:$24 sps:$4 sm:$0xff]   ;;  %v8298_v41 = vld [vmem:[#allocation11 + $0xa0] ss:$24 sps:$4 sm:$0xff]  }
 0x40f   :  { %v9720_v51 = vpack.c.bf16 %v2512_v44, %v2508_v62  ;;  %5284 = vmatprep.mubr.bf16.mxu1 %v9437_v6  ;;  %v8307_v62 = vld [vmem:[#allocation11 + $0xd0] ss:$24 sps:$4 sm:$0xff]   ;;  %v8312_v44 = vld [vmem:[#allocation11 + $0x104] ss:$24 sps:$4 sm:$0xff]  }
 0x410   :  { %10245 = vst [vmem:[#allocation67_spill] sm:$0xff] %v9717_v49 }
 0x411   :  { %10246 = vst [vmem:[#allocation68_spill] sm:$0xff] %v9720_v51 }
 0x412   :  { %4746 = vmatmul.mubr.bf16.gmra.mrb[156].mxu0 %v9514_v3 }
 0x413   :  { %4788 = vmatprep.mubr.bf16.mxu0 %v9540_v52 }
 0x416   :  { %5285 = vmatmul.mubr.bf16.gmra.mrb[76].mxu1 %v9432_v30 }
 0x417   :  { %5294 = vmatprep.mubr.bf16.mxu1 %v9457_v20 }
 0x41a   :  { %4789 = vmatmul.mubr.bf16.vlgmr.msra.gmra.mrb[96].mxu0 %v9537_v7 }
 0x41b   :  { %4798 = vmatprep.mubr.bf16.mxu0 %v9552_v58  ;;  %5529 = vmatpush1.bf16.msra.mxu0 %v8271_v19  ;;  %v8310_v19 = vld [vmem:[#allocation11 + $0x100] ss:$24 sps:$4 sm:$0xff]  }
 0x41c   :  { %5530 = vmatprep.subr.bf16.mxu0 %v8282_v27  ;;  %v8315_v27 = vld [vmem:[#allocation11 + $0x134] ss:$24 sps:$4 sm:$0xff]  }
 0x41e   :  { %5295 = vmatmul.mubr.bf16.gmra.mrb[80].mxu1 %v9452_v24 }
 0x41f   :  { %5304 = vmatprep.mubr.bf16.mxu1 %v9477_v13  ;;  %5531 = vmatpush1.bf16.msra.mxu0 %v8280_v8  ;;  %v8313_v8 = vld [vmem:[#allocation11 + $0x130] ss:$24 sps:$4 sm:$0xff]  }
 0x420   :  { %5532 = vmatprep.subr.bf16.mxu0 %v8291_v0  ;;  %v8318_v0 = vld [vmem:[#allocation11 + $0x164] ss:$24 sps:$4 sm:$0xff]  }
 0x422   :  { %4799 = vmatmul.mubr.bf16.gmra.mrb[100].mxu0 %v9549_v46 }
 0x423   :  { %4808 = vmatprep.mubr.bf16.mxu0 %v9564_v32  ;;  %5533 = vmatpush1.bf16.msra.mxu0 %v8289_v25  ;;  %v8316_v25 = vld [vmem:[#allocation11 + $0x160] ss:$24 sps:$4 sm:$0xff]  }
 0x424   :  { %5534 = vmatprep.subr.bf16.mxu0 %v8300_v26  ;;  %v8321_v26 = vld [vmem:[#allocation11 + $0x194] ss:$24 sps:$4 sm:$0xff]  }
 0x426   :  { %5305 = vmatmul.mubr.bf16.gmra.mrb[84].mxu1 %v9472_v21 }
 0x427   :  { %5314 = vmatprep.mubr.bf16.mxu1 %v9497_v60  ;;  %5535 = vmatpush1.bf16.msra.mxu0 %v8298_v41  ;;  %v8319_v41 = vld [vmem:[#allocation11 + $0x190] ss:$24 sps:$4 sm:$0xff]  }
 0x428   :  { %5536 = vmatprep.subr.bf16.mxu0 %v8309_v61  ;;  %v8324_v61 = vld [vmem:[#allocation11 + $0x1c4] ss:$24 sps:$4 sm:$0xff]  }
 0x42a   :  { %4809 = vmatmul.mubr.bf16.gmra.mrb[104].mxu0 %v9561_v14 }
 0x42b   :  { %4818 = vmatprep.mubr.bf16.mxu0 %v9576_v54  ;;  %5537 = vmatpush1.bf16.msra.mxu0 %v8307_v62  ;;  %v8322_v62 = vld [vmem:[#allocation11 + $0x1c0] ss:$24 sps:$4 sm:$0xff]  }
 0x42c   :  { %5538 = vmatprep.subr.bf16.mxu0 %v8312_v44  ;;  %v8327_v44 = vld [vmem:[#allocation11 + $0x1f4] ss:$24 sps:$4 sm:$0xff]  }
 0x42e   :  { %5315 = vmatmul.mubr.bf16.gmra.mrb[88].mxu1 %v9492_v9 }
 0x42f   :  { %5324 = vmatprep.mubr.bf16.mxu1 %v9519_v43  ;;  %5539 = vmatpush1.bf16.msra.mxu0 %v8310_v19  ;;  %v8325_v19 = vld [vmem:[#allocation11 + $0x1f0] ss:$24 sps:$4 sm:$0xff]  }
 0x430   :  { %5540 = vmatprep.subr.bf16.mxu0 %v8315_v27  ;;  %v8330_v27 = vld [vmem:[#allocation11 + $0x224] ss:$24 sps:$4 sm:$0xff]  }
 0x432   :  { %4819 = vmatmul.mubr.bf16.gmra.mrb[108].mxu0 %v9573_v12 }
 0x433   :  { %4828 = vmatprep.mubr.bf16.mxu0 %v9588_v4  ;;  %5541 = vmatpush1.bf16.msra.mxu0 %v8313_v8  ;;  %v8328_v8 = vld [vmem:[#allocation11 + $0x220] ss:$24 sps:$4 sm:$0xff]  }
 0x434   :  { %5542 = vmatprep.subr.bf16.mxu0 %v8318_v0  ;;  %v8333_v0 = vld [vmem:[#allocation11 + $0x254] ss:$24 sps:$4 sm:$0xff]  }
 0x436   :  { %5325 = vmatmul.mubr.bf16.gmra.mrb[92].mxu1 %v9514_v3 }
 0x437   :  { %5367 = vmatprep.mubr.bf16.mxu1 %v9540_v52  ;;  %5543 = vmatpush1.bf16.msra.mxu0 %v8316_v25  ;;  %v8331_v25 = vld [vmem:[#allocation11 + $0x250] ss:$24 sps:$4 sm:$0xff]  }
 0x438   :  { %5544 = vmatprep.subr.bf16.mxu0 %v8321_v26  ;;  %v8336_v26 = vld [vmem:[#allocation11 + $0x284] ss:$24 sps:$4 sm:$0xff]  }
 0x43a   :  { %4829 = vmatmul.mubr.bf16.gmra.mrb[112].mxu0 %v9585_v28 }
 0x43b   :  { %4838 = vmatprep.mubr.bf16.mxu0 %v9600_v18  ;;  %5545 = vmatpush1.bf16.msra.mxu0 %v8319_v41  ;;  %v8334_v41 = vld [vmem:[#allocation11 + $0x280] ss:$24 sps:$4 sm:$0xff]  }
 0x43c   :  { %5546 = vmatprep.subr.bf16.mxu0 %v8324_v61  ;;  %v8339_v61 = vld [vmem:[#allocation11 + $0x2b4] ss:$24 sps:$4 sm:$0xff]  }
 0x43e   :  { %5368 = vmatmul.mubr.bf16.vlgmr.msra.gmra.mrb[32].mxu1 %v9537_v7 }
 0x43f   :  { %5377 = vmatprep.mubr.bf16.mxu1 %v9552_v58  ;;  %5547 = vmatpush1.bf16.msra.mxu0 %v8322_v62  ;;  %v8337_v62 = vld [vmem:[#allocation11 + $0x2b0] ss:$24 sps:$4 sm:$0xff]  }
 0x440   :  { %5548 = vmatprep.subr.bf16.mxu0 %v8327_v44  ;;  %v8342_v44 = vld [vmem:[#allocation11 + $0x2e4] ss:$24 sps:$4 sm:$0xff]  }
 0x442   :  { %4839 = vmatmul.mubr.bf16.gmra.mrb[116].mxu0 %v9597_v47 }
 0x443   :  { %4848 = vmatprep.mubr.bf16.mxu0 %v9612_v23  ;;  %5549 = vmatpush1.bf16.msra.mxu0 %v8325_v19  ;;  %v8340_v19 = vld [vmem:[#allocation11 + $0x2e0] ss:$24 sps:$4 sm:$0xff]  }
 0x444   :  { %5550 = vmatprep.subr.bf16.mxu0 %v8330_v27  ;;  %v8345_v27 = vld [vmem:[#allocation11 + $0x314] ss:$24 sps:$4 sm:$0xff]  }
 0x446   :  { %5378 = vmatmul.mubr.bf16.gmra.mrb[36].mxu1 %v9549_v46 }
 0x447   :  { %5387 = vmatprep.mubr.bf16.mxu1 %v9564_v32  ;;  %5551 = vmatpush1.bf16.msra.mxu0 %v8328_v8  ;;  %v8343_v8 = vld [vmem:[#allocation11 + $0x310] ss:$24 sps:$4 sm:$0xff]  }
 0x448   :  { %5552 = vmatprep.subr.bf16.mxu0 %v8333_v0  ;;  %v8348_v0 = vld [vmem:[#allocation11 + $0x344] ss:$24 sps:$4 sm:$0xff]  }
 0x44a   :  { %4849 = vmatmul.mubr.bf16.gmra.mrb[120].mxu0 %v9609_v42 }
 0x44b   :  { %4858 = vmatprep.mubr.bf16.mxu0 %v9624_v38  ;;  %5553 = vmatpush1.bf16.msra.mxu0 %v8331_v25  ;;  %v10247_v25 = vld [vmem:[#allocation25_spill] sm:$0xff] }
 0x44c   :  { %5554 = vmatprep.subr.bf16.mxu0 %v8336_v26  ;;  %v8346_v26 = vld [vmem:[#allocation11 + $0x340] ss:$24 sps:$4 sm:$0xff]  }
 0x44e   :  { %5388 = vmatmul.mubr.bf16.gmra.mrb[40].mxu1 %v9561_v14 }
 0x44f   :  { %5397 = vmatprep.mubr.bf16.mxu1 %v9576_v54  ;;  %5555 = vmatpush1.bf16.msra.mxu0 %v8334_v41  ;;  %v8351_v41 = vld [vmem:[#allocation11 + $0x374] ss:$24 sps:$4 sm:$0xff]  }
 0x450   :  { %5556 = vmatprep.subr.bf16.mxu0 %v8339_v61  ;;  %v8354_v61 = vld [vmem:[#allocation11 + $0x3a4] ss:$24 sps:$4 sm:$0xff]  }
 0x452   :  { %4859 = vmatmul.mubr.bf16.gmra.mrb[124].mxu0 %v9621_v22 }
 0x453   :  { %4868 = vmatprep.mubr.bf16.mxu0 %v9636_v29  ;;  %5557 = vmatpush1.bf16.msra.mxu0 %v8337_v62  ;;  %v10248_v62 = vld [vmem:[#allocation23_spill] sm:$0xff] }
 0x454   :  { %5558 = vmatprep.subr.bf16.mxu0 %v8342_v44  ;;  %v10249_v44 = vld [vmem:[#allocation29_spill] sm:$0xff] }
 0x456   :  { %5398 = vmatmul.mubr.bf16.gmra.mrb[44].mxu1 %v9573_v12 }
 0x457   :  { %5407 = vmatprep.mubr.bf16.mxu1 %v9588_v4  ;;  %5559 = vmatpush1.bf16.msra.mxu0 %v8340_v19  ;;  %v8357_v19 = vld [vmem:[#allocation11 + $0x3d4] ss:$24 sps:$4 sm:$0xff]  }
 0x458   :  { %5721 = vmatprep.subr.bf16.mxu0 %v8345_v27  ;;  %v8355_v27 = vld [vmem:[#allocation11 + $0x3d0] ss:$24 sps:$4 sm:$0xff]  }
 0x45a   :  { %4869 = vmatmul.mubr.bf16.gmra.mrb[128].mxu0 %v9633_v56 }
 0x45b   :  { %4878 = vmatprep.mubr.bf16.mxu0 %v9648_v48 }
 0x45e   :  { %5408 = vmatmul.mubr.bf16.gmra.mrb[48].mxu1 %v9585_v28 }
 0x45f   :  { %5417 = vmatprep.mubr.bf16.mxu1 %v9600_v18 }
 0x462   :  { %4879 = vmatmul.mubr.bf16.gmra.mrb[132].mxu0 %v9645_v53 }
 0x463   :  { %4888 = vmatprep.mubr.bf16.mxu0 %v9660_v10 }
 0x466   :  { %5418 = vmatmul.mubr.bf16.gmra.mrb[52].mxu1 %v9597_v47 }
 0x467   :  { %5427 = vmatprep.mubr.bf16.mxu1 %v9612_v23 }
 0x46a   :  { %4889 = vmatmul.mubr.bf16.gmra.mrb[136].mxu0 %v9657_v36 }
 0x46b   :  { %4898 = vmatprep.mubr.bf16.mxu0 %v9672_v34 }
 0x46e   :  { %5428 = vmatmul.mubr.bf16.gmra.mrb[56].mxu1 %v9609_v42 }
 0x46f   :  { %5437 = vmatprep.mubr.bf16.mxu1 %v9624_v38 }
 0x472   :  { %4899 = vmatmul.mubr.bf16.gmra.mrb[140].mxu0 %v9669_v59 }
 0x473   :  { %4908 = vmatprep.mubr.bf16.mxu0 %v9684_v39 }
 0x476   :  { %5438 = vmatmul.mubr.bf16.gmra.mrb[60].mxu1 %v9621_v22 }
 0x477   :  { %5447 = vmatprep.mubr.bf16.mxu1 %v9636_v29 }
 0x47a   :  { %4909 = vmatmul.mubr.bf16.gmra.mrb[144].mxu0 %v9681_v63 }
 0x47b   :  { %4918 = vmatprep.mubr.bf16.mxu0 %v9696_v17 }
 0x47e   :  { %5448 = vmatmul.mubr.bf16.gmra.mrb[64].mxu1 %v9633_v56 }
 0x47f   :  { %5457 = vmatprep.mubr.bf16.mxu1 %v9648_v48 }
 0x482   :  { %4919 = vmatmul.mubr.bf16.gmra.mrb[148].mxu0 %v9693_v55 }
 0x483   :  { %4928 = vmatprep.mubr.bf16.mxu0 %v9708_v11 }
 0x486   :  { %5458 = vmatmul.mubr.bf16.gmra.mrb[68].mxu1 %v9645_v53 }
 0x487   :  { %5467 = vmatprep.mubr.bf16.mxu1 %v9660_v10 }
 0x48a   :  { %4929 = vmatmul.mubr.bf16.gmra.mrb[152].mxu0 %v9705_v33 }
 0x48b   :  { %4938 = vmatprep.mubr.bf16.mxu0 %v9720_v51 }
 0x48e   :  { %5468 = vmatmul.mubr.bf16.gmra.mrb[72].mxu1 %v9657_v36 }
 0x48f   :  { %5477 = vmatprep.mubr.bf16.mxu1 %v9672_v34 }
 0x492   :  { %4939 = vmatmul.mubr.bf16.gmra.mrb[156].mxu0 %v9717_v49 }
 0x493   :  { %5560 = vmatprep.mubr.bf16.mxu0 %v9200_v31  ;;  %v8349_v31 = vld [vmem:[#allocation11 + $0x370] ss:$24 sps:$4 sm:$0xff]  }
 0x496   :  { %5478 = vmatmul.mubr.bf16.gmra.mrb[76].mxu1 %v9669_v59 }
 0x497   :  { %5487 = vmatprep.mubr.bf16.mxu1 %v9684_v39 }
 0x49a   :  { %5561 = vmatmul.mubr.bf16.vlgmr.msra.gmra.mrb[160].mxu0 %v9196_v15  ;;  %v8352_v15 = vld [vmem:[#allocation11 + $0x3a0] ss:$24 sps:$4 sm:$0xff]  }
 0x49b   :  { %5570 = vmatprep.mubr.bf16.mxu0 %v10247_v25  ;;  %5722 = vmatpush1.bf16.msra.mxu0 %v8343_v8  ;;  %v8360_v8 = vld [vmem:[#allocation11 + $0x404] ss:$24 sps:$4 sm:$0xff]  }
 0x49c   :  { %5723 = vmatprep.subr.bf16.mxu0 %v8348_v0  ;;  %v10250_v0 = vld [vmem:[#allocation27_spill] sm:$0xff]  ;;  %v10251_v25 = vld [vmem:[#allocation32_spill] sm:$0xff] }
 0x49e   :  { %5488 = vmatmul.mubr.bf16.gmra.mrb[80].mxu1 %v9681_v63 }
 0x49f   :  { %5497 = vmatprep.mubr.bf16.mxu1 %v9696_v17  ;;  %5724 = vmatpush1.bf16.msra.mxu0 %v8346_v26  ;;  %v8358_v26 = vld [vmem:[#allocation11 + $0x400] ss:$24 sps:$4 sm:$0xff]  }
 0x4a0   :  { %5725 = vmatprep.subr.bf16.mxu0 %v8351_v41  ;;  %v8363_v41 = vld [vmem:[#allocation11 + $0x434] ss:$24 sps:$4 sm:$0xff]  }
 0x4a2   :  { %5571 = vmatmul.mubr.bf16.gmra.mrb[164].mxu0 %v10248_v62  ;;  %v10252_v62 = vld [vmem:[#allocation31_spill] sm:$0xff] }
 0x4a3   :  { %5580 = vmatprep.mubr.bf16.mxu0 %v10249_v44  ;;  %5726 = vmatpush1.bf16.msra.mxu0 %v8349_v31  ;;  %v8361_v31 = vld [vmem:[#allocation11 + $0x430] ss:$24 sps:$4 sm:$0xff]  }
 0x4a4   :  { %5727 = vmatprep.subr.bf16.mxu0 %v8354_v61  ;;  %v8366_v61 = vld [vmem:[#allocation11 + $0x464] ss:$24 sps:$4 sm:$0xff]  }
 0x4a5   :  { %v10253_v44 = vld [vmem:[#allocation36_spill] sm:$0xff] }
 0x4a6   :  { %5498 = vmatmul.mubr.bf16.gmra.mrb[84].mxu1 %v9693_v55  ;;  %v10282_v55 = vld [vmem:[#allocation26_spill] sm:$0xff] }
 0x4a7   :  { %5507 = vmatprep.mubr.bf16.mxu1 %v9708_v11  ;;  %5728 = vmatpush1.bf16.msra.mxu0 %v8352_v15  ;;  %v8364_v15 = vld [vmem:[#allocation11 + $0x460] ss:$24 sps:$4 sm:$0xff]  }
 0x4a8   :  { %5729 = vmatprep.subr.bf16.mxu0 %v8357_v19  ;;  %v8369_v19 = vld [vmem:[#allocation11 + $0x494] ss:$24 sps:$4 sm:$0xff]  }
 0x4a9   :  { %v10279_v11 = vld [vmem:[#allocation62_spill] sm:$0xff] }
 0x4aa   :  { %5581 = vmatmul.mubr.bf16.gmra.mrb[168].mxu0 %v10250_v0  ;;  %v10254_v0 = vld [vmem:[#allocation34_spill] sm:$0xff] }
 0x4ab   :  { %5590 = vmatprep.mubr.bf16.mxu0 %v10251_v25  ;;  %5730 = vmatpush1.bf16.msra.mxu0 %v8355_v27  ;;  %v8367_v27 = vld [vmem:[#allocation11 + $0x490] ss:$24 sps:$4 sm:$0xff]   ;;  %v10255_v25 = vld [vmem:[#allocation39_spill] sm:$0xff] }
 0x4ac   :  { %5731 = vmatprep.subr.bf16.mxu0 %v8360_v8  ;;  %v8372_v8 = vld [vmem:[#allocation11 + $0x4c4] ss:$24 sps:$4 sm:$0xff]  }
 0x4ae   :  { %5508 = vmatmul.mubr.bf16.gmra.mrb[88].mxu1 %v9705_v33 }
 0x4af   :  { %5517 = vmatprep.mubr.bf16.mxu1 %v9720_v51  ;;  %5732 = vmatpush1.bf16.msra.mxu0 %v8358_v26  ;;  %v8370_v26 = vld [vmem:[#allocation11 + $0x4c0] ss:$24 sps:$4 sm:$0xff]  }
 0x4b0   :  { %5733 = vmatprep.subr.bf16.mxu0 %v8363_v41  ;;  %v8375_v41 = vld [vmem:[#allocation11 + $0x4f4] ss:$24 sps:$4 sm:$0xff]  }
 0x4b2   :  { %5591 = vmatmul.mubr.bf16.gmra.mrb[172].mxu0 %v10252_v62  ;;  %v8373_v62 = vld [vmem:[#allocation11 + $0x4f0] ss:$24 sps:$4 sm:$0xff]  }
 0x4b3   :  { %5600 = vmatprep.mubr.bf16.mxu0 %v10253_v44  ;;  %5734 = vmatpush1.bf16.msra.mxu0 %v8361_v31  ;;  %v8378_v31 = vld [vmem:[#allocation11 + $0x524] ss:$24 sps:$4 sm:$0xff]  }
 0x4b4   :  { %5735 = vmatprep.subr.bf16.mxu0 %v8366_v61  ;;  %v10256_v61 = vld [vmem:[#allocation37_spill] sm:$0xff]  ;;  %v10257_v44 = vld [vmem:[#allocation42_spill] sm:$0xff] }
 0x4b6   :  { %5518 = vmatmul.mubr.bf16.gmra.mrb[92].mxu1 %v9717_v49 }
 0x4b7   :  { %5736 = vmatpush1.bf16.msra.mxu0 %v8364_v15  ;;  %v8376_v15 = vld [vmem:[#allocation11 + $0x520] ss:$24 sps:$4 sm:$0xff]  }
 0x4b8   :  { %5737 = vmatprep.subr.bf16.mxu0 %v8369_v19  ;;  %v8381_v19 = vld [vmem:[#allocation11 + $0x554] ss:$24 sps:$4 sm:$0xff]  }
 0x4ba   :  { %5601 = vmatmul.mubr.bf16.gmra.mrb[176].mxu0 %v10254_v0  ;;  %v8379_v0 = vld [vmem:[#allocation11 + $0x550] ss:$24 sps:$4 sm:$0xff]  }
 0x4bb   :  { %5610 = vmatprep.mubr.bf16.mxu0 %v10255_v25  ;;  %5738 = vmatpush1.bf16.msra.mxu0 %v8367_v27  ;;  %v8384_v25 = vld [vmem:[#allocation11 + $0x584] ss:$24 sps:$4 sm:$0xff]   ;;  %v10258_v27 = vld [vmem:[#allocation41_spill] sm:$0xff] }
 0x4bc   :  { %5739 = vmatprep.subr.bf16.mxu0 %v8372_v8  ;;  %v10259_v8 = vld [vmem:[#allocation45_spill] sm:$0xff] }
 0x4bf   :  { %5740 = vmatpush1.bf16.msra.mxu0 %v8370_v26  ;;  %v8382_v26 = vld [vmem:[#allocation11 + $0x580] ss:$24 sps:$4 sm:$0xff]  }
 0x4c0   :  { %5741 = vmatprep.subr.bf16.mxu0 %v8375_v41  ;;  %v8387_v41 = vld [vmem:[#allocation11 + $0x5b4] ss:$24 sps:$4 sm:$0xff]  }
 0x4c2   :  { %5611 = vmatmul.mubr.bf16.gmra.mrb[180].mxu0 %v10256_v61  ;;  %v8385_v61 = vld [vmem:[#allocation11 + $0x5b0] ss:$24 sps:$4 sm:$0xff]  }
 0x4c3   :  { %5620 = vmatprep.mubr.bf16.mxu0 %v10257_v44  ;;  %5742 = vmatpush1.bf16.msra.mxu0 %v8373_v62  ;;  %v8390_v44 = vld [vmem:[#allocation11 + $0x5e4] ss:$24 sps:$4 sm:$0xff]  }
 0x4c4   :  { %5743 = vmatprep.subr.bf16.mxu0 %v8378_v31  ;;  %v10260_v62 = vld [vmem:[#allocation44_spill] sm:$0xff] }
 0x4c5   :  { %v10261_v31 = vld [vmem:[#allocation48_spill] sm:$0xff] }
 0x4c7   :  { %5744 = vmatpush1.bf16.msra.mxu0 %v8376_v15  ;;  %v8388_v15 = vld [vmem:[#allocation11 + $0x5e0] ss:$24 sps:$4 sm:$0xff]  }
 0x4c8   :  { %5745 = vmatprep.subr.bf16.mxu0 %v8381_v19  ;;  %v8393_v19 = vld [vmem:[#allocation11 + $0x614] ss:$24 sps:$4 sm:$0xff]  }
 0x4ca   :  { %5621 = vmatmul.mubr.bf16.gmra.mrb[184].mxu0 %v10258_v27  ;;  %v10262_v27 = vld [vmem:[#allocation47_spill] sm:$0xff] }
 0x4cb   :  { %5630 = vmatprep.mubr.bf16.mxu0 %v10259_v8  ;;  %5746 = vmatpush1.bf16.msra.mxu0 %v8379_v0  ;;  %v10263_v0 = vld [vmem:[#allocation51_spill] sm:$0xff]  ;;  %v10265_v8 = vld [vmem:[#allocation53_spill] sm:$0xff] }
 0x4cc   :  { %5747 = vmatprep.subr.bf16.mxu0 %v8384_v25  ;;  %v10264_v25 = vld [vmem:[#allocation50_spill] sm:$0xff] }
 0x4cf   :  { %5748 = vmatpush1.bf16.msra.mxu0 %v8382_v26  ;;  %v9818_v26 = vld [vmem:[#allocation13] sm:$0x3f] }
 0x4d0   :  { %5749 = vmatprep.subr.bf16.mxu0 %v8387_v41  ;;  %v10266_v41 = vsub.s32 0, %v9162_v45 }
 0x4d2   :  { %5631 = vmatmul.mubr.bf16.gmra.mrb[188].mxu0 %v10260_v62  ;;  %v10268_v62 = vsub.s32 1, %v9162_v45 }
 0x4d3   :  { %5640 = vmatprep.mubr.bf16.mxu0 %v10261_v31  ;;  %5750 = vmatpush1.bf16.msra.mxu0 %v8385_v61  ;;  %v9824_v61 = vrot.slane %v9818_v26, %v10266_v41 }
 0x4d4   :  { %5751 = vmatprep.subr.bf16.mxu0 %v8390_v44  ;;  %v10267_v44 = vld [vmem:[#allocation55_spill] sm:$0xff]  ;;  %v9830_v31 = vrot.slane %v9818_v26, %v10268_v62  ;;  %v10270_v62 = vld [vmem:[#allocation57_spill] sm:$0xff] }
 0x4d7   :  { %5752 = vmatpush1.bf16.msra.mxu0 %v8388_v15 }
 0x4d8   :  { %5914 = vmatprep.subr.bf16.mxu0 %v8393_v19 }
 0x4da   :  { %5641 = vmatmul.mubr.bf16.gmra.mrb[192].mxu0 %v10262_v27 }
 0x4db   :  { %5650 = vmatprep.mubr.bf16.mxu0 %v10263_v0 }
 0x4e2   :  { %5651 = vmatmul.mubr.bf16.gmra.mrb[196].mxu0 %v10264_v25 }
 0x4e3   :  { %5660 = vmatprep.mubr.bf16.mxu0 %v10265_v8 }
 0x4ea   :  { %5661 = vmatmul.mubr.bf16.gmra.mrb[200].mxu0 %v9410_v5 }
 0x4eb   :  { %5670 = vmatprep.mubr.bf16.mxu0 %v10267_v44  ;;  %v10269_v44 = vld [vmem:[#allocation54_spill] sm:$0xff] }
 0x4ed   :  { %v4790_v15 = vpop.f32.mrb[96].mxu0 }
 0x4ee   :  { %v7152_v19 = vadd.f32 %v4790_v15, %v9824_v61  ;;  %v4792_v27 = vpop.f32.mrb[97].mxu0 }
 0x4ef   :  { %v7153_v0 = vadd.f32 %v4792_v27, %v9830_v31  ;;  %v4794_v25 = vpop.f32.mrb[98].mxu0 }
 0x4f0   :  { %6107 = vst [vmem:[#allocation14] sm:$0xff] %v7152_v19  ;;  %v7154_v5 = vadd.f32 %v4794_v25, %v9824_v61  ;;  %v4796_v8 = vpop.f32.mrb[99].mxu0 }
 0x4f1   :  { %6108 = vst [vmem:[#allocation14 + $0x8] sm:$0xff] %v7153_v0  ;;  %v7155_v41 = vadd.f32 %v4796_v8, %v9830_v31  ;;  %v10272_v8 = vld [vmem:[#allocation59_spill] sm:$0xff] }
 0x4f2   :  { %6113 = vst [vmem:[#allocation14 + $0x30] sm:$0xff] %v7154_v5  ;;  %5671 = vmatmul.mubr.bf16.gmra.mrb[204].mxu0 %v10269_v44  ;;  %v10271_v5 = vld [vmem:[#allocation56_spill] sm:$0xff] }
 0x4f3   :  { %6114 = vst [vmem:[#allocation14 + $0x38] sm:$0xff] %v7155_v41  ;;  %5680 = vmatprep.mubr.bf16.mxu0 %v10270_v62 }
 0x4f5   :  { %v4800_v49 = vpop.f32.mrb[100].mxu0 }
 0x4f6   :  { %v7156_v15 = vadd.f32 %v4800_v49, %v9824_v61  ;;  %v4802_v51 = vpop.f32.mrb[101].mxu0 }
 0x4f7   :  { %v7157_v27 = vadd.f32 %v4802_v51, %v9830_v31  ;;  %v4804_v33 = vpop.f32.mrb[102].mxu0 }
 0x4f8   :  { %6119 = vst [vmem:[#allocation14 + $0x60] sm:$0xff] %v7156_v15  ;;  %v7158_v19 = vadd.f32 %v4804_v33, %v9824_v61  ;;  %v4806_v25 = vpop.f32.mrb[103].mxu0 }
 0x4f9   :  { %6120 = vst [vmem:[#allocation14 + $0x68] sm:$0xff] %v7157_v27  ;;  %v7159_v0 = vadd.f32 %v4806_v25, %v9830_v31  ;;  %v10274_v25 = vld [vmem:[#allocation61_spill] sm:$0xff] }
 0x4fa   :  { %6125 = vst [vmem:[#allocation14 + $0x90] sm:$0xff] %v7158_v19  ;;  %5681 = vmatmul.mubr.bf16.gmra.mrb[208].mxu0 %v10271_v5  ;;  %v10273_v19 = vld [vmem:[#allocation58_spill] sm:$0xff] }
 0x4fb   :  { %6126 = vst [vmem:[#allocation14 + $0x98] sm:$0xff] %v7159_v0  ;;  %5690 = vmatprep.mubr.bf16.mxu0 %v10272_v8 }
 0x4fd   :  { %v4810_v41 = vpop.f32.mrb[104].mxu0 }
 0x4fe   :  { %v7160_v49 = vadd.f32 %v4810_v41, %v9824_v61  ;;  %v4812_v44 = vpop.f32.mrb[105].mxu0 }
 0x4ff   :  { %v7161_v51 = vadd.f32 %v4812_v44, %v9830_v31  ;;  %v4814_v62 = vpop.f32.mrb[106].mxu0 }
 0x500   :  { %6131 = vst [vmem:[#allocation14 + $0xc0] sm:$0xff] %v7160_v49  ;;  %v7162_v33 = vadd.f32 %v4814_v62, %v9824_v61  ;;  %v4816_v15 = vpop.f32.mrb[107].mxu0 }
 0x501   :  { %6132 = vst [vmem:[#allocation14 + $0xc8] sm:$0xff] %v7161_v51  ;;  %v7163_v27 = vadd.f32 %v4816_v15, %v9830_v31  ;;  %v10276_v15 = vld [vmem:[#allocation63_spill] sm:$0xff] }
 0x502   :  { %6137 = vst [vmem:[#allocation14 + $0xf0] sm:$0xff] %v7162_v33  ;;  %5691 = vmatmul.mubr.bf16.gmra.mrb[212].mxu0 %v10273_v19  ;;  %v10275_v33 = vld [vmem:[#allocation60_spill] sm:$0xff] }
 0x503   :  { %6138 = vst [vmem:[#allocation14 + $0xf8] sm:$0xff] %v7163_v27  ;;  %5700 = vmatprep.mubr.bf16.mxu0 %v10274_v25 }
 0x505   :  { %v4820_v0 = vpop.f32.mrb[108].mxu0 }
 0x506   :  { %v7164_v5 = vadd.f32 %v4820_v0, %v9824_v61  ;;  %v4822_v8 = vpop.f32.mrb[109].mxu0  ;;  %v10277_v0 = vsub.s32 2, %v9162_v45 }
 0x507   :  { %v7165_v41 = vadd.f32 %v4822_v8, %v9830_v31  ;;  %v4824_v44 = vpop.f32.mrb[110].mxu0 }
 0x508   :  { %6143 = vst [vmem:[#allocation14 + $0x120] sm:$0xff] %v7164_v5  ;;  %v7166_v49 = vadd.f32 %v4824_v44, %v9824_v61  ;;  %v4826_v62 = vpop.f32.mrb[111].mxu0  ;;  %v9860_v5 = vrot.slane %v9818_v26, %v10277_v0  ;;  %v10278_v44 = vsub.s32 3, %v9162_v45 }
 0x509   :  { %6144 = vst [vmem:[#allocation14 + $0x128] sm:$0xff] %v7165_v41  ;;  %v7167_v51 = vadd.f32 %v4826_v62, %v9830_v31 }
 0x50a   :  { %6149 = vst [vmem:[#allocation14 + $0x150] sm:$0xff] %v7166_v49  ;;  %5701 = vmatmul.mubr.bf16.gmra.mrb[216].mxu0 %v10275_v33  ;;  %v9866_v49 = vrot.slane %v9818_v26, %v10278_v44  ;;  %v10280_v26 = vld [vmem:[#allocation22_spill] sm:$0xff] }
 0x50b   :  { %6150 = vst [vmem:[#allocation14 + $0x158] sm:$0xff] %v7167_v51  ;;  %5710 = vmatprep.mubr.bf16.mxu0 %v10276_v15 }
 0x50d   :  { %v4830_v27 = vpop.f32.mrb[112].mxu0 }
 0x50e   :  { %v7168_v19 = vadd.f32 %v4830_v27, %v9824_v61  ;;  %v4832_v25 = vpop.f32.mrb[113].mxu0 }
 0x50f   :  { %v7169_v8 = vadd.f32 %v4832_v25, %v9830_v31  ;;  %v4834_v41 = vpop.f32.mrb[114].mxu0 }
 0x510   :  { %6155 = vst [vmem:[#allocation14 + $0x180] sm:$0xff] %v7168_v19  ;;  %v7170_v62 = vadd.f32 %v4834_v41, %v9824_v61  ;;  %v4836_v51 = vpop.f32.mrb[115].mxu0 }
 0x511   :  { %6156 = vst [vmem:[#allocation14 + $0x188] sm:$0xff] %v7169_v8  ;;  %v7171_v33 = vadd.f32 %v4836_v51, %v9830_v31  ;;  %v5369_v15 = vpop.f32.mrb[32].mxu1 }
 0x512   :  { %6161 = vst [vmem:[#allocation14 + $0x1b0] sm:$0xff] %v7170_v62  ;;  %v7216_v27 = vadd.f32 %v5369_v15, %v9860_v5  ;;  %v5371_v0 = vpop.f32.mrb[33].mxu1  ;;  %5711 = vmatmul.mubr.bf16.gmra.mrb[220].mxu0 %v10279_v11  ;;  %v8391_v15 = vld [vmem:[#allocation11 + $0x610] ss:$24 sps:$4 sm:$0xff]  }
 0x513   :  { %6162 = vst [vmem:[#allocation14 + $0x1b8] sm:$0xff] %v7171_v33  ;;  %v7217_v25 = vadd.f32 %v5371_v0, %v9866_v49  ;;  %v5373_v45 = vpop.f32.mrb[34].mxu1  ;;  %5753 = vmatprep.mubr.bf16.mxu0 %v10280_v26  ;;  %v8396_v26 = vld [vmem:[#allocation11 + $0x644] ss:$24 sps:$4 sm:$0xff]  }
 0x514   :  { %6109 = vst [vmem:[#allocation14 + $0x10] sm:$0xff] %v7216_v27  ;;  %v7218_v19 = vadd.f32 %v5373_v45, %v9860_v5  ;;  %v5375_v41 = vpop.f32.mrb[35].mxu1 }
 0x515   :  { %6110 = vst [vmem:[#allocation14 + $0x18] sm:$0xff] %v7217_v25  ;;  %v7219_v8 = vadd.f32 %v5375_v41, %v9866_v49  ;;  %v4840_v44 = vpop.f32.mrb[116].mxu0 }
 0x516   :  { %6115 = vst [vmem:[#allocation14 + $0x40] sm:$0xff] %v7218_v19  ;;  %v7172_v62 = vadd.f32 %v4840_v44, %v9824_v61  ;;  %v4842_v51 = vpop.f32.mrb[117].mxu0  ;;  %v10281_v44 = vld [vmem:[#allocation21_spill] sm:$0xff] }
 0x517   :  { %6116 = vst [vmem:[#allocation14 + $0x48] sm:$0xff] %v7219_v8  ;;  %v7173_v11 = vadd.f32 %v4842_v51, %v9830_v31  ;;  %v4844_v33 = vpop.f32.mrb[118].mxu0 }
 0x518   :  { %6167 = vst [vmem:[#allocation14 + $0x1e0] sm:$0xff] %v7172_v62  ;;  %v7174_v0 = vadd.f32 %v4844_v33, %v9824_v61  ;;  %v4846_v27 = vpop.f32.mrb[119].mxu0  ;;  %v8394_v62 = vld [vmem:[#allocation11 + $0x640] ss:$24 sps:$4 sm:$0xff]  }
 0x519   :  { %6168 = vst [vmem:[#allocation14 + $0x1e8] sm:$0xff] %v7173_v11  ;;  %v7175_v45 = vadd.f32 %v4846_v27, %v9830_v31  ;;  %v5379_v25 = vpop.f32.mrb[36].mxu1  ;;  %v8399_v27 = vld [vmem:[#allocation11 + $0x674] ss:$24 sps:$4 sm:$0xff]  }
 0x51a   :  { %6173 = vst [vmem:[#allocation14 + $0x210] sm:$0xff] %v7174_v0  ;;  %v7220_v19 = vadd.f32 %v5379_v25, %v9860_v5  ;;  %v5381_v41 = vpop.f32.mrb[37].mxu1  ;;  %5754 = vmatmul.mubr.bf16.vlgmr.msra.gmra.mrb[160].mxu0 %v10281_v44 }
 0x51b   :  { %6174 = vst [vmem:[#allocation14 + $0x218] sm:$0xff] %v7175_v45  ;;  %v7221_v8 = vadd.f32 %v5381_v41, %v9866_v49  ;;  %v5383_v51 = vpop.f32.mrb[38].mxu1  ;;  %5763 = vmatprep.mubr.bf16.mxu0 %v10282_v55  ;;  %5915 = vmatpush1.bf16.msra.mxu0 %v8391_v15  ;;  %v8397_v15 = vld [vmem:[#allocation11 + $0x670] ss:$24 sps:$4 sm:$0xff]  }
 0x51c   :  { %6121 = vst [vmem:[#allocation14 + $0x70] sm:$0xff] %v7220_v19  ;;  %v7222_v11 = vadd.f32 %v5383_v51, %v9860_v5  ;;  %v5385_v33 = vpop.f32.mrb[39].mxu1  ;;  %5916 = vmatprep.subr.bf16.mxu0 %v8396_v26  ;;  %v8402_v26 = vld [vmem:[#allocation11 + $0x6a4] ss:$24 sps:$4 sm:$0xff]  }
 0x51d   :  { %6122 = vst [vmem:[#allocation14 + $0x78] sm:$0xff] %v7221_v8  ;;  %v7223_v0 = vadd.f32 %v5385_v33, %v9866_v49  ;;  %v4850_v25 = vpop.f32.mrb[120].mxu0 }
 0x51e   :  { %6127 = vst [vmem:[#allocation14 + $0xa0] sm:$0xff] %v7222_v11  ;;  %v7176_v45 = vadd.f32 %v4850_v25, %v9824_v61  ;;  %v4852_v44 = vpop.f32.mrb[121].mxu0 }
 0x51f   :  { %6128 = vst [vmem:[#allocation14 + $0xa8] sm:$0xff] %v7223_v0  ;;  %v7177_v41 = vadd.f32 %v4852_v44, %v9830_v31  ;;  %v4854_v55 = vpop.f32.mrb[122].mxu0  ;;  %5917 = vmatpush1.bf16.msra.mxu0 %v8394_v62  ;;  %v10283_v0 = vld [vmem:[#allocation24_spill] sm:$0xff] }
 0x520   :  { %6179 = vst [vmem:[#allocation14 + $0x240] sm:$0xff] %v7176_v45  ;;  %v7178_v19 = vadd.f32 %v4854_v55, %v9824_v61  ;;  %v4856_v51 = vpop.f32.mrb[123].mxu0  ;;  %5918 = vmatprep.subr.bf16.mxu0 %v8399_v27  ;;  %v10284_v45 = vld [vmem:[#allocation30_spill] sm:$0xff] }
 0x521   :  { %6180 = vst [vmem:[#allocation14 + $0x248] sm:$0xff] %v7177_v41  ;;  %v7179_v8 = vadd.f32 %v4856_v51, %v9830_v31  ;;  %v5389_v33 = vpop.f32.mrb[40].mxu1  ;;  %v8400_v55 = vld [vmem:[#allocation11 + $0x6a0] ss:$24 sps:$4 sm:$0xff]   ;;  %v8405_v51 = vld [vmem:[#allocation11 + $0x6d4] ss:$24 sps:$4 sm:$0xff]  }
 0x522   :  { %6185 = vst [vmem:[#allocation14 + $0x270] sm:$0xff] %v7178_v19  ;;  %v7224_v11 = vadd.f32 %v5389_v33, %v9860_v5  ;;  %v5391_v25 = vpop.f32.mrb[41].mxu1  ;;  %5764 = vmatmul.mubr.bf16.gmra.mrb[164].mxu0 %v10283_v0 }
 0x523   :  { %6186 = vst [vmem:[#allocation14 + $0x278] sm:$0xff] %v7179_v8  ;;  %v7225_v62 = vadd.f32 %v5391_v25, %v9866_v49  ;;  %v5393_v44 = vpop.f32.mrb[42].mxu1  ;;  %5773 = vmatprep.mubr.bf16.mxu0 %v10284_v45  ;;  %5919 = vmatpush1.bf16.msra.mxu0 %v8397_v15  ;;  %v8403_v15 = vld [vmem:[#allocation11 + $0x6d0] ss:$24 sps:$4 sm:$0xff]  }
 0x524   :  { %6133 = vst [vmem:[#allocation14 + $0xd0] sm:$0xff] %v7224_v11  ;;  %v7226_v27 = vadd.f32 %v5393_v44, %v9860_v5  ;;  %v5395_v41 = vpop.f32.mrb[43].mxu1  ;;  %5920 = vmatprep.subr.bf16.mxu0 %v8402_v26  ;;  %v8408_v26 = vld [vmem:[#allocation11 + $0x704] ss:$24 sps:$4 sm:$0xff]  }
 0x525   :  { %6134 = vst [vmem:[#allocation14 + $0xd8] sm:$0xff] %v7225_v62  ;;  %v7227_v19 = vadd.f32 %v5395_v41, %v9866_v49  ;;  %v4860_v33 = vpop.f32.mrb[124].mxu0 }
 0x526   :  { %6139 = vst [vmem:[#allocation14 + $0x100] sm:$0xff] %v7226_v27  ;;  %v7180_v8 = vadd.f32 %v4860_v33, %v9824_v61  ;;  %v4862_v0 = vpop.f32.mrb[125].mxu0 }
 0x527   :  { %6140 = vst [vmem:[#allocation14 + $0x108] sm:$0xff] %v7227_v19  ;;  %v7181_v25 = vadd.f32 %v4862_v0, %v9830_v31  ;;  %v4864_v45 = vpop.f32.mrb[126].mxu0  ;;  %5921 = vmatpush1.bf16.msra.mxu0 %v8400_v55  ;;  %v10285_v19 = vld [vmem:[#allocation28_spill] sm:$0xff] }
 0x528   :  { %6191 = vst [vmem:[#allocation14 + $0x2a0] sm:$0xff] %v7180_v8  ;;  %v7182_v11 = vadd.f32 %v4864_v45, %v9824_v61  ;;  %v4866_v44 = vpop.f32.mrb[127].mxu0  ;;  %5922 = vmatprep.subr.bf16.mxu0 %v8405_v51  ;;  %v10286_v8 = vld [vmem:[#allocation33_spill] sm:$0xff]  ;;  %v8406_v45 = vld [vmem:[#allocation11 + $0x700] ss:$24 sps:$4 sm:$0xff]  }
 0x529   :  { %6192 = vst [vmem:[#allocation14 + $0x2a8] sm:$0xff] %v7181_v25  ;;  %v7183_v62 = vadd.f32 %v4866_v44, %v9830_v31  ;;  %v5399_v41 = vpop.f32.mrb[44].mxu1  ;;  %v8411_v44 = vld [vmem:[#allocation11 + $0x734] ss:$24 sps:$4 sm:$0xff]  }
 0x52a   :  { %6197 = vst [vmem:[#allocation14 + $0x2d0] sm:$0xff] %v7182_v11  ;;  %v7228_v27 = vadd.f32 %v5399_v41, %v9860_v5  ;;  %v5401_v33 = vpop.f32.mrb[45].mxu1  ;;  %5774 = vmatmul.mubr.bf16.gmra.mrb[168].mxu0 %v10285_v19 }
 0x52b   :  { %6198 = vst [vmem:[#allocation14 + $0x2d8] sm:$0xff] %v7183_v62  ;;  %v7229_v55 = vadd.f32 %v5401_v33, %v9866_v49  ;;  %v5403_v0 = vpop.f32.mrb[46].mxu1  ;;  %5783 = vmatprep.mubr.bf16.mxu0 %v10286_v8  ;;  %5923 = vmatpush1.bf16.msra.mxu0 %v8403_v15  ;;  %v8409_v15 = vld [vmem:[#allocation11 + $0x730] ss:$24 sps:$4 sm:$0xff]  }
 0x52c   :  { %6145 = vst [vmem:[#allocation14 + $0x130] sm:$0xff] %v7228_v27  ;;  %v7230_v51 = vadd.f32 %v5403_v0, %v9860_v5  ;;  %v5405_v25 = vpop.f32.mrb[47].mxu1  ;;  %5924 = vmatprep.subr.bf16.mxu0 %v8408_v26  ;;  %v8414_v26 = vld [vmem:[#allocation11 + $0x764] ss:$24 sps:$4 sm:$0xff]  }
 0x52d   :  { %6146 = vst [vmem:[#allocation14 + $0x138] sm:$0xff] %v7229_v55  ;;  %v7231_v11 = vadd.f32 %v5405_v25, %v9866_v49  ;;  %v4870_v41 = vpop.f32.mrb[128].mxu0 }
 0x52e   :  { %6151 = vst [vmem:[#allocation14 + $0x160] sm:$0xff] %v7230_v51  ;;  %v7184_v62 = vadd.f32 %v4870_v41, %v9824_v61  ;;  %v4872_v19 = vpop.f32.mrb[129].mxu0 }
 0x52f   :  { %6152 = vst [vmem:[#allocation14 + $0x168] sm:$0xff] %v7231_v11  ;;  %v7185_v33 = vadd.f32 %v4872_v19, %v9830_v31  ;;  %v4874_v8 = vpop.f32.mrb[130].mxu0  ;;  %5925 = vmatpush1.bf16.msra.mxu0 %v8406_v45 }
 0x530   :  { %6203 = vst [vmem:[#allocation14 + $0x300] sm:$0xff] %v7184_v62  ;;  %v7186_v27 = vadd.f32 %v4874_v8, %v9824_v61  ;;  %v4876_v0 = vpop.f32.mrb[131].mxu0  ;;  %5926 = vmatprep.subr.bf16.mxu0 %v8411_v44  ;;  %v8412_v62 = vld [vmem:[#allocation11 + $0x760] ss:$24 sps:$4 sm:$0xff]  }
 0x531   :  { %6204 = vst [vmem:[#allocation14 + $0x308] sm:$0xff] %v7185_v33  ;;  %v7187_v55 = vadd.f32 %v4876_v0, %v9830_v31  ;;  %v5409_v25 = vpop.f32.mrb[48].mxu1  ;;  %v8417_v33 = vld [vmem:[#allocation11 + $0x794] ss:$24 sps:$4 sm:$0xff]  }
 0x532   :  { %6209 = vst [vmem:[#allocation14 + $0x330] sm:$0xff] %v7186_v27  ;;  %v7232_v51 = vadd.f32 %v5409_v25, %v9860_v5  ;;  %v5411_v41 = vpop.f32.mrb[49].mxu1  ;;  %5784 = vmatmul.mubr.bf16.gmra.mrb[172].mxu0 %v9258_v35 }
 0x533   :  { %6210 = vst [vmem:[#allocation14 + $0x338] sm:$0xff] %v7187_v55  ;;  %v7233_v45 = vadd.f32 %v5411_v41, %v9866_v49  ;;  %v5413_v11 = vpop.f32.mrb[50].mxu1  ;;  %5793 = vmatprep.mubr.bf16.mxu0 %v9282_v40  ;;  %5927 = vmatpush1.bf16.msra.mxu0 %v8409_v15  ;;  %v8415_v15 = vld [vmem:[#allocation11 + $0x790] ss:$24 sps:$4 sm:$0xff]  }
 0x534   :  { %6157 = vst [vmem:[#allocation14 + $0x190] sm:$0xff] %v7232_v51  ;;  %v7234_v44 = vadd.f32 %v5413_v11, %v9860_v5  ;;  %v5415_v19 = vpop.f32.mrb[51].mxu1  ;;  %5928 = vmatprep.subr.bf16.mxu0 %v8414_v26  ;;  %v8420_v26 = vld [vmem:[#allocation11 + $0x7c4] ss:$24 sps:$4 sm:$0xff]  }
 0x535   :  { %6158 = vst [vmem:[#allocation14 + $0x198] sm:$0xff] %v7233_v45  ;;  %v7235_v8 = vadd.f32 %v5415_v19, %v9866_v49  ;;  %v4880_v27 = vpop.f32.mrb[132].mxu0  ;;  %v10287_v19 = vld [vmem:[#allocation35_spill] sm:$0xff] }
 0x536   :  { %6163 = vst [vmem:[#allocation14 + $0x1c0] sm:$0xff] %v7234_v44  ;;  %v7188_v35 = vadd.f32 %v4880_v27, %v9824_v61  ;;  %v4882_v0 = vpop.f32.mrb[133].mxu0  ;;  %v10288_v27 = vld [vmem:[#allocation40_spill] sm:$0xff] }
 0x537   :  { %6164 = vst [vmem:[#allocation14 + $0x1c8] sm:$0xff] %v7235_v8  ;;  %v7189_v55 = vadd.f32 %v4882_v0, %v9830_v31  ;;  %v4884_v40 = vpop.f32.mrb[134].mxu0  ;;  %5929 = vmatpush1.bf16.msra.mxu0 %v8412_v62 }
 0x538   :  { %6215 = vst [vmem:[#allocation14 + $0x360] sm:$0xff] %v7188_v35  ;;  %v7190_v25 = vadd.f32 %v4884_v40, %v9824_v61  ;;  %v4886_v51 = vpop.f32.mrb[135].mxu0  ;;  %5930 = vmatprep.subr.bf16.mxu0 %v8417_v33  ;;  %v8418_v35 = vld [vmem:[#allocation11 + $0x7c0] ss:$24 sps:$4 sm:$0xff]  }
 0x539   :  { %6216 = vst [vmem:[#allocation14 + $0x368] sm:$0xff] %v7189_v55  ;;  %v7191_v41 = vadd.f32 %v4886_v51, %v9830_v31  ;;  %v5419_v45 = vpop.f32.mrb[52].mxu1  ;;  %v8423_v55 = vld [vmem:[#allocation11 + $0x7f4] ss:$24 sps:$4 sm:$0xff]  }
 0x53a   :  { %6221 = vst [vmem:[#allocation14 + $0x390] sm:$0xff] %v7190_v25  ;;  %v7236_v11 = vadd.f32 %v5419_v45, %v9860_v5  ;;  %v5421_v44 = vpop.f32.mrb[53].mxu1  ;;  %5794 = vmatmul.mubr.bf16.gmra.mrb[176].mxu0 %v10287_v19 }
 0x53b   :  { %6222 = vst [vmem:[#allocation14 + $0x398] sm:$0xff] %v7191_v41  ;;  %v7237_v62 = vadd.f32 %v5421_v44, %v9866_v49  ;;  %v5423_v8 = vpop.f32.mrb[54].mxu1  ;;  %5803 = vmatprep.mubr.bf16.mxu0 %v10288_v27  ;;  %5931 = vmatpush1.bf16.msra.mxu0 %v8415_v15  ;;  %v8421_v15 = vld [vmem:[#allocation11 + $0x7f0] ss:$24 sps:$4 sm:$0xff]  }
 0x53c   :  { %6169 = vst [vmem:[#allocation14 + $0x1f0] sm:$0xff] %v7236_v11  ;;  %v7238_v33 = vadd.f32 %v5423_v8, %v9860_v5  ;;  %v5425_v0 = vpop.f32.mrb[55].mxu1  ;;  %5932 = vmatprep.subr.bf16.mxu0 %v8420_v26  ;;  %v8426_v26 = vld [vmem:[#allocation11 + $0x824] ss:$24 sps:$4 sm:$0xff]  }
 0x53d   :  { %6170 = vst [vmem:[#allocation14 + $0x1f8] sm:$0xff] %v7237_v62  ;;  %v7239_v40 = vadd.f32 %v5425_v0, %v9866_v49  ;;  %v4890_v25 = vpop.f32.mrb[136].mxu0  ;;  %v10289_v0 = vld [vmem:[#allocation38_spill] sm:$0xff] }
 0x53e   :  { %6175 = vst [vmem:[#allocation14 + $0x220] sm:$0xff] %v7238_v33  ;;  %v7192_v51 = vadd.f32 %v4890_v25, %v9824_v61  ;;  %v4892_v41 = vpop.f32.mrb[137].mxu0  ;;  %v10290_v25 = vld [vmem:[#allocation43_spill] sm:$0xff] }
 0x53f   :  { %6176 = vst [vmem:[#allocation14 + $0x228] sm:$0xff] %v7239_v40  ;;  %v7193_v45 = vadd.f32 %v4892_v41, %v9830_v31  ;;  %v4894_v44 = vpop.f32.mrb[138].mxu0  ;;  %5933 = vmatpush1.bf16.msra.mxu0 %v8418_v35 }
 0x540   :  { %6227 = vst [vmem:[#allocation14 + $0x3c0] sm:$0xff] %v7192_v51  ;;  %v7194_v11 = vadd.f32 %v4894_v44, %v9824_v61  ;;  %v4896_v19 = vpop.f32.mrb[139].mxu0  ;;  %5934 = vmatprep.subr.bf16.mxu0 %v8423_v55  ;;  %v8424_v51 = vld [vmem:[#allocation11 + $0x820] ss:$24 sps:$4 sm:$0xff]  }
 0x541   :  { %6228 = vst [vmem:[#allocation14 + $0x3c8] sm:$0xff] %v7193_v45  ;;  %v7195_v62 = vadd.f32 %v4896_v19, %v9830_v31  ;;  %v5429_v8 = vpop.f32.mrb[56].mxu1  ;;  %v8429_v45 = vld [vmem:[#allocation11 + $0x854] ss:$24 sps:$4 sm:$0xff]  }
 0x542   :  { %6233 = vst [vmem:[#allocation14 + $0x3f0] sm:$0xff] %v7194_v11  ;;  %v7240_v27 = vadd.f32 %v5429_v8, %v9860_v5  ;;  %v5431_v33 = vpop.f32.mrb[57].mxu1  ;;  %5804 = vmatmul.mubr.bf16.gmra.mrb[180].mxu0 %v10289_v0 }
 0x543   :  { %6234 = vst [vmem:[#allocation14 + $0x3f8] sm:$0xff] %v7195_v62  ;;  %v7241_v35 = vadd.f32 %v5431_v33, %v9866_v49  ;;  %v5433_v40 = vpop.f32.mrb[58].mxu1  ;;  %5813 = vmatprep.mubr.bf16.mxu0 %v10290_v25  ;;  %5935 = vmatpush1.bf16.msra.mxu0 %v8421_v15  ;;  %v8427_v15 = vld [vmem:[#allocation11 + $0x850] ss:$24 sps:$4 sm:$0xff]  }
 0x544   :  { %6181 = vst [vmem:[#allocation14 + $0x250] sm:$0xff] %v7240_v27  ;;  %v7242_v55 = vadd.f32 %v5433_v40, %v9860_v5  ;;  %v5435_v41 = vpop.f32.mrb[59].mxu1  ;;  %5936 = vmatprep.subr.bf16.mxu0 %v8426_v26  ;;  %v8432_v26 = vld [vmem:[#allocation11 + $0x884] ss:$24 sps:$4 sm:$0xff]  }
 0x545   :  { %6182 = vst [vmem:[#allocation14 + $0x258] sm:$0xff] %v7241_v35  ;;  %v7243_v44 = vadd.f32 %v5435_v41, %v9866_v49  ;;  %v4900_v11 = vpop.f32.mrb[140].mxu0 }
 0x546   :  { %6187 = vst [vmem:[#allocation14 + $0x280] sm:$0xff] %v7242_v55  ;;  %v7196_v19 = vadd.f32 %v4900_v11, %v9824_v61  ;;  %v4902_v62 = vpop.f32.mrb[141].mxu0  ;;  %v8430_v11 = vld [vmem:[#allocation11 + $0x880] ss:$24 sps:$4 sm:$0xff]  }
 0x547   :  { %6188 = vst [vmem:[#allocation14 + $0x288] sm:$0xff] %v7243_v44  ;;  %v7197_v8 = vadd.f32 %v4902_v62, %v9830_v31  ;;  %v4904_v33 = vpop.f32.mrb[142].mxu0  ;;  %5937 = vmatpush1.bf16.msra.mxu0 %v8424_v51  ;;  %v10291_v44 = vld [vmem:[#allocation46_spill] sm:$0xff] }
 0x548   :  { %6239 = vst [vmem:[#allocation14 + $0x420] sm:$0xff] %v7196_v19  ;;  %v7198_v27 = vadd.f32 %v4904_v33, %v9824_v61  ;;  %v4906_v0 = vpop.f32.mrb[143].mxu0  ;;  %5938 = vmatprep.subr.bf16.mxu0 %v8429_v45  ;;  %v8435_v62 = vld [vmem:[#allocation11 + $0x8b4] ss:$24 sps:$4 sm:$0xff]  }
 0x549   :  { %6240 = vst [vmem:[#allocation14 + $0x428] sm:$0xff] %v7197_v8  ;;  %v7199_v35 = vadd.f32 %v4906_v0, %v9830_v31  ;;  %v5439_v40 = vpop.f32.mrb[60].mxu1 }
 0x54a   :  { %6245 = vst [vmem:[#allocation14 + $0x450] sm:$0xff] %v7198_v27  ;;  %v7244_v25 = vadd.f32 %v5439_v40, %v9860_v5  ;;  %v5441_v55 = vpop.f32.mrb[61].mxu1  ;;  %5814 = vmatmul.mubr.bf16.gmra.mrb[184].mxu0 %v9318_v37 }
 0x54b   :  { %6246 = vst [vmem:[#allocation14 + $0x458] sm:$0xff] %v7199_v35  ;;  %v7245_v51 = vadd.f32 %v5441_v55, %v9866_v49  ;;  %v5443_v41 = vpop.f32.mrb[62].mxu1  ;;  %5823 = vmatprep.mubr.bf16.mxu0 %v10291_v44  ;;  %5939 = vmatpush1.bf16.msra.mxu0 %v8427_v15  ;;  %v8433_v15 = vld [vmem:[#allocation11 + $0x8b0] ss:$24 sps:$4 sm:$0xff]  }
 0x54c   :  { %6193 = vst [vmem:[#allocation14 + $0x2b0] sm:$0xff] %v7244_v25  ;;  %v7246_v45 = vadd.f32 %v5443_v41, %v9860_v5  ;;  %v5445_v19 = vpop.f32.mrb[63].mxu1  ;;  %5940 = vmatprep.subr.bf16.mxu0 %v8432_v26  ;;  %v8438_v26 = vld [vmem:[#allocation11 + $0x8e4] ss:$24 sps:$4 sm:$0xff]  }
 0x54d   :  { %6194 = vst [vmem:[#allocation14 + $0x2b8] sm:$0xff] %v7245_v51  ;;  %v7247_v8 = vadd.f32 %v5445_v19, %v9866_v49  ;;  %v4910_v33 = vpop.f32.mrb[144].mxu0  ;;  %v10292_v19 = vld [vmem:[#allocation49_spill] sm:$0xff] }
 0x54e   :  { %6199 = vst [vmem:[#allocation14 + $0x2e0] sm:$0xff] %v7246_v45  ;;  %v7200_v37 = vadd.f32 %v4910_v33, %v9824_v61  ;;  %v4912_v27 = vpop.f32.mrb[145].mxu0 }
 0x54f   :  { %6200 = vst [vmem:[#allocation14 + $0x2e8] sm:$0xff] %v7247_v8  ;;  %v7201_v0 = vadd.f32 %v4912_v27, %v9830_v31  ;;  %v4914_v35 = vpop.f32.mrb[146].mxu0  ;;  %5941 = vmatpush1.bf16.msra.mxu0 %v8430_v11  ;;  %v8436_v8 = vld [vmem:[#allocation11 + $0x8e0] ss:$24 sps:$4 sm:$0xff]  }
 0x550   :  { %6251 = vst [vmem:[#allocation14 + $0x480] sm:$0xff] %v7200_v37  ;;  %v7202_v40 = vadd.f32 %v4914_v35, %v9824_v61  ;;  %v4916_v25 = vpop.f32.mrb[147].mxu0  ;;  %5942 = vmatprep.subr.bf16.mxu0 %v8435_v62 }
 0x551   :  { %6252 = vst [vmem:[#allocation14 + $0x488] sm:$0xff] %v7201_v0  ;;  %v7203_v55 = vadd.f32 %v4916_v25, %v9830_v31  ;;  %v5449_v51 = vpop.f32.mrb[64].mxu1 }
 0x552   :  { %6257 = vst [vmem:[#allocation14 + $0x4b0] sm:$0xff] %v7202_v40  ;;  %v7248_v41 = vadd.f32 %v5449_v51, %v9860_v5  ;;  %v5451_v44 = vpop.f32.mrb[65].mxu1  ;;  %5824 = vmatmul.mubr.bf16.gmra.mrb[188].mxu0 %v9338_v2 }
 0x553   :  { %6258 = vst [vmem:[#allocation14 + $0x4b8] sm:$0xff] %v7203_v55  ;;  %v7249_v11 = vadd.f32 %v5451_v44, %v9866_v49  ;;  %v5453_v45 = vpop.f32.mrb[66].mxu1  ;;  %5833 = vmatprep.mubr.bf16.mxu0 %v10292_v19  ;;  %5943 = vmatpush1.bf16.msra.mxu0 %v8433_v15 }
 0x554   :  { %6205 = vst [vmem:[#allocation14 + $0x310] sm:$0xff] %v7248_v41  ;;  %v7250_v62 = vadd.f32 %v5453_v45, %v9860_v5  ;;  %v5455_v33 = vpop.f32.mrb[67].mxu1  ;;  %5944 = vmatprep.subr.bf16.mxu0 %v8438_v26  ;;  %v10293_v45 = vld [vmem:[#allocation52_spill] sm:$0xff] }
 0x555   :  { %6206 = vst [vmem:[#allocation14 + $0x318] sm:$0xff] %v7249_v11  ;;  %v7251_v37 = vadd.f32 %v5455_v33, %v9866_v49  ;;  %v4920_v27 = vpop.f32.mrb[148].mxu0 }
 0x556   :  { %6211 = vst [vmem:[#allocation14 + $0x340] sm:$0xff] %v7250_v62  ;;  %v7204_v2 = vadd.f32 %v4920_v27, %v9824_v61  ;;  %v4922_v0 = vpop.f32.mrb[149].mxu0 }
 0x557   :  { %6212 = vst [vmem:[#allocation14 + $0x348] sm:$0xff] %v7251_v37  ;;  %v7205_v35 = vadd.f32 %v4922_v0, %v9830_v31  ;;  %v4924_v40 = vpop.f32.mrb[150].mxu0  ;;  %5945 = vmatpush1.bf16.msra.mxu0 %v8436_v8 }
 0x558   :  { %6263 = vst [vmem:[#allocation14 + $0x4e0] sm:$0xff] %v7204_v2  ;;  %v7206_v15 = vadd.f32 %v4924_v40, %v9824_v61  ;;  %v4926_v25 = vpop.f32.mrb[151].mxu0 }
 0x559   :  { %6264 = vst [vmem:[#allocation14 + $0x4e8] sm:$0xff] %v7205_v35  ;;  %v7207_v26 = vadd.f32 %v4926_v25, %v9830_v31  ;;  %v5459_v55 = vpop.f32.mrb[68].mxu1 }
 0x55a   :  { %6269 = vst [vmem:[#allocation14 + $0x510] sm:$0xff] %v7206_v15  ;;  %v7252_v51 = vadd.f32 %v5459_v55, %v9860_v5  ;;  %v5461_v41 = vpop.f32.mrb[69].mxu1  ;;  %5834 = vmatmul.mubr.bf16.gmra.mrb[192].mxu0 %v9372_v50 }
 0x55b   :  { %6270 = vst [vmem:[#allocation14 + $0x518] sm:$0xff] %v7207_v26  ;;  %v7253_v44 = vadd.f32 %v5461_v41, %v9866_v49  ;;  %v5463_v11 = vpop.f32.mrb[70].mxu1  ;;  %5843 = vmatprep.mubr.bf16.mxu0 %v10293_v45 }
 0x55c   :  { %6217 = vst [vmem:[#allocation14 + $0x370] sm:$0xff] %v7252_v51  ;;  %v7254_v19 = vadd.f32 %v5463_v11, %v9860_v5  ;;  %v5465_v8 = vpop.f32.mrb[71].mxu1 }
 0x55d   :  { %6218 = vst [vmem:[#allocation14 + $0x378] sm:$0xff] %v7253_v44  ;;  %v7255_v62 = vadd.f32 %v5465_v8, %v9866_v49  ;;  %v4930_v33 = vpop.f32.mrb[152].mxu0 }
 0x55e   :  { %6223 = vst [vmem:[#allocation14 + $0x3a0] sm:$0xff] %v7254_v19  ;;  %v7208_v37 = vadd.f32 %v4930_v33, %v9824_v61  ;;  %v4932_v27 = vpop.f32.mrb[153].mxu0 }
 0x55f   :  { %6224 = vst [vmem:[#allocation14 + $0x3a8] sm:$0xff] %v7255_v62  ;;  %v7209_v50 = vadd.f32 %v4932_v27, %v9830_v31  ;;  %v4934_v2 = vpop.f32.mrb[154].mxu0 }
 0x560   :  { %6275 = vst [vmem:[#allocation14 + $0x540] sm:$0xff] %v7208_v37  ;;  %v7210_v0 = vadd.f32 %v4934_v2, %v9824_v61  ;;  %v4936_v35 = vpop.f32.mrb[155].mxu0 }
 0x561   :  { %6276 = vst [vmem:[#allocation14 + $0x548] sm:$0xff] %v7209_v50  ;;  %v7211_v40 = vadd.f32 %v4936_v35, %v9830_v31  ;;  %v5469_v15 = vpop.f32.mrb[72].mxu1 }
 0x562   :  { %6281 = vst [vmem:[#allocation14 + $0x570] sm:$0xff] %v7210_v0  ;;  %v7256_v25 = vadd.f32 %v5469_v15, %v9860_v5  ;;  %v5471_v26 = vpop.f32.mrb[73].mxu1  ;;  %5844 = vmatmul.mubr.bf16.gmra.mrb[196].mxu0 %v9392_v16 }
 0x563   :  { %6282 = vst [vmem:[#allocation14 + $0x578] sm:$0xff] %v7211_v40  ;;  %v7257_v55 = vadd.f32 %v5471_v26, %v9866_v49  ;;  %v5473_v51 = vpop.f32.mrb[74].mxu1  ;;  %5853 = vmatprep.mubr.bf16.mxu0 %v9417_v1 }
 0x564   :  { %6229 = vst [vmem:[#allocation14 + $0x3d0] sm:$0xff] %v7256_v25  ;;  %v7258_v41 = vadd.f32 %v5473_v51, %v9860_v5  ;;  %v5475_v44 = vpop.f32.mrb[75].mxu1 }
 0x565   :  { %6230 = vst [vmem:[#allocation14 + $0x3d8] sm:$0xff] %v7257_v55  ;;  %v7259_v11 = vadd.f32 %v5475_v44, %v9866_v49  ;;  %v4940_v45 = vpop.f32.mrb[156].mxu0 }
 0x566   :  { %6235 = vst [vmem:[#allocation14 + $0x400] sm:$0xff] %v7258_v41  ;;  %v7212_v19 = vadd.f32 %v4940_v45, %v9824_v61  ;;  %v4942_v8 = vpop.f32.mrb[157].mxu0 }
 0x567   :  { %6236 = vst [vmem:[#allocation14 + $0x408] sm:$0xff] %v7259_v11  ;;  %v7213_v16 = vadd.f32 %v4942_v8, %v9830_v31  ;;  %v4944_v62 = vpop.f32.mrb[158].mxu0 }
 0x568   :  { %6287 = vst [vmem:[#allocation14 + $0x5a0] sm:$0xff] %v7212_v19  ;;  %v7214_v33 = vadd.f32 %v4944_v62, %v9824_v61  ;;  %v4946_v1 = vpop.f32.mrb[159].mxu0 }
 0x569   :  { %6288 = vst [vmem:[#allocation14 + $0x5a8] sm:$0xff] %v7213_v16  ;;  %v7215_v37 = vadd.f32 %v4946_v1, %v9830_v31  ;;  %v5479_v27 = vpop.f32.mrb[76].mxu1 }
 0x56a   :  { %6293 = vst [vmem:[#allocation14 + $0x5d0] sm:$0xff] %v7214_v33  ;;  %v7260_v50 = vadd.f32 %v5479_v27, %v9860_v5  ;;  %v5481_v2 = vpop.f32.mrb[77].mxu1  ;;  %5854 = vmatmul.mubr.bf16.gmra.mrb[200].mxu0 %v9412_v57 }
 0x56b   :  { %6294 = vst [vmem:[#allocation14 + $0x5d8] sm:$0xff] %v7215_v37  ;;  %v7261_v0 = vadd.f32 %v5481_v2, %v9866_v49  ;;  %v5483_v35 = vpop.f32.mrb[78].mxu1  ;;  %5863 = vmatprep.mubr.bf16.mxu0 %v9437_v6 }
 0x56c   :  { %6241 = vst [vmem:[#allocation14 + $0x430] sm:$0xff] %v7260_v50  ;;  %v7262_v61 = vadd.f32 %v5483_v35, %v9860_v5  ;;  %v5485_v40 = vpop.f32.mrb[79].mxu1 }
 0x56d   :  { %6242 = vst [vmem:[#allocation14 + $0x438] sm:$0xff] %v7261_v0  ;;  %v7263_v31 = vadd.f32 %v5485_v40, %v9866_v49 }
 0x56e   :  { %6247 = vst [vmem:[#allocation14 + $0x460] sm:$0xff] %v7262_v61 }
 0x56f   :  { %6248 = vst [vmem:[#allocation14 + $0x468] sm:$0xff] %v7263_v31 }
 0x571   :  { %v5489_v15 = vpop.f32.mrb[80].mxu1 }
 0x572   :  { %v7264_v25 = vadd.f32 %v5489_v15, %v9860_v5  ;;  %v5491_v26 = vpop.f32.mrb[81].mxu1  ;;  %5864 = vmatmul.mubr.bf16.gmra.mrb[204].mxu0 %v9432_v30 }
 0x573   :  { %v7265_v57 = vadd.f32 %v5491_v26, %v9866_v49  ;;  %v5493_v55 = vpop.f32.mrb[82].mxu1  ;;  %5873 = vmatprep.mubr.bf16.mxu0 %v9457_v20 }
 0x574   :  { %6253 = vst [vmem:[#allocation14 + $0x490] sm:$0xff] %v7264_v25  ;;  %v7266_v6 = vadd.f32 %v5493_v55, %v9860_v5  ;;  %v5495_v51 = vpop.f32.mrb[83].mxu1 }
 0x575   :  { %6254 = vst [vmem:[#allocation14 + $0x498] sm:$0xff] %v7265_v57  ;;  %v7267_v41 = vadd.f32 %v5495_v51, %v9866_v49 }
 0x576   :  { %6259 = vst [vmem:[#allocation14 + $0x4c0] sm:$0xff] %v7266_v6 }
 0x577   :  { %6260 = vst [vmem:[#allocation14 + $0x4c8] sm:$0xff] %v7267_v41 }
 0x579   :  { %v5499_v44 = vpop.f32.mrb[84].mxu1 }
 0x57a   :  { %v7268_v11 = vadd.f32 %v5499_v44, %v9860_v5  ;;  %v5501_v45 = vpop.f32.mrb[85].mxu1  ;;  %5874 = vmatmul.mubr.bf16.gmra.mrb[208].mxu0 %v9452_v24 }
 0x57b   :  { %v7269_v30 = vadd.f32 %v5501_v45, %v9866_v49  ;;  %v5503_v19 = vpop.f32.mrb[86].mxu1  ;;  %5883 = vmatprep.mubr.bf16.mxu0 %v9477_v13 }
 0x57c   :  { %6265 = vst [vmem:[#allocation14 + $0x4f0] sm:$0xff] %v7268_v11  ;;  %v7270_v20 = vadd.f32 %v5503_v19, %v9860_v5  ;;  %v5505_v8 = vpop.f32.mrb[87].mxu1 }
 0x57d   :  { %6266 = vst [vmem:[#allocation14 + $0x4f8] sm:$0xff] %v7269_v30  ;;  %v7271_v16 = vadd.f32 %v5505_v8, %v9866_v49 }
 0x57e   :  { %6271 = vst [vmem:[#allocation14 + $0x520] sm:$0xff] %v7270_v20 }
 0x57f   :  { %6272 = vst [vmem:[#allocation14 + $0x528] sm:$0xff] %v7271_v16 }
 0x581   :  { %v5509_v62 = vpop.f32.mrb[88].mxu1 }
 0x582   :  { %v7272_v33 = vadd.f32 %v5509_v62, %v9860_v5  ;;  %v5511_v1 = vpop.f32.mrb[89].mxu1  ;;  %5884 = vmatmul.mubr.bf16.gmra.mrb[212].mxu0 %v9472_v21 }
 0x583   :  { %v7273_v24 = vadd.f32 %v5511_v1, %v9866_v49  ;;  %v5513_v37 = vpop.f32.mrb[90].mxu1  ;;  %5893 = vmatprep.mubr.bf16.mxu0 %v9497_v60 }
 0x584   :  { %6277 = vst [vmem:[#allocation14 + $0x550] sm:$0xff] %v7272_v33  ;;  %v7274_v13 = vadd.f32 %v5513_v37, %v9860_v5  ;;  %v5515_v27 = vpop.f32.mrb[91].mxu1 }
 0x585   :  { %6278 = vst [vmem:[#allocation14 + $0x558] sm:$0xff] %v7273_v24  ;;  %v7275_v50 = vadd.f32 %v5515_v27, %v9866_v49 }
 0x586   :  { %6283 = vst [vmem:[#allocation14 + $0x580] sm:$0xff] %v7274_v13 }
 0x587   :  { %6284 = vst [vmem:[#allocation14 + $0x588] sm:$0xff] %v7275_v50 }
 0x589   :  { %v5519_v2 = vpop.f32.mrb[92].mxu1 }
 0x58a   :  { %v7276_v0 = vadd.f32 %v5519_v2, %v9860_v5  ;;  %v5521_v35 = vpop.f32.mrb[93].mxu1  ;;  %5894 = vmatmul.mubr.bf16.gmra.mrb[216].mxu0 %v9492_v9  ;;  %v10298_v9 = vld [vmem:[#allocation67_spill] sm:$0xff] }
 0x58b   :  { %v7277_v21 = vadd.f32 %v5521_v35, %v9866_v49  ;;  %v5523_v61 = vpop.f32.mrb[94].mxu1  ;;  %5903 = vmatprep.mubr.bf16.mxu0 %v9519_v43 }
 0x58c   :  { %6289 = vst [vmem:[#allocation14 + $0x5b0] sm:$0xff] %v7276_v0  ;;  %v7278_v60 = vadd.f32 %v5523_v61, %v9860_v5  ;;  %v5525_v40 = vpop.f32.mrb[95].mxu1 }
 0x58d   :  { %6290 = vst [vmem:[#allocation14 + $0x5b8] sm:$0xff] %v7277_v21  ;;  %v7279_v31 = vadd.f32 %v5525_v40, %v9866_v49 }
 0x58e   :  { %6295 = vst [vmem:[#allocation14 + $0x5e0] sm:$0xff] %v7278_v60 }
 0x58f   :  { %6296 = vst [vmem:[#allocation14 + $0x5e8] sm:$0xff] %v7279_v31 }
 0x592   :  { %5904 = vmatmul.mubr.bf16.gmra.mrb[220].mxu0 %v9514_v3 }
 0x593   :  { %5946 = vmatprep.mubr.bf16.mxu0 %v9540_v52 }
 0x59a   :  { %5947 = vmatmul.mubr.bf16.vlgmr.msra.gmra.mrb[160].mxu0 %v9537_v7 }
 0x59b   :  { %5956 = vmatprep.mubr.bf16.mxu0 %v9552_v58 }
 0x5a2   :  { %5957 = vmatmul.mubr.bf16.gmra.mrb[164].mxu0 %v9549_v46 }
 0x5a3   :  { %5966 = vmatprep.mubr.bf16.mxu0 %v9564_v32 }
 0x5aa   :  { %5967 = vmatmul.mubr.bf16.gmra.mrb[168].mxu0 %v9561_v14 }
 0x5ab   :  { %5976 = vmatprep.mubr.bf16.mxu0 %v9576_v54 }
 0x5b2   :  { %5977 = vmatmul.mubr.bf16.gmra.mrb[172].mxu0 %v9573_v12 }
 0x5b3   :  { %5986 = vmatprep.mubr.bf16.mxu0 %v9588_v4 }
 0x5ba   :  { %5987 = vmatmul.mubr.bf16.gmra.mrb[176].mxu0 %v9585_v28 }
 0x5bb   :  { %5996 = vmatprep.mubr.bf16.mxu0 %v9600_v18  ;;  %v8440_v18 = vld [vmem:[#allocation13] sm:$0x3f] }
 0x5c2   :  { %5997 = vmatmul.mubr.bf16.gmra.mrb[180].mxu0 %v9597_v47  ;;  %v10296_v47 = vld [vmem:[#allocation65_spill] sm:$0xff] }
 0x5c3   :  { %6006 = vmatprep.mubr.bf16.mxu0 %v9612_v23 }
 0x5ca   :  { %6007 = vmatmul.mubr.bf16.gmra.mrb[184].mxu0 %v9609_v42  ;;  %v10294_v42 = vld [vmem:[#allocation64_spill] sm:$0xff] }
 0x5cb   :  { %6016 = vmatprep.mubr.bf16.mxu0 %v9624_v38 }
 0x5d2   :  { %6017 = vmatmul.mubr.bf16.gmra.mrb[188].mxu0 %v9621_v22  ;;  %v10295_v22 = vld [vmem:[#allocation66_spill] sm:$0xff] }
 0x5d3   :  { %6026 = vmatprep.mubr.bf16.mxu0 %v9636_v29 }
 0x5da   :  { %6027 = vmatmul.mubr.bf16.gmra.mrb[192].mxu0 %v9633_v56  ;;  %v10297_v56 = vld [vmem:[#allocation68_spill] sm:$0xff] }
 0x5db   :  { %6036 = vmatprep.mubr.bf16.mxu0 %v9648_v48 }
 0x5e2   :  { %6037 = vmatmul.mubr.bf16.gmra.mrb[196].mxu0 %v9645_v53 }
 0x5e3   :  { %6046 = vmatprep.mubr.bf16.mxu0 %v9660_v10  ;;  %v10299_v10 = vld [vmem:[#allocation20_spill] sm:$0xff] }
 0x5ea   :  { %6047 = vmatmul.mubr.bf16.gmra.mrb[200].mxu0 %v9657_v36 }
 0x5eb   :  { %6056 = vmatprep.mubr.bf16.mxu0 %v9672_v34  ;;  %v10300_v34 = vsub.s32 4, %v10299_v10 }
 0x5ed   :  { %v10045_v32 = vrot.slane %v8440_v18, %v10300_v34 }
 0x5f2   :  { %6057 = vmatmul.mubr.bf16.gmra.mrb[204].mxu0 %v9669_v59 }
 0x5f3   :  { %6066 = vmatprep.mubr.bf16.mxu0 %v9684_v39  ;;  %v10301_v39 = vsub.s32 5, %v10299_v10 }
 0x5f5   :  { %v10049_v54 = vrot.slane %v8440_v18, %v10301_v39 }
 0x5fa   :  { %6067 = vmatmul.mubr.bf16.gmra.mrb[208].mxu0 %v9681_v63 }
 0x5fb   :  { %6076 = vmatprep.mubr.bf16.mxu0 %v9696_v17 }
 0x602   :  { %6077 = vmatmul.mubr.bf16.gmra.mrb[212].mxu0 %v10294_v42 }
 0x603   :  { %6086 = vmatprep.mubr.bf16.mxu0 %v10295_v22 }
 0x60a   :  { %6087 = vmatmul.mubr.bf16.gmra.mrb[216].mxu0 %v10296_v47 }
 0x60b   :  { %6096 = vmatprep.mubr.bf16.mxu0 %v10297_v56 }
 0x612   :  { %6097 = vmatmul.mubr.bf16.gmra.mrb[220].mxu0 %v10298_v9 }
 0x66d   :  { %v5948_v3 = vpop.f32.mrb[160].mxu0 }
 0x66e   :  { %v7280_v4 = vadd.f32 %v5948_v3, %v10045_v32  ;;  %v5950_v43 = vpop.f32.mrb[161].mxu0 }
 0x66f   :  { %v7281_v7 = vadd.f32 %v5950_v43, %v10049_v54  ;;  %v5952_v52 = vpop.f32.mrb[162].mxu0 }
 0x670   :  { %6111 = vst [vmem:[#allocation14 + $0x20] sm:$0xff] %v7280_v4  ;;  %v7282_v46 = vadd.f32 %v5952_v52, %v10045_v32  ;;  %v5954_v58 = vpop.f32.mrb[163].mxu0 }
 0x671   :  { %6112 = vst [vmem:[#allocation14 + $0x28] sm:$0xff] %v7281_v7  ;;  %v7283_v14 = vadd.f32 %v5954_v58, %v10049_v54 }
 0x672   :  { %6117 = vst [vmem:[#allocation14 + $0x50] sm:$0xff] %v7282_v46 }
 0x673   :  { %6118 = vst [vmem:[#allocation14 + $0x58] sm:$0xff] %v7283_v14 }
 0x675   :  { %v5958_v12 = vpop.f32.mrb[164].mxu0 }
 0x676   :  { %v7284_v28 = vadd.f32 %v5958_v12, %v10045_v32  ;;  %v5960_v23 = vpop.f32.mrb[165].mxu0 }
 0x677   :  { %v7285_v38 = vadd.f32 %v5960_v23, %v10049_v54  ;;  %v5962_v29 = vpop.f32.mrb[166].mxu0 }
 0x678   :  { %6123 = vst [vmem:[#allocation14 + $0x80] sm:$0xff] %v7284_v28  ;;  %v7286_v53 = vadd.f32 %v5962_v29, %v10045_v32  ;;  %v5964_v48 = vpop.f32.mrb[167].mxu0 }
 0x679   :  { %6124 = vst [vmem:[#allocation14 + $0x88] sm:$0xff] %v7285_v38  ;;  %v7287_v36 = vadd.f32 %v5964_v48, %v10049_v54 }
 0x67a   :  { %6129 = vst [vmem:[#allocation14 + $0xb0] sm:$0xff] %v7286_v53 }
 0x67b   :  { %6130 = vst [vmem:[#allocation14 + $0xb8] sm:$0xff] %v7287_v36 }
 0x67d   :  { %v5968_v59 = vpop.f32.mrb[168].mxu0 }
 0x67e   :  { %v7288_v63 = vadd.f32 %v5968_v59, %v10045_v32  ;;  %v5970_v17 = vpop.f32.mrb[169].mxu0 }
 0x67f   :  { %v7289_v5 = vadd.f32 %v5970_v17, %v10049_v54  ;;  %v5972_v49 = vpop.f32.mrb[170].mxu0 }
 0x680   :  { %6135 = vst [vmem:[#allocation14 + $0xe0] sm:$0xff] %v7288_v63  ;;  %v7290_v15 = vadd.f32 %v5972_v49, %v10045_v32  ;;  %v5974_v25 = vpop.f32.mrb[171].mxu0 }
 0x681   :  { %6136 = vst [vmem:[#allocation14 + $0xe8] sm:$0xff] %v7289_v5  ;;  %v7291_v26 = vadd.f32 %v5974_v25, %v10049_v54 }
 0x682   :  { %6141 = vst [vmem:[#allocation14 + $0x110] sm:$0xff] %v7290_v15 }
 0x683   :  { %6142 = vst [vmem:[#allocation14 + $0x118] sm:$0xff] %v7291_v26 }
 0x685   :  { %v5978_v57 = vpop.f32.mrb[172].mxu0 }
 0x686   :  { %v7292_v55 = vadd.f32 %v5978_v57, %v10045_v32  ;;  %v5980_v6 = vpop.f32.mrb[173].mxu0 }
 0x687   :  { %v7293_v51 = vadd.f32 %v5980_v6, %v10049_v54  ;;  %v5982_v41 = vpop.f32.mrb[174].mxu0 }
 0x688   :  { %6147 = vst [vmem:[#allocation14 + $0x140] sm:$0xff] %v7292_v55  ;;  %v7294_v44 = vadd.f32 %v5982_v41, %v10045_v32  ;;  %v5984_v11 = vpop.f32.mrb[175].mxu0 }
 0x689   :  { %6148 = vst [vmem:[#allocation14 + $0x148] sm:$0xff] %v7293_v51  ;;  %v7295_v45 = vadd.f32 %v5984_v11, %v10049_v54 }
 0x68a   :  { %6153 = vst [vmem:[#allocation14 + $0x170] sm:$0xff] %v7294_v44 }
 0x68b   :  { %6154 = vst [vmem:[#allocation14 + $0x178] sm:$0xff] %v7295_v45 }
 0x68d   :  { %v5988_v30 = vpop.f32.mrb[176].mxu0 }
 0x68e   :  { %v7296_v19 = vadd.f32 %v5988_v30, %v10045_v32  ;;  %v5990_v20 = vpop.f32.mrb[177].mxu0 }
 0x68f   :  { %v7297_v8 = vadd.f32 %v5990_v20, %v10049_v54  ;;  %v5992_v16 = vpop.f32.mrb[178].mxu0 }
 0x690   :  { %6159 = vst [vmem:[#allocation14 + $0x1a0] sm:$0xff] %v7296_v19  ;;  %v7298_v62 = vadd.f32 %v5992_v16, %v10045_v32  ;;  %v5994_v33 = vpop.f32.mrb[179].mxu0 }
 0x691   :  { %6160 = vst [vmem:[#allocation14 + $0x1a8] sm:$0xff] %v7297_v8  ;;  %v7299_v1 = vadd.f32 %v5994_v33, %v10049_v54 }
 0x692   :  { %6165 = vst [vmem:[#allocation14 + $0x1d0] sm:$0xff] %v7298_v62 }
 0x693   :  { %6166 = vst [vmem:[#allocation14 + $0x1d8] sm:$0xff] %v7299_v1 }
 0x695   :  { %v5998_v24 = vpop.f32.mrb[180].mxu0 }
 0x696   :  { %v7300_v37 = vadd.f32 %v5998_v24, %v10045_v32  ;;  %v6000_v13 = vpop.f32.mrb[181].mxu0 }
 0x697   :  { %v7301_v27 = vadd.f32 %v6000_v13, %v10049_v54  ;;  %v6002_v50 = vpop.f32.mrb[182].mxu0 }
 0x698   :  { %6171 = vst [vmem:[#allocation14 + $0x200] sm:$0xff] %v7300_v37  ;;  %v7302_v2 = vadd.f32 %v6002_v50, %v10045_v32  ;;  %v6004_v0 = vpop.f32.mrb[183].mxu0 }
 0x699   :  { %6172 = vst [vmem:[#allocation14 + $0x208] sm:$0xff] %v7301_v27  ;;  %v7303_v35 = vadd.f32 %v6004_v0, %v10049_v54 }
 0x69a   :  { %6177 = vst [vmem:[#allocation14 + $0x230] sm:$0xff] %v7302_v2 }
 0x69b   :  { %6178 = vst [vmem:[#allocation14 + $0x238] sm:$0xff] %v7303_v35 }
 0x69d   :  { %v6008_v21 = vpop.f32.mrb[184].mxu0 }
 0x69e   :  { %v7304_v61 = vadd.f32 %v6008_v21, %v10045_v32  ;;  %v6010_v60 = vpop.f32.mrb[185].mxu0 }
 0x69f   :  { %v7305_v40 = vadd.f32 %v6010_v60, %v10049_v54  ;;  %v6012_v31 = vpop.f32.mrb[186].mxu0 }
 0x6a0   :  { %6183 = vst [vmem:[#allocation14 + $0x260] sm:$0xff] %v7304_v61  ;;  %v7306_v42 = vadd.f32 %v6012_v31, %v10045_v32  ;;  %v6014_v22 = vpop.f32.mrb[187].mxu0 }
 0x6a1   :  { %6184 = vst [vmem:[#allocation14 + $0x268] sm:$0xff] %v7305_v40  ;;  %v7307_v47 = vadd.f32 %v6014_v22, %v10049_v54 }
 0x6a2   :  { %6189 = vst [vmem:[#allocation14 + $0x290] sm:$0xff] %v7306_v42 }
 0x6a3   :  { %6190 = vst [vmem:[#allocation14 + $0x298] sm:$0xff] %v7307_v47 }
 0x6a5   :  { %v6018_v56 = vpop.f32.mrb[188].mxu0 }
 0x6a6   :  { %v7308_v9 = vadd.f32 %v6018_v56, %v10045_v32  ;;  %v6020_v18 = vpop.f32.mrb[189].mxu0 }
 0x6a7   :  { %v7309_v10 = vadd.f32 %v6020_v18, %v10049_v54  ;;  %v6022_v34 = vpop.f32.mrb[190].mxu0 }
 0x6a8   :  { %6195 = vst [vmem:[#allocation14 + $0x2c0] sm:$0xff] %v7308_v9  ;;  %v7310_v39 = vadd.f32 %v6022_v34, %v10045_v32  ;;  %v6024_v3 = vpop.f32.mrb[191].mxu0 }
 0x6a9   :  { %6196 = vst [vmem:[#allocation14 + $0x2c8] sm:$0xff] %v7309_v10  ;;  %v7311_v4 = vadd.f32 %v6024_v3, %v10049_v54 }
 0x6aa   :  { %6201 = vst [vmem:[#allocation14 + $0x2f0] sm:$0xff] %v7310_v39 }
 0x6ab   :  { %6202 = vst [vmem:[#allocation14 + $0x2f8] sm:$0xff] %v7311_v4 }
 0x6ad   :  { %v6028_v43 = vpop.f32.mrb[192].mxu0 }
 0x6ae   :  { %v7312_v7 = vadd.f32 %v6028_v43, %v10045_v32  ;;  %v6030_v52 = vpop.f32.mrb[193].mxu0 }
 0x6af   :  { %v7313_v46 = vadd.f32 %v6030_v52, %v10049_v54  ;;  %v6032_v58 = vpop.f32.mrb[194].mxu0 }
 0x6b0   :  { %6207 = vst [vmem:[#allocation14 + $0x320] sm:$0xff] %v7312_v7  ;;  %v7314_v14 = vadd.f32 %v6032_v58, %v10045_v32  ;;  %v6034_v12 = vpop.f32.mrb[195].mxu0 }
 0x6b1   :  { %6208 = vst [vmem:[#allocation14 + $0x328] sm:$0xff] %v7313_v46  ;;  %v7315_v28 = vadd.f32 %v6034_v12, %v10049_v54 }
 0x6b2   :  { %6213 = vst [vmem:[#allocation14 + $0x350] sm:$0xff] %v7314_v14 }
 0x6b3   :  { %6214 = vst [vmem:[#allocation14 + $0x358] sm:$0xff] %v7315_v28 }
 0x6b5   :  { %v6038_v23 = vpop.f32.mrb[196].mxu0 }
 0x6b6   :  { %v7316_v38 = vadd.f32 %v6038_v23, %v10045_v32  ;;  %v6040_v29 = vpop.f32.mrb[197].mxu0 }
 0x6b7   :  { %v7317_v53 = vadd.f32 %v6040_v29, %v10049_v54  ;;  %v6042_v48 = vpop.f32.mrb[198].mxu0 }
 0x6b8   :  { %6219 = vst [vmem:[#allocation14 + $0x380] sm:$0xff] %v7316_v38  ;;  %v7318_v36 = vadd.f32 %v6042_v48, %v10045_v32  ;;  %v6044_v59 = vpop.f32.mrb[199].mxu0 }
 0x6b9   :  { %6220 = vst [vmem:[#allocation14 + $0x388] sm:$0xff] %v7317_v53  ;;  %v7319_v63 = vadd.f32 %v6044_v59, %v10049_v54 }
 0x6ba   :  { %6225 = vst [vmem:[#allocation14 + $0x3b0] sm:$0xff] %v7318_v36 }
 0x6bb   :  { %6226 = vst [vmem:[#allocation14 + $0x3b8] sm:$0xff] %v7319_v63 }
 0x6bd   :  { %v6048_v17 = vpop.f32.mrb[200].mxu0 }
 0x6be   :  { %v7320_v5 = vadd.f32 %v6048_v17, %v10045_v32  ;;  %v6050_v49 = vpop.f32.mrb[201].mxu0 }
 0x6bf   :  { %v7321_v15 = vadd.f32 %v6050_v49, %v10049_v54  ;;  %v6052_v25 = vpop.f32.mrb[202].mxu0 }
 0x6c0   :  { %6231 = vst [vmem:[#allocation14 + $0x3e0] sm:$0xff] %v7320_v5  ;;  %v7322_v26 = vadd.f32 %v6052_v25, %v10045_v32  ;;  %v6054_v57 = vpop.f32.mrb[203].mxu0 }
 0x6c1   :  { %6232 = vst [vmem:[#allocation14 + $0x3e8] sm:$0xff] %v7321_v15  ;;  %v7323_v55 = vadd.f32 %v6054_v57, %v10049_v54 }
 0x6c2   :  { %6237 = vst [vmem:[#allocation14 + $0x410] sm:$0xff] %v7322_v26 }
 0x6c3   :  { %6238 = vst [vmem:[#allocation14 + $0x418] sm:$0xff] %v7323_v55 }
 0x6c5   :  { %v6058_v6 = vpop.f32.mrb[204].mxu0 }
 0x6c6   :  { %v7324_v51 = vadd.f32 %v6058_v6, %v10045_v32  ;;  %v6060_v41 = vpop.f32.mrb[205].mxu0 }
 0x6c7   :  { %v7325_v44 = vadd.f32 %v6060_v41, %v10049_v54  ;;  %v6062_v11 = vpop.f32.mrb[206].mxu0 }
 0x6c8   :  { %6243 = vst [vmem:[#allocation14 + $0x440] sm:$0xff] %v7324_v51  ;;  %v7326_v45 = vadd.f32 %v6062_v11, %v10045_v32  ;;  %v6064_v30 = vpop.f32.mrb[207].mxu0 }
 0x6c9   :  { %6244 = vst [vmem:[#allocation14 + $0x448] sm:$0xff] %v7325_v44  ;;  %v7327_v19 = vadd.f32 %v6064_v30, %v10049_v54 }
 0x6ca   :  { %6249 = vst [vmem:[#allocation14 + $0x470] sm:$0xff] %v7326_v45 }
 0x6cb   :  { %6250 = vst [vmem:[#allocation14 + $0x478] sm:$0xff] %v7327_v19 }
 0x6cd   :  { %v6068_v20 = vpop.f32.mrb[208].mxu0 }
 0x6ce   :  { %v7328_v8 = vadd.f32 %v6068_v20, %v10045_v32  ;;  %v6070_v16 = vpop.f32.mrb[209].mxu0 }
 0x6cf   :  { %v7329_v62 = vadd.f32 %v6070_v16, %v10049_v54  ;;  %v6072_v33 = vpop.f32.mrb[210].mxu0 }
 0x6d0   :  { %6255 = vst [vmem:[#allocation14 + $0x4a0] sm:$0xff] %v7328_v8  ;;  %v7330_v1 = vadd.f32 %v6072_v33, %v10045_v32  ;;  %v6074_v24 = vpop.f32.mrb[211].mxu0 }
 0x6d1   :  { %6256 = vst [vmem:[#allocation14 + $0x4a8] sm:$0xff] %v7329_v62  ;;  %v7331_v37 = vadd.f32 %v6074_v24, %v10049_v54 }
 0x6d2   :  { %6261 = vst [vmem:[#allocation14 + $0x4d0] sm:$0xff] %v7330_v1 }
 0x6d3   :  { %6262 = vst [vmem:[#allocation14 + $0x4d8] sm:$0xff] %v7331_v37 }
 0x6d5   :  { %v6078_v13 = vpop.f32.mrb[212].mxu0 }
 0x6d6   :  { %v7332_v27 = vadd.f32 %v6078_v13, %v10045_v32  ;;  %v6080_v50 = vpop.f32.mrb[213].mxu0 }
 0x6d7   :  { %v7333_v2 = vadd.f32 %v6080_v50, %v10049_v54  ;;  %v6082_v0 = vpop.f32.mrb[214].mxu0 }
 0x6d8   :  { %6267 = vst [vmem:[#allocation14 + $0x500] sm:$0xff] %v7332_v27  ;;  %v7334_v35 = vadd.f32 %v6082_v0, %v10045_v32  ;;  %v6084_v21 = vpop.f32.mrb[215].mxu0 }
 0x6d9   :  { %6268 = vst [vmem:[#allocation14 + $0x508] sm:$0xff] %v7333_v2  ;;  %v7335_v61 = vadd.f32 %v6084_v21, %v10049_v54 }
 0x6da   :  { %6273 = vst [vmem:[#allocation14 + $0x530] sm:$0xff] %v7334_v35 }
 0x6db   :  { %6274 = vst [vmem:[#allocation14 + $0x538] sm:$0xff] %v7335_v61 }
 0x6dd   :  { %v6088_v60 = vpop.f32.mrb[216].mxu0 }
 0x6de   :  { %v7336_v40 = vadd.f32 %v6088_v60, %v10045_v32  ;;  %v6090_v31 = vpop.f32.mrb[217].mxu0 }
 0x6df   :  { %v7337_v42 = vadd.f32 %v6090_v31, %v10049_v54  ;;  %v6092_v22 = vpop.f32.mrb[218].mxu0 }
 0x6e0   :  { %6279 = vst [vmem:[#allocation14 + $0x560] sm:$0xff] %v7336_v40  ;;  %v7338_v47 = vadd.f32 %v6092_v22, %v10045_v32  ;;  %v6094_v56 = vpop.f32.mrb[219].mxu0 }
 0x6e1   :  { %6280 = vst [vmem:[#allocation14 + $0x568] sm:$0xff] %v7337_v42  ;;  %v7339_v9 = vadd.f32 %v6094_v56, %v10049_v54 }
 0x6e2   :  { %6285 = vst [vmem:[#allocation14 + $0x590] sm:$0xff] %v7338_v47 }
 0x6e3   :  { %6286 = vst [vmem:[#allocation14 + $0x598] sm:$0xff] %v7339_v9 }
 0x6e5   :  { %v6098_v18 = vpop.f32.mrb[220].mxu0 }
 0x6e6   :  { %v7340_v10 = vadd.f32 %v6098_v18, %v10045_v32  ;;  %v6100_v34 = vpop.f32.mrb[221].mxu0 }
 0x6e7   :  { %v7341_v39 = vadd.f32 %v6100_v34, %v10049_v54  ;;  %v6102_v3 = vpop.f32.mrb[222].mxu0 }
 0x6e8   :  { %6291 = vst [vmem:[#allocation14 + $0x5c0] sm:$0xff] %v7340_v10  ;;  %v7342_v4 = vadd.f32 %v6102_v3, %v10045_v32  ;;  %v6104_v43 = vpop.f32.mrb[223].mxu0 }
 0x6e9   :  { %6292 = vst [vmem:[#allocation14 + $0x5c8] sm:$0xff] %v7341_v39  ;;  %v7343_v7 = vadd.f32 %v6104_v43, %v10049_v54 }
 0x6ea   :  { %6297 = vst [vmem:[#allocation14 + $0x5f0] sm:$0xff] %v7342_v4 }
 0x6eb   :  { %6298 = vst [vmem:[#allocation14 + $0x5f8] sm:$0xff] %v7343_v7 }
 0x6ec   :  { %8606 = shalt.err (!%p8603_p4)
}
 0x6ed   :  { %s8607_s25 = scalar_lea.hbm %s10134_s7, 24576 }
 0x6ee   :  { %p8608_p5 = scmp.ne.s32.totalorder %s10134_s7, %s8607_s25  ;;  %p8611_p6 = scmp.lt.u32.totalorder %s8607_s25, %s10134_s7 }
 0x6f0   :  { %p8613_p7 = pnand %p8611_p6, %p8608_p5 }
 0x6f2   :  { %8616 = shalt.err (!%p8613_p7)
}
 0x6f3   :  { %s8640_s19 = smov 768   ;;  %s8641_s21 = smov 48  }
 0x6f4   :  { %6310 = dma.vmem_to_hbm [thread:$0]  %s6305_s13, 24576, %s10134_s7, [#allocation4], %s8640_s19, %s8640_s19, %s8641_s21  }
 0x6f5   :  { %8625 = dma.done.wait [#allocation4], 24576  }
 0x6f6   :  { %8626 = vsyncadd [#allocation4], 4294942720 }
 0x6f7   :  { %6314 = vsyncpa [#allocation3], 1 }
 0x6f8   :  { %6315 = vsyncpa [#allocation6], 1 }
 0x6f9   :  { %6316 = vsyncpa [#allocation9], 1 }
 0x6fa   :  { %6317 = vsyncpa [#allocation12], 1 }
 0x6fb   :  { %6318 = vsyncpa [#allocation4], 1 }

</bundles_post_ra>
